<compile_context>
chip_gen: v6e
topology: v6e:2x2x1
jax: 0.10.0
libtpu: 0.0.40
codegen_flags: <defaults>
</compile_context>

<pallas_src>
import functools
import math

import jax
import jax.numpy as jnp
from jax.experimental import pallas as pl
from jax.experimental.pallas import tpu as pltpu

LN_EPS = 1e-5     # torch.nn.LayerNorm default
SIM_EPS = 1e-8    # FLAttention.compute_sim epsilon


# ----------------------------------------------------------------------------
# Fused kernel
# ----------------------------------------------------------------------------
def _layernorm(y, w, b):
    mean = jnp.mean(y, axis=-1, keepdims=True)
    var = jnp.mean((y - mean) ** 2, axis=-1, keepdims=True)
    return (y - mean) * jax.lax.rsqrt(var + LN_EPS) * w + b


def fused_flann_kernel(ab_ref, x_ref, *refs, num_layers, num_heads):
    """Entire FLANN forward for one (TB, D0) row block.

    ab_ref : (num_layers*num_heads*6,) f32 SMEM (scalar prefetch)
             per (layer, head): [alpha_q, beta_q, alpha_k, beta_k, alpha_v, beta_v]
    x_ref  : (TB, D0) f32 VMEM
    refs   : per layer [fla_lnw, fla_lnb, w, b, lnw, lnb], then w_out, b_out, o_ref
    """
    layer_refs = refs[: 6 * num_layers]
    w_out_ref = refs[6 * num_layers]
    b_out_ref = refs[6 * num_layers + 1]
    o_ref = refs[6 * num_layers + 2]

    # Hoist every FLA scalar read (SMEM) above the vector work.
    n_sc = num_layers * num_heads * 6
    ab = [ab_ref[i] for i in range(n_sc)]

    x = x_ref[...]                                           # (TB, D0)

    for l in range(num_layers):
        fla_lnw, fla_lnb, w, b, lnw, lnb = layer_refs[6 * l: 6 * l + 6]

        if num_heads > 0:
            d = x.shape[-1]
            inv_sqrt_d = 1.0 / math.sqrt(float(d))
            acc = jnp.zeros_like(x)
            for h in range(num_heads):                       # H small & static: unrolled
                base = (l * num_heads + h) * 6
                aq, bq, ak, bk, av, bv = ab[base: base + 6]
                q = aq * x + bq                              # (TB, D)
                k = ak * x + bk
                v = av * x + bv
                # diff[b, i, j] = |key[b, j] - query[b, i]|  (unsqueeze(1)/unsqueeze(2))
                diff = jnp.abs(k[:, None, :] - q[:, :, None]) + SIM_EPS   # (TB, D, D)
                # Keep this reciprocal EXACT: sim reaches ~1/SIM_EPS = 1e8 and feeds exp().
                sim = 1.0 / diff
                m = jnp.max(sim, axis=-1, keepdims=True)
                e = jnp.exp(sim - m)                         # (TB, D, D)
                # Never materialize the normalized softmax: reduce first, scale (TB, D).
                num = jnp.sum(e * v[:, None, :], axis=-1)    # (TB, D)
                denom = jnp.sum(e, axis=-1)                  # (TB, D)
                inv_denom = pl.reciprocal(denom, approx=True)        # EUP slot
                inv_denom = inv_denom * (2.0 - denom * inv_denom)    # 1 Newton step -> f32 exact
                acc = acc + num * (inv_sqrt_d * inv_denom)
            y = x + acc                                      # residual inside FLAttention
            y = jnp.maximum(y, 0.0)                          # activation (ReLU)
            x = _layernorm(y, fla_lnw[...], fla_lnb[...])

        y = jnp.dot(x, w[...], preferred_element_type=jnp.float32) + b[...]
        y = jnp.maximum(y, 0.0)                              # activation (ReLU)
        x = _layernorm(y, lnw[...], lnb[...])

    # Output projection (padded to 128 lanes -> unmasked lane-dense store).
    o_ref[...] = (jnp.dot(x, w_out_ref[...], preferred_element_type=jnp.float32)
                  + b_out_ref[...])


# ----------------------------------------------------------------------------
# Wrapper: single pallas_call for the whole network
# ----------------------------------------------------------------------------
def flann_forward(x, params, attn_heads, *, row_block=8, lane_pad=128):
    B, D0 = x.shape
    num_layers = len(params["layers"])

    # Pad batch to a multiple of the row block (zero rows are numerically safe:
    # |k-q|+eps > 0 and LayerNorm's eps keeps rsqrt finite).
    Bp = ((B + row_block - 1) // row_block) * row_block
    if Bp != B:
        x = jnp.pad(x, ((0, Bp - B), (0, 0)))

    # Flatten all FLA scalars into one 1-D SMEM array (scalar prefetch operand).
    ab_flat = jnp.concatenate(
        [lyr["fla_ab"].reshape(-1) for lyr in params["layers"]])

    # Lane-pad the output projection so the final store is a full-lane vst.
    w_out, b_out = params["w_out"], params["b_out"]
    d_out = w_out.shape[1]
    out_pad = ((d_out + lane_pad - 1) // lane_pad) * lane_pad
    w_out_p = jnp.pad(w_out, ((0, 0), (0, out_pad - d_out)))
    b_out_p = jnp.pad(b_out, ((0, 0), (0, out_pad - d_out)))

    def _full_spec(shape):  # whole small 2-D array resident every grid step
        return pl.BlockSpec(shape, lambda i, ab: (0, 0))

    inputs = [x]
    in_specs = [pl.BlockSpec((row_block, D0), lambda i, ab: (i, 0))]
    for lyr in params["layers"]:
        for name in ("fla_lnw", "fla_lnb", "w", "b", "lnw", "lnb"):
            arr = lyr[name]
            inputs.append(arr)
            in_specs.append(_full_spec(arr.shape))
    inputs += [w_out_p, b_out_p]
    in_specs += [_full_spec(w_out_p.shape), _full_spec(b_out_p.shape)]

    out = pl.pallas_call(
        functools.partial(fused_flann_kernel,
                          num_layers=num_layers,
                          num_heads=attn_heads),
        out_shape=jax.ShapeDtypeStruct((Bp, out_pad), jnp.float32),
        grid_spec=pltpu.PrefetchScalarGridSpec(
            num_scalar_prefetch=1,
            grid=(Bp // row_block,),
            in_specs=in_specs,
            out_specs=pl.BlockSpec((row_block, out_pad), lambda i, ab: (i, 0)),
        ),
        compiler_params=pltpu.CompilerParams(
            dimension_semantics=("parallel",)),
    )(ab_flat, *inputs)

    return out[:B, :d_out]


# ----------------------------------------------------------------------------
# Deterministic parameter construction (mirrors the PyTorch __init__ shapes)
# ----------------------------------------------------------------------------
def init_params(key, input_dim, hidden_dims, attn_heads, output_dim=1):
    dims = [input_dim] + list(hidden_dims)
    layers = []
    for i in range(len(dims) - 1):
        din, dout = dims[i], dims[i + 1]
        key, k1, k2, k3 = jax.random.split(key, 4)
        bound = 1.0 / math.sqrt(din)
        layers.append(dict(
            # nn.Linear(din, dout): W stored (din, dout) = PyTorch W^T
            w=jax.random.uniform(k1, (din, dout), jnp.float32, -bound, bound),
            b=jax.random.uniform(k2, (1, dout), jnp.float32, -bound, bound),
            lnw=jnp.ones((1, dout), jnp.float32),
            lnb=jnp.zeros((1, dout), jnp.float32),
            # FLAttention: per-head [aq, bq, ak, bk, av, bv], uniform[0,1)
            fla_ab=jax.random.uniform(k3, (max(attn_heads, 1), 6), jnp.float32),
            fla_lnw=jnp.ones((1, din), jnp.float32),
            fla_lnb=jnp.zeros((1, din), jnp.float32),
        ))
    key, k1, k2 = jax.random.split(key, 3)
    bound = 1.0 / math.sqrt(dims[-1])
    return dict(
        layers=layers,
        w_out=jax.random.uniform(k1, (dims[-1], output_dim), jnp.float32, -bound, bound),
        b_out=jax.random.uniform(k2, (1, output_dim), jnp.float32, -bound, bound),
    )


# ----------------------------------------------------------------------------
# Pure-JAX reference (for correctness check)
# ----------------------------------------------------------------------------
def flann_reference(x, params, attn_heads):
    def ln(y, w, b):
        mean = jnp.mean(y, axis=-1, keepdims=True)
        var = jnp.mean((y - mean) ** 2, axis=-1, keepdims=True)
        return (y - mean) / jnp.sqrt(var + LN_EPS) * w + b

    for layer in params["layers"]:
        if attn_heads != 0:
            d = x.shape[-1]
            acc = jnp.zeros_like(x)
            for h in range(attn_heads):
                aq, bq, ak, bk, av, bv = [layer["fla_ab"][h, j] for j in range(6)]
                q, k, v = aq * x + bq, ak * x + bk, av * x + bv
                diff = jnp.abs(k[:, None, :] - q[:, :, None]) + SIM_EPS
                sim = jax.nn.softmax(1.0 / diff, axis=-1) / math.sqrt(float(d))
                acc = acc + jnp.einsum("bij,bj->bi", sim, v)
            x = ln(jax.nn.relu(x + acc), layer["fla_lnw"], layer["fla_lnb"])
        x = ln(jax.nn.relu(x @ layer["w"] + layer["b"]), layer["lnw"], layer["lnb"])
    return x @ params["w_out"] + params["b_out"]


# ----------------------------------------------------------------------------
if __name__ == "__main__":
    B = 16                      # two 8-row blocks -> exercises the parallel grid
    input_dim = 16
    hidden_dims = (32, 16)
    attn_heads = 2
    output_dim = 1

    key = jax.random.PRNGKey(0)
    key, kx = jax.random.split(key)
    x = jax.random.normal(kx, (B, input_dim), dtype=jnp.float32)
    params = init_params(key, input_dim, hidden_dims, attn_heads, output_dim)

    out = flann_forward(x, params, attn_heads)
    out = jax.block_until_ready(out)

    ref = flann_reference(x, params, attn_heads)
    assert out.shape == (B, output_dim), out.shape
    assert jnp.allclose(out, ref, rtol=2e-3, atol=2e-3), (out, ref)

    print("KERNEL_OK")
</pallas_src>

<mosaic_0001>
module attributes {stable_mosaic.version = 11 : i64} {
  func.func @fused_flann_kernel(%arg0: i32, %arg1: memref<24xf32, #tpu.memory_space<smem>>, %arg2: memref<8x16xf32, #tpu.memory_space<vmem>>, %arg3: memref<1x16xf32, #tpu.memory_space<vmem>>, %arg4: memref<1x16xf32, #tpu.memory_space<vmem>>, %arg5: memref<16x32xf32, #tpu.memory_space<vmem>>, %arg6: memref<1x32xf32, #tpu.memory_space<vmem>>, %arg7: memref<1x32xf32, #tpu.memory_space<vmem>>, %arg8: memref<1x32xf32, #tpu.memory_space<vmem>>, %arg9: memref<1x32xf32, #tpu.memory_space<vmem>>, %arg10: memref<1x32xf32, #tpu.memory_space<vmem>>, %arg11: memref<32x16xf32, #tpu.memory_space<vmem>>, %arg12: memref<1x16xf32, #tpu.memory_space<vmem>>, %arg13: memref<1x16xf32, #tpu.memory_space<vmem>>, %arg14: memref<1x16xf32, #tpu.memory_space<vmem>>, %arg15: memref<16x128xf32, #tpu.memory_space<vmem>>, %arg16: memref<1x128xf32, #tpu.memory_space<vmem>>, %arg17: memref<8x128xf32, #tpu.memory_space<vmem>>) attributes {dimension_semantics = [#tpu.dimension_semantics<parallel>], iteration_bounds = array<i64: 2>, scalar_prefetch = 1 : i64, scratch_operands = 0 : i64, tpu.core_type = #tpu.core_type<tc>, window_params = [{transform_indices = @transform_0, window_bounds = array<i64: 8, 16>}, {pipeline_mode = #tpu.pipeline_mode<synchronous>, transform_indices = @transform_1, window_bounds = array<i64: 1, 16>}, {pipeline_mode = #tpu.pipeline_mode<synchronous>, transform_indices = @transform_2, window_bounds = array<i64: 1, 16>}, {pipeline_mode = #tpu.pipeline_mode<synchronous>, transform_indices = @transform_3, window_bounds = array<i64: 16, 32>}, {pipeline_mode = #tpu.pipeline_mode<synchronous>, transform_indices = @transform_4, window_bounds = array<i64: 1, 32>}, {pipeline_mode = #tpu.pipeline_mode<synchronous>, transform_indices = @transform_5, window_bounds = array<i64: 1, 32>}, {pipeline_mode = #tpu.pipeline_mode<synchronous>, transform_indices = @transform_6, window_bounds = array<i64: 1, 32>}, {pipeline_mode = #tpu.pipeline_mode<synchronous>, transform_indices = @transform_7, window_bounds = array<i64: 1, 32>}, {pipeline_mode = #tpu.pipeline_mode<synchronous>, transform_indices = @transform_8, window_bounds = array<i64: 1, 32>}, {pipeline_mode = #tpu.pipeline_mode<synchronous>, transform_indices = @transform_9, window_bounds = array<i64: 32, 16>}, {pipeline_mode = #tpu.pipeline_mode<synchronous>, transform_indices = @transform_10, window_bounds = array<i64: 1, 16>}, {pipeline_mode = #tpu.pipeline_mode<synchronous>, transform_indices = @transform_11, window_bounds = array<i64: 1, 16>}, {pipeline_mode = #tpu.pipeline_mode<synchronous>, transform_indices = @transform_12, window_bounds = array<i64: 1, 16>}, {pipeline_mode = #tpu.pipeline_mode<synchronous>, transform_indices = @transform_13, window_bounds = array<i64: 16, 128>}, {pipeline_mode = #tpu.pipeline_mode<synchronous>, transform_indices = @transform_14, window_bounds = array<i64: 1, 128>}, {transform_indices = @transform_15, window_bounds = array<i64: 8, 128>}]} {
    %c0 = arith.constant 0 : index
    %0 = memref.load %arg1[%c0] : memref<24xf32, #tpu.memory_space<smem>>
    %c1 = arith.constant 1 : index
    %1 = memref.load %arg1[%c1] : memref<24xf32, #tpu.memory_space<smem>>
    %c2 = arith.constant 2 : index
    %2 = memref.load %arg1[%c2] : memref<24xf32, #tpu.memory_space<smem>>
    %c3 = arith.constant 3 : index
    %3 = memref.load %arg1[%c3] : memref<24xf32, #tpu.memory_space<smem>>
    %c4 = arith.constant 4 : index
    %4 = memref.load %arg1[%c4] : memref<24xf32, #tpu.memory_space<smem>>
    %c5 = arith.constant 5 : index
    %5 = memref.load %arg1[%c5] : memref<24xf32, #tpu.memory_space<smem>>
    %c6 = arith.constant 6 : index
    %6 = memref.load %arg1[%c6] : memref<24xf32, #tpu.memory_space<smem>>
    %c7 = arith.constant 7 : index
    %7 = memref.load %arg1[%c7] : memref<24xf32, #tpu.memory_space<smem>>
    %c8 = arith.constant 8 : index
    %8 = memref.load %arg1[%c8] : memref<24xf32, #tpu.memory_space<smem>>
    %c9 = arith.constant 9 : index
    %9 = memref.load %arg1[%c9] : memref<24xf32, #tpu.memory_space<smem>>
    %c10 = arith.constant 10 : index
    %10 = memref.load %arg1[%c10] : memref<24xf32, #tpu.memory_space<smem>>
    %c11 = arith.constant 11 : index
    %11 = memref.load %arg1[%c11] : memref<24xf32, #tpu.memory_space<smem>>
    %c12 = arith.constant 12 : index
    %12 = memref.load %arg1[%c12] : memref<24xf32, #tpu.memory_space<smem>>
    %c13 = arith.constant 13 : index
    %13 = memref.load %arg1[%c13] : memref<24xf32, #tpu.memory_space<smem>>
    %c14 = arith.constant 14 : index
    %14 = memref.load %arg1[%c14] : memref<24xf32, #tpu.memory_space<smem>>
    %c15 = arith.constant 15 : index
    %15 = memref.load %arg1[%c15] : memref<24xf32, #tpu.memory_space<smem>>
    %c16 = arith.constant 16 : index
    %16 = memref.load %arg1[%c16] : memref<24xf32, #tpu.memory_space<smem>>
    %c17 = arith.constant 17 : index
    %17 = memref.load %arg1[%c17] : memref<24xf32, #tpu.memory_space<smem>>
    %c18 = arith.constant 18 : index
    %18 = memref.load %arg1[%c18] : memref<24xf32, #tpu.memory_space<smem>>
    %c19 = arith.constant 19 : index
    %19 = memref.load %arg1[%c19] : memref<24xf32, #tpu.memory_space<smem>>
    %c20 = arith.constant 20 : index
    %20 = memref.load %arg1[%c20] : memref<24xf32, #tpu.memory_space<smem>>
    %c21 = arith.constant 21 : index
    %21 = memref.load %arg1[%c21] : memref<24xf32, #tpu.memory_space<smem>>
    %c22 = arith.constant 22 : index
    %22 = memref.load %arg1[%c22] : memref<24xf32, #tpu.memory_space<smem>>
    %c23 = arith.constant 23 : index
    %23 = memref.load %arg1[%c23] : memref<24xf32, #tpu.memory_space<smem>>
    %c0_0 = arith.constant 0 : index
    %c0_1 = arith.constant 0 : index
    %24 = vector.load %arg2[%c0_0, %c0_1] : memref<8x16xf32, #tpu.memory_space<vmem>>, vector<8x16xf32>
    %cst = arith.constant 0.000000e+00 : f32
    %25 = vector.broadcast %cst : f32 to vector<8x16xf32>
    %26 = vector.broadcast %0 : f32 to vector<8x16xf32>
    %27 = arith.mulf %26, %24 : vector<8x16xf32>
    %28 = vector.broadcast %1 : f32 to vector<8x16xf32>
    %29 = arith.addf %27, %28 : vector<8x16xf32>
    %30 = vector.broadcast %2 : f32 to vector<8x16xf32>
    %31 = arith.mulf %30, %24 : vector<8x16xf32>
    %32 = vector.broadcast %3 : f32 to vector<8x16xf32>
    %33 = arith.addf %31, %32 : vector<8x16xf32>
    %34 = vector.broadcast %4 : f32 to vector<8x16xf32>
    %35 = arith.mulf %34, %24 : vector<8x16xf32>
    %36 = vector.broadcast %5 : f32 to vector<8x16xf32>
    %37 = arith.addf %35, %36 : vector<8x16xf32>
    %38 = vector.shape_cast %33 : vector<8x16xf32> to vector<8x1x16xf32>
    %39 = vector.shape_cast %29 : vector<8x16xf32> to vector<8x16x1xf32>
    %40 = vector.broadcast %38 : vector<8x1x16xf32> to vector<8x16x16xf32>
    %41 = vector.broadcast %39 : vector<8x16x1xf32> to vector<8x16x16xf32>
    %42 = arith.subf %40, %41 : vector<8x16x16xf32>
    %43 = math.absf %42 : vector<8x16x16xf32>
    %cst_2 = arith.constant 9.99999993E-9 : f32
    %44 = vector.broadcast %cst_2 : f32 to vector<8x16x16xf32>
    %45 = arith.addf %43, %44 : vector<8x16x16xf32>
    %cst_3 = arith.constant 1.000000e+00 : f32
    %46 = vector.broadcast %cst_3 : f32 to vector<8x16x16xf32>
    %47 = arith.divf %46, %45 : vector<8x16x16xf32>
    %cst_4 = arith.constant dense<0xFF800000> : vector<8x16xf32>
    %48 = vector.multi_reduction <maximumf>, %47, %cst_4 [2] : vector<8x16x16xf32> to vector<8x16xf32>
    %49 = vector.shape_cast %48 : vector<8x16xf32> to vector<8x16x1xf32>
    %50 = vector.broadcast %49 : vector<8x16x1xf32> to vector<8x16x16xf32>
    %51 = arith.subf %47, %50 : vector<8x16x16xf32>
    %52 = math.exp %51 : vector<8x16x16xf32>
    %53 = vector.shape_cast %37 : vector<8x16xf32> to vector<8x1x16xf32>
    %54 = vector.broadcast %53 : vector<8x1x16xf32> to vector<8x16x16xf32>
    %55 = arith.mulf %52, %54 : vector<8x16x16xf32>
    %cst_5 = arith.constant dense<0.000000e+00> : vector<8x16xf32>
    %56 = vector.multi_reduction <add>, %55, %cst_5 [2] : vector<8x16x16xf32> to vector<8x16xf32>
    %cst_6 = arith.constant dense<0.000000e+00> : vector<8x16xf32>
    %57 = vector.multi_reduction <add>, %52, %cst_6 [2] : vector<8x16x16xf32> to vector<8x16xf32>
    %58 = tpu.reciprocal %57 {approx = true} : vector<8x16xf32> -> vector<8x16xf32>
    %59 = arith.mulf %57, %58 : vector<8x16xf32>
    %cst_7 = arith.constant 2.000000e+00 : f32
    %60 = vector.broadcast %cst_7 : f32 to vector<8x16xf32>
    %61 = arith.subf %60, %59 : vector<8x16xf32>
    %62 = arith.mulf %58, %61 : vector<8x16xf32>
    %cst_8 = arith.constant 2.500000e-01 : f32
    %63 = vector.broadcast %cst_8 : f32 to vector<8x16xf32>
    %64 = arith.mulf %63, %62 : vector<8x16xf32>
    %65 = arith.mulf %56, %64 : vector<8x16xf32>
    %66 = arith.addf %25, %65 : vector<8x16xf32>
    %67 = vector.broadcast %6 : f32 to vector<8x16xf32>
    %68 = arith.mulf %67, %24 : vector<8x16xf32>
    %69 = vector.broadcast %7 : f32 to vector<8x16xf32>
    %70 = arith.addf %68, %69 : vector<8x16xf32>
    %71 = vector.broadcast %8 : f32 to vector<8x16xf32>
    %72 = arith.mulf %71, %24 : vector<8x16xf32>
    %73 = vector.broadcast %9 : f32 to vector<8x16xf32>
    %74 = arith.addf %72, %73 : vector<8x16xf32>
    %75 = vector.broadcast %10 : f32 to vector<8x16xf32>
    %76 = arith.mulf %75, %24 : vector<8x16xf32>
    %77 = vector.broadcast %11 : f32 to vector<8x16xf32>
    %78 = arith.addf %76, %77 : vector<8x16xf32>
    %79 = vector.shape_cast %74 : vector<8x16xf32> to vector<8x1x16xf32>
    %80 = vector.shape_cast %70 : vector<8x16xf32> to vector<8x16x1xf32>
    %81 = vector.broadcast %79 : vector<8x1x16xf32> to vector<8x16x16xf32>
    %82 = vector.broadcast %80 : vector<8x16x1xf32> to vector<8x16x16xf32>
    %83 = arith.subf %81, %82 : vector<8x16x16xf32>
    %84 = math.absf %83 : vector<8x16x16xf32>
    %cst_9 = arith.constant 9.99999993E-9 : f32
    %85 = vector.broadcast %cst_9 : f32 to vector<8x16x16xf32>
    %86 = arith.addf %84, %85 : vector<8x16x16xf32>
    %cst_10 = arith.constant 1.000000e+00 : f32
    %87 = vector.broadcast %cst_10 : f32 to vector<8x16x16xf32>
    %88 = arith.divf %87, %86 : vector<8x16x16xf32>
    %cst_11 = arith.constant dense<0xFF800000> : vector<8x16xf32>
    %89 = vector.multi_reduction <maximumf>, %88, %cst_11 [2] : vector<8x16x16xf32> to vector<8x16xf32>
    %90 = vector.shape_cast %89 : vector<8x16xf32> to vector<8x16x1xf32>
    %91 = vector.broadcast %90 : vector<8x16x1xf32> to vector<8x16x16xf32>
    %92 = arith.subf %88, %91 : vector<8x16x16xf32>
    %93 = math.exp %92 : vector<8x16x16xf32>
    %94 = vector.shape_cast %78 : vector<8x16xf32> to vector<8x1x16xf32>
    %95 = vector.broadcast %94 : vector<8x1x16xf32> to vector<8x16x16xf32>
    %96 = arith.mulf %93, %95 : vector<8x16x16xf32>
    %cst_12 = arith.constant dense<0.000000e+00> : vector<8x16xf32>
    %97 = vector.multi_reduction <add>, %96, %cst_12 [2] : vector<8x16x16xf32> to vector<8x16xf32>
    %cst_13 = arith.constant dense<0.000000e+00> : vector<8x16xf32>
    %98 = vector.multi_reduction <add>, %93, %cst_13 [2] : vector<8x16x16xf32> to vector<8x16xf32>
    %99 = tpu.reciprocal %98 {approx = true} : vector<8x16xf32> -> vector<8x16xf32>
    %100 = arith.mulf %98, %99 : vector<8x16xf32>
    %cst_14 = arith.constant 2.000000e+00 : f32
    %101 = vector.broadcast %cst_14 : f32 to vector<8x16xf32>
    %102 = arith.subf %101, %100 : vector<8x16xf32>
    %103 = arith.mulf %99, %102 : vector<8x16xf32>
    %cst_15 = arith.constant 2.500000e-01 : f32
    %104 = vector.broadcast %cst_15 : f32 to vector<8x16xf32>
    %105 = arith.mulf %104, %103 : vector<8x16xf32>
    %106 = arith.mulf %97, %105 : vector<8x16xf32>
    %107 = arith.addf %66, %106 : vector<8x16xf32>
    %108 = arith.addf %24, %107 : vector<8x16xf32>
    %cst_16 = arith.constant 0.000000e+00 : f32
    %109 = vector.broadcast %cst_16 : f32 to vector<8x16xf32>
    %110 = arith.maximumf %108, %109 : vector<8x16xf32>
    %c0_17 = arith.constant 0 : index
    %c0_18 = arith.constant 0 : index
    %111 = vector.load %arg3[%c0_17, %c0_18] : memref<1x16xf32, #tpu.memory_space<vmem>>, vector<1x16xf32>
    %c0_19 = arith.constant 0 : index
    %c0_20 = arith.constant 0 : index
    %112 = vector.load %arg4[%c0_19, %c0_20] : memref<1x16xf32, #tpu.memory_space<vmem>>, vector<1x16xf32>
    %cst_21 = arith.constant dense<0.000000e+00> : vector<8xf32>
    %113 = vector.multi_reduction <add>, %110, %cst_21 [1] : vector<8x16xf32> to vector<8xf32>
    %114 = vector.shape_cast %113 : vector<8xf32> to vector<8x1xf32>
    %cst_22 = arith.constant 1.600000e+01 : f32
    %115 = vector.broadcast %cst_22 : f32 to vector<8x1xf32>
    %116 = arith.divf %114, %115 : vector<8x1xf32>
    %117 = vector.broadcast %116 : vector<8x1xf32> to vector<8x16xf32>
    %118 = arith.subf %110, %117 : vector<8x16xf32>
    %119 = arith.mulf %118, %118 : vector<8x16xf32>
    %cst_23 = arith.constant dense<0.000000e+00> : vector<8xf32>
    %120 = vector.multi_reduction <add>, %119, %cst_23 [1] : vector<8x16xf32> to vector<8xf32>
    %121 = vector.shape_cast %120 : vector<8xf32> to vector<8x1xf32>
    %cst_24 = arith.constant 1.600000e+01 : f32
    %122 = vector.broadcast %cst_24 : f32 to vector<8x1xf32>
    %123 = arith.divf %121, %122 : vector<8x1xf32>
    %124 = vector.broadcast %116 : vector<8x1xf32> to vector<8x16xf32>
    %125 = arith.subf %110, %124 : vector<8x16xf32>
    %cst_25 = arith.constant 9.99999974E-6 : f32
    %126 = vector.broadcast %cst_25 : f32 to vector<8x1xf32>
    %127 = arith.addf %123, %126 : vector<8x1xf32>
    %128 = math.rsqrt %127 : vector<8x1xf32>
    %129 = vector.broadcast %128 : vector<8x1xf32> to vector<8x16xf32>
    %130 = arith.mulf %125, %129 : vector<8x16xf32>
    %131 = vector.broadcast %111 : vector<1x16xf32> to vector<8x16xf32>
    %132 = arith.mulf %130, %131 : vector<8x16xf32>
    %133 = vector.broadcast %112 : vector<1x16xf32> to vector<8x16xf32>
    %134 = arith.addf %132, %133 : vector<8x16xf32>
    %c0_26 = arith.constant 0 : index
    %c0_27 = arith.constant 0 : index
    %135 = vector.load %arg5[%c0_26, %c0_27] : memref<16x32xf32, #tpu.memory_space<vmem>>, vector<16x32xf32>
    %cst_28 = arith.constant dense<0.000000e+00> : vector<8x32xf32>
    %136 = tpu.matmul %134, %135, %cst_28 {dimension_numbers = #tpu.dot_dimension_numbers<[1], [0], [0], [1], [0, 0, 1, 1], [], []>} : vector<8x16xf32>, vector<16x32xf32>, vector<8x32xf32> -> vector<8x32xf32>
    %c0_29 = arith.constant 0 : index
    %c0_30 = arith.constant 0 : index
    %137 = vector.load %arg6[%c0_29, %c0_30] : memref<1x32xf32, #tpu.memory_space<vmem>>, vector<1x32xf32>
    %138 = vector.broadcast %137 : vector<1x32xf32> to vector<8x32xf32>
    %139 = arith.addf %136, %138 : vector<8x32xf32>
    %cst_31 = arith.constant 0.000000e+00 : f32
    %140 = vector.broadcast %cst_31 : f32 to vector<8x32xf32>
    %141 = arith.maximumf %139, %140 : vector<8x32xf32>
    %c0_32 = arith.constant 0 : index
    %c0_33 = arith.constant 0 : index
    %142 = vector.load %arg7[%c0_32, %c0_33] : memref<1x32xf32, #tpu.memory_space<vmem>>, vector<1x32xf32>
    %c0_34 = arith.constant 0 : index
    %c0_35 = arith.constant 0 : index
    %143 = vector.load %arg8[%c0_34, %c0_35] : memref<1x32xf32, #tpu.memory_space<vmem>>, vector<1x32xf32>
    %cst_36 = arith.constant dense<0.000000e+00> : vector<8xf32>
    %144 = vector.multi_reduction <add>, %141, %cst_36 [1] : vector<8x32xf32> to vector<8xf32>
    %145 = vector.shape_cast %144 : vector<8xf32> to vector<8x1xf32>
    %cst_37 = arith.constant 3.200000e+01 : f32
    %146 = vector.broadcast %cst_37 : f32 to vector<8x1xf32>
    %147 = arith.divf %145, %146 : vector<8x1xf32>
    %148 = vector.broadcast %147 : vector<8x1xf32> to vector<8x32xf32>
    %149 = arith.subf %141, %148 : vector<8x32xf32>
    %150 = arith.mulf %149, %149 : vector<8x32xf32>
    %cst_38 = arith.constant dense<0.000000e+00> : vector<8xf32>
    %151 = vector.multi_reduction <add>, %150, %cst_38 [1] : vector<8x32xf32> to vector<8xf32>
    %152 = vector.shape_cast %151 : vector<8xf32> to vector<8x1xf32>
    %cst_39 = arith.constant 3.200000e+01 : f32
    %153 = vector.broadcast %cst_39 : f32 to vector<8x1xf32>
    %154 = arith.divf %152, %153 : vector<8x1xf32>
    %155 = vector.broadcast %147 : vector<8x1xf32> to vector<8x32xf32>
    %156 = arith.subf %141, %155 : vector<8x32xf32>
    %cst_40 = arith.constant 9.99999974E-6 : f32
    %157 = vector.broadcast %cst_40 : f32 to vector<8x1xf32>
    %158 = arith.addf %154, %157 : vector<8x1xf32>
    %159 = math.rsqrt %158 : vector<8x1xf32>
    %160 = vector.broadcast %159 : vector<8x1xf32> to vector<8x32xf32>
    %161 = arith.mulf %156, %160 : vector<8x32xf32>
    %162 = vector.broadcast %142 : vector<1x32xf32> to vector<8x32xf32>
    %163 = arith.mulf %161, %162 : vector<8x32xf32>
    %164 = vector.broadcast %143 : vector<1x32xf32> to vector<8x32xf32>
    %165 = arith.addf %163, %164 : vector<8x32xf32>
    %cst_41 = arith.constant 0.000000e+00 : f32
    %166 = vector.broadcast %cst_41 : f32 to vector<8x32xf32>
    %167 = vector.broadcast %12 : f32 to vector<8x32xf32>
    %168 = arith.mulf %167, %165 : vector<8x32xf32>
    %169 = vector.broadcast %13 : f32 to vector<8x32xf32>
    %170 = arith.addf %168, %169 : vector<8x32xf32>
    %171 = vector.broadcast %14 : f32 to vector<8x32xf32>
    %172 = arith.mulf %171, %165 : vector<8x32xf32>
    %173 = vector.broadcast %15 : f32 to vector<8x32xf32>
    %174 = arith.addf %172, %173 : vector<8x32xf32>
    %175 = vector.broadcast %16 : f32 to vector<8x32xf32>
    %176 = arith.mulf %175, %165 : vector<8x32xf32>
    %177 = vector.broadcast %17 : f32 to vector<8x32xf32>
    %178 = arith.addf %176, %177 : vector<8x32xf32>
    %179 = vector.shape_cast %174 : vector<8x32xf32> to vector<8x1x32xf32>
    %180 = vector.shape_cast %170 : vector<8x32xf32> to vector<8x32x1xf32>
    %181 = vector.broadcast %179 : vector<8x1x32xf32> to vector<8x32x32xf32>
    %182 = vector.broadcast %180 : vector<8x32x1xf32> to vector<8x32x32xf32>
    %183 = arith.subf %181, %182 : vector<8x32x32xf32>
    %184 = math.absf %183 : vector<8x32x32xf32>
    %cst_42 = arith.constant 9.99999993E-9 : f32
    %185 = vector.broadcast %cst_42 : f32 to vector<8x32x32xf32>
    %186 = arith.addf %184, %185 : vector<8x32x32xf32>
    %cst_43 = arith.constant 1.000000e+00 : f32
    %187 = vector.broadcast %cst_43 : f32 to vector<8x32x32xf32>
    %188 = arith.divf %187, %186 : vector<8x32x32xf32>
    %cst_44 = arith.constant dense<0xFF800000> : vector<8x32xf32>
    %189 = vector.multi_reduction <maximumf>, %188, %cst_44 [2] : vector<8x32x32xf32> to vector<8x32xf32>
    %190 = vector.shape_cast %189 : vector<8x32xf32> to vector<8x32x1xf32>
    %191 = vector.broadcast %190 : vector<8x32x1xf32> to vector<8x32x32xf32>
    %192 = arith.subf %188, %191 : vector<8x32x32xf32>
    %193 = math.exp %192 : vector<8x32x32xf32>
    %194 = vector.shape_cast %178 : vector<8x32xf32> to vector<8x1x32xf32>
    %195 = vector.broadcast %194 : vector<8x1x32xf32> to vector<8x32x32xf32>
    %196 = arith.mulf %193, %195 : vector<8x32x32xf32>
    %cst_45 = arith.constant dense<0.000000e+00> : vector<8x32xf32>
    %197 = vector.multi_reduction <add>, %196, %cst_45 [2] : vector<8x32x32xf32> to vector<8x32xf32>
    %cst_46 = arith.constant dense<0.000000e+00> : vector<8x32xf32>
    %198 = vector.multi_reduction <add>, %193, %cst_46 [2] : vector<8x32x32xf32> to vector<8x32xf32>
    %199 = tpu.reciprocal %198 {approx = true} : vector<8x32xf32> -> vector<8x32xf32>
    %200 = arith.mulf %198, %199 : vector<8x32xf32>
    %cst_47 = arith.constant 2.000000e+00 : f32
    %201 = vector.broadcast %cst_47 : f32 to vector<8x32xf32>
    %202 = arith.subf %201, %200 : vector<8x32xf32>
    %203 = arith.mulf %199, %202 : vector<8x32xf32>
    %cst_48 = arith.constant 0.176776692 : f32
    %204 = vector.broadcast %cst_48 : f32 to vector<8x32xf32>
    %205 = arith.mulf %204, %203 : vector<8x32xf32>
    %206 = arith.mulf %197, %205 : vector<8x32xf32>
    %207 = arith.addf %166, %206 : vector<8x32xf32>
    %208 = vector.broadcast %18 : f32 to vector<8x32xf32>
    %209 = arith.mulf %208, %165 : vector<8x32xf32>
    %210 = vector.broadcast %19 : f32 to vector<8x32xf32>
    %211 = arith.addf %209, %210 : vector<8x32xf32>
    %212 = vector.broadcast %20 : f32 to vector<8x32xf32>
    %213 = arith.mulf %212, %165 : vector<8x32xf32>
    %214 = vector.broadcast %21 : f32 to vector<8x32xf32>
    %215 = arith.addf %213, %214 : vector<8x32xf32>
    %216 = vector.broadcast %22 : f32 to vector<8x32xf32>
    %217 = arith.mulf %216, %165 : vector<8x32xf32>
    %218 = vector.broadcast %23 : f32 to vector<8x32xf32>
    %219 = arith.addf %217, %218 : vector<8x32xf32>
    %220 = vector.shape_cast %215 : vector<8x32xf32> to vector<8x1x32xf32>
    %221 = vector.shape_cast %211 : vector<8x32xf32> to vector<8x32x1xf32>
    %222 = vector.broadcast %220 : vector<8x1x32xf32> to vector<8x32x32xf32>
    %223 = vector.broadcast %221 : vector<8x32x1xf32> to vector<8x32x32xf32>
    %224 = arith.subf %222, %223 : vector<8x32x32xf32>
    %225 = math.absf %224 : vector<8x32x32xf32>
    %cst_49 = arith.constant 9.99999993E-9 : f32
    %226 = vector.broadcast %cst_49 : f32 to vector<8x32x32xf32>
    %227 = arith.addf %225, %226 : vector<8x32x32xf32>
    %cst_50 = arith.constant 1.000000e+00 : f32
    %228 = vector.broadcast %cst_50 : f32 to vector<8x32x32xf32>
    %229 = arith.divf %228, %227 : vector<8x32x32xf32>
    %cst_51 = arith.constant dense<0xFF800000> : vector<8x32xf32>
    %230 = vector.multi_reduction <maximumf>, %229, %cst_51 [2] : vector<8x32x32xf32> to vector<8x32xf32>
    %231 = vector.shape_cast %230 : vector<8x32xf32> to vector<8x32x1xf32>
    %232 = vector.broadcast %231 : vector<8x32x1xf32> to vector<8x32x32xf32>
    %233 = arith.subf %229, %232 : vector<8x32x32xf32>
    %234 = math.exp %233 : vector<8x32x32xf32>
    %235 = vector.shape_cast %219 : vector<8x32xf32> to vector<8x1x32xf32>
    %236 = vector.broadcast %235 : vector<8x1x32xf32> to vector<8x32x32xf32>
    %237 = arith.mulf %234, %236 : vector<8x32x32xf32>
    %cst_52 = arith.constant dense<0.000000e+00> : vector<8x32xf32>
    %238 = vector.multi_reduction <add>, %237, %cst_52 [2] : vector<8x32x32xf32> to vector<8x32xf32>
    %cst_53 = arith.constant dense<0.000000e+00> : vector<8x32xf32>
    %239 = vector.multi_reduction <add>, %234, %cst_53 [2] : vector<8x32x32xf32> to vector<8x32xf32>
    %240 = tpu.reciprocal %239 {approx = true} : vector<8x32xf32> -> vector<8x32xf32>
    %241 = arith.mulf %239, %240 : vector<8x32xf32>
    %cst_54 = arith.constant 2.000000e+00 : f32
    %242 = vector.broadcast %cst_54 : f32 to vector<8x32xf32>
    %243 = arith.subf %242, %241 : vector<8x32xf32>
    %244 = arith.mulf %240, %243 : vector<8x32xf32>
    %cst_55 = arith.constant 0.176776692 : f32
    %245 = vector.broadcast %cst_55 : f32 to vector<8x32xf32>
    %246 = arith.mulf %245, %244 : vector<8x32xf32>
    %247 = arith.mulf %238, %246 : vector<8x32xf32>
    %248 = arith.addf %207, %247 : vector<8x32xf32>
    %249 = arith.addf %165, %248 : vector<8x32xf32>
    %cst_56 = arith.constant 0.000000e+00 : f32
    %250 = vector.broadcast %cst_56 : f32 to vector<8x32xf32>
    %251 = arith.maximumf %249, %250 : vector<8x32xf32>
    %c0_57 = arith.constant 0 : index
    %c0_58 = arith.constant 0 : index
    %252 = vector.load %arg9[%c0_57, %c0_58] : memref<1x32xf32, #tpu.memory_space<vmem>>, vector<1x32xf32>
    %c0_59 = arith.constant 0 : index
    %c0_60 = arith.constant 0 : index
    %253 = vector.load %arg10[%c0_59, %c0_60] : memref<1x32xf32, #tpu.memory_space<vmem>>, vector<1x32xf32>
    %cst_61 = arith.constant dense<0.000000e+00> : vector<8xf32>
    %254 = vector.multi_reduction <add>, %251, %cst_61 [1] : vector<8x32xf32> to vector<8xf32>
    %255 = vector.shape_cast %254 : vector<8xf32> to vector<8x1xf32>
    %cst_62 = arith.constant 3.200000e+01 : f32
    %256 = vector.broadcast %cst_62 : f32 to vector<8x1xf32>
    %257 = arith.divf %255, %256 : vector<8x1xf32>
    %258 = vector.broadcast %257 : vector<8x1xf32> to vector<8x32xf32>
    %259 = arith.subf %251, %258 : vector<8x32xf32>
    %260 = arith.mulf %259, %259 : vector<8x32xf32>
    %cst_63 = arith.constant dense<0.000000e+00> : vector<8xf32>
    %261 = vector.multi_reduction <add>, %260, %cst_63 [1] : vector<8x32xf32> to vector<8xf32>
    %262 = vector.shape_cast %261 : vector<8xf32> to vector<8x1xf32>
    %cst_64 = arith.constant 3.200000e+01 : f32
    %263 = vector.broadcast %cst_64 : f32 to vector<8x1xf32>
    %264 = arith.divf %262, %263 : vector<8x1xf32>
    %265 = vector.broadcast %257 : vector<8x1xf32> to vector<8x32xf32>
    %266 = arith.subf %251, %265 : vector<8x32xf32>
    %cst_65 = arith.constant 9.99999974E-6 : f32
    %267 = vector.broadcast %cst_65 : f32 to vector<8x1xf32>
    %268 = arith.addf %264, %267 : vector<8x1xf32>
    %269 = math.rsqrt %268 : vector<8x1xf32>
    %270 = vector.broadcast %269 : vector<8x1xf32> to vector<8x32xf32>
    %271 = arith.mulf %266, %270 : vector<8x32xf32>
    %272 = vector.broadcast %252 : vector<1x32xf32> to vector<8x32xf32>
    %273 = arith.mulf %271, %272 : vector<8x32xf32>
    %274 = vector.broadcast %253 : vector<1x32xf32> to vector<8x32xf32>
    %275 = arith.addf %273, %274 : vector<8x32xf32>
    %c0_66 = arith.constant 0 : index
    %c0_67 = arith.constant 0 : index
    %276 = vector.load %arg11[%c0_66, %c0_67] : memref<32x16xf32, #tpu.memory_space<vmem>>, vector<32x16xf32>
    %cst_68 = arith.constant dense<0.000000e+00> : vector<8x16xf32>
    %277 = tpu.matmul %275, %276, %cst_68 {dimension_numbers = #tpu.dot_dimension_numbers<[1], [0], [0], [1], [0, 0, 1, 1], [], []>} : vector<8x32xf32>, vector<32x16xf32>, vector<8x16xf32> -> vector<8x16xf32>
    %c0_69 = arith.constant 0 : index
    %c0_70 = arith.constant 0 : index
    %278 = vector.load %arg12[%c0_69, %c0_70] : memref<1x16xf32, #tpu.memory_space<vmem>>, vector<1x16xf32>
    %279 = vector.broadcast %278 : vector<1x16xf32> to vector<8x16xf32>
    %280 = arith.addf %277, %279 : vector<8x16xf32>
    %cst_71 = arith.constant 0.000000e+00 : f32
    %281 = vector.broadcast %cst_71 : f32 to vector<8x16xf32>
    %282 = arith.maximumf %280, %281 : vector<8x16xf32>
    %c0_72 = arith.constant 0 : index
    %c0_73 = arith.constant 0 : index
    %283 = vector.load %arg13[%c0_72, %c0_73] : memref<1x16xf32, #tpu.memory_space<vmem>>, vector<1x16xf32>
    %c0_74 = arith.constant 0 : index
    %c0_75 = arith.constant 0 : index
    %284 = vector.load %arg14[%c0_74, %c0_75] : memref<1x16xf32, #tpu.memory_space<vmem>>, vector<1x16xf32>
    %cst_76 = arith.constant dense<0.000000e+00> : vector<8xf32>
    %285 = vector.multi_reduction <add>, %282, %cst_76 [1] : vector<8x16xf32> to vector<8xf32>
    %286 = vector.shape_cast %285 : vector<8xf32> to vector<8x1xf32>
    %cst_77 = arith.constant 1.600000e+01 : f32
    %287 = vector.broadcast %cst_77 : f32 to vector<8x1xf32>
    %288 = arith.divf %286, %287 : vector<8x1xf32>
    %289 = vector.broadcast %288 : vector<8x1xf32> to vector<8x16xf32>
    %290 = arith.subf %282, %289 : vector<8x16xf32>
    %291 = arith.mulf %290, %290 : vector<8x16xf32>
    %cst_78 = arith.constant dense<0.000000e+00> : vector<8xf32>
    %292 = vector.multi_reduction <add>, %291, %cst_78 [1] : vector<8x16xf32> to vector<8xf32>
    %293 = vector.shape_cast %292 : vector<8xf32> to vector<8x1xf32>
    %cst_79 = arith.constant 1.600000e+01 : f32
    %294 = vector.broadcast %cst_79 : f32 to vector<8x1xf32>
    %295 = arith.divf %293, %294 : vector<8x1xf32>
    %296 = vector.broadcast %288 : vector<8x1xf32> to vector<8x16xf32>
    %297 = arith.subf %282, %296 : vector<8x16xf32>
    %cst_80 = arith.constant 9.99999974E-6 : f32
    %298 = vector.broadcast %cst_80 : f32 to vector<8x1xf32>
    %299 = arith.addf %295, %298 : vector<8x1xf32>
    %300 = math.rsqrt %299 : vector<8x1xf32>
    %301 = vector.broadcast %300 : vector<8x1xf32> to vector<8x16xf32>
    %302 = arith.mulf %297, %301 : vector<8x16xf32>
    %303 = vector.broadcast %283 : vector<1x16xf32> to vector<8x16xf32>
    %304 = arith.mulf %302, %303 : vector<8x16xf32>
    %305 = vector.broadcast %284 : vector<1x16xf32> to vector<8x16xf32>
    %306 = arith.addf %304, %305 : vector<8x16xf32>
    %c0_81 = arith.constant 0 : index
    %c0_82 = arith.constant 0 : index
    %307 = vector.load %arg15[%c0_81, %c0_82] : memref<16x128xf32, #tpu.memory_space<vmem>>, vector<16x128xf32>
    %cst_83 = arith.constant dense<0.000000e+00> : vector<8x128xf32>
    %308 = tpu.matmul %306, %307, %cst_83 {dimension_numbers = #tpu.dot_dimension_numbers<[1], [0], [0], [1], [0, 0, 1, 1], [], []>} : vector<8x16xf32>, vector<16x128xf32>, vector<8x128xf32> -> vector<8x128xf32>
    %c0_84 = arith.constant 0 : index
    %c0_85 = arith.constant 0 : index
    %309 = vector.load %arg16[%c0_84, %c0_85] : memref<1x128xf32, #tpu.memory_space<vmem>>, vector<1x128xf32>
    %310 = vector.broadcast %309 : vector<1x128xf32> to vector<8x128xf32>
    %311 = arith.addf %308, %310 : vector<8x128xf32>
    %c0_86 = arith.constant 0 : index
    %c0_87 = arith.constant 0 : index
    %312 = vector.load %arg17[%c0_86, %c0_87] : memref<8x128xf32, #tpu.memory_space<vmem>>, vector<8x128xf32>
    tpu.vector_store %arg17[%c0_86, %c0_87], %311 {strides = array<i32>} : memref<8x128xf32, #tpu.memory_space<vmem>>, vector<8x128xf32>,
    return
  }
  func.func @transform_0(%arg0: i32, %arg1: memref<24xf32, #tpu.memory_space<smem>>) -> (i32, i32) {
    %c0_i32 = arith.constant 0 : i32
    %c0_i32_0 = arith.constant 0 : i32
    return %arg0, %c0_i32 : i32, i32
  }
  func.func @transform_1(%arg0: i32, %arg1: memref<24xf32, #tpu.memory_space<smem>>) -> (i32, i32) {
    %c0_i32 = arith.constant 0 : i32
    %c0_i32_0 = arith.constant 0 : i32
    %c0_i32_1 = arith.constant 0 : i32
    return %c0_i32, %c0_i32_0 : i32, i32
  }
  func.func @transform_2(%arg0: i32, %arg1: memref<24xf32, #tpu.memory_space<smem>>) -> (i32, i32) {
    %c0_i32 = arith.constant 0 : i32
    %c0_i32_0 = arith.constant 0 : i32
    %c0_i32_1 = arith.constant 0 : i32
    return %c0_i32, %c0_i32_0 : i32, i32
  }
  func.func @transform_3(%arg0: i32, %arg1: memref<24xf32, #tpu.memory_space<smem>>) -> (i32, i32) {
    %c0_i32 = arith.constant 0 : i32
    %c0_i32_0 = arith.constant 0 : i32
    %c0_i32_1 = arith.constant 0 : i32
    return %c0_i32, %c0_i32_0 : i32, i32
  }
  func.func @transform_4(%arg0: i32, %arg1: memref<24xf32, #tpu.memory_space<smem>>) -> (i32, i32) {
    %c0_i32 = arith.constant 0 : i32
    %c0_i32_0 = arith.constant 0 : i32
    %c0_i32_1 = arith.constant 0 : i32
    return %c0_i32, %c0_i32_0 : i32, i32
  }
  func.func @transform_5(%arg0: i32, %arg1: memref<24xf32, #tpu.memory_space<smem>>) -> (i32, i32) {
    %c0_i32 = arith.constant 0 : i32
    %c0_i32_0 = arith.constant 0 : i32
    %c0_i32_1 = arith.constant 0 : i32
    return %c0_i32, %c0_i32_0 : i32, i32
  }
  func.func @transform_6(%arg0: i32, %arg1: memref<24xf32, #tpu.memory_space<smem>>) -> (i32, i32) {
    %c0_i32 = arith.constant 0 : i32
    %c0_i32_0 = arith.constant 0 : i32
    %c0_i32_1 = arith.constant 0 : i32
    return %c0_i32, %c0_i32_0 : i32, i32
  }
  func.func @transform_7(%arg0: i32, %arg1: memref<24xf32, #tpu.memory_space<smem>>) -> (i32, i32) {
    %c0_i32 = arith.constant 0 : i32
    %c0_i32_0 = arith.constant 0 : i32
    %c0_i32_1 = arith.constant 0 : i32
    return %c0_i32, %c0_i32_0 : i32, i32
  }
  func.func @transform_8(%arg0: i32, %arg1: memref<24xf32, #tpu.memory_space<smem>>) -> (i32, i32) {
    %c0_i32 = arith.constant 0 : i32
    %c0_i32_0 = arith.constant 0 : i32
    %c0_i32_1 = arith.constant 0 : i32
    return %c0_i32, %c0_i32_0 : i32, i32
  }
  func.func @transform_9(%arg0: i32, %arg1: memref<24xf32, #tpu.memory_space<smem>>) -> (i32, i32) {
    %c0_i32 = arith.constant 0 : i32
    %c0_i32_0 = arith.constant 0 : i32
    %c0_i32_1 = arith.constant 0 : i32
    return %c0_i32, %c0_i32_0 : i32, i32
  }
  func.func @transform_10(%arg0: i32, %arg1: memref<24xf32, #tpu.memory_space<smem>>) -> (i32, i32) {
    %c0_i32 = arith.constant 0 : i32
    %c0_i32_0 = arith.constant 0 : i32
    %c0_i32_1 = arith.constant 0 : i32
    return %c0_i32, %c0_i32_0 : i32, i32
  }
  func.func @transform_11(%arg0: i32, %arg1: memref<24xf32, #tpu.memory_space<smem>>) -> (i32, i32) {
    %c0_i32 = arith.constant 0 : i32
    %c0_i32_0 = arith.constant 0 : i32
    %c0_i32_1 = arith.constant 0 : i32
    return %c0_i32, %c0_i32_0 : i32, i32
  }
  func.func @transform_12(%arg0: i32, %arg1: memref<24xf32, #tpu.memory_space<smem>>) -> (i32, i32) {
    %c0_i32 = arith.constant 0 : i32
    %c0_i32_0 = arith.constant 0 : i32
    %c0_i32_1 = arith.constant 0 : i32
    return %c0_i32, %c0_i32_0 : i32, i32
  }
  func.func @transform_13(%arg0: i32, %arg1: memref<24xf32, #tpu.memory_space<smem>>) -> (i32, i32) {
    %c0_i32 = arith.constant 0 : i32
    %c0_i32_0 = arith.constant 0 : i32
    %c0_i32_1 = arith.constant 0 : i32
    return %c0_i32, %c0_i32_0 : i32, i32
  }
  func.func @transform_14(%arg0: i32, %arg1: memref<24xf32, #tpu.memory_space<smem>>) -> (i32, i32) {
    %c0_i32 = arith.constant 0 : i32
    %c0_i32_0 = arith.constant 0 : i32
    %c0_i32_1 = arith.constant 0 : i32
    return %c0_i32, %c0_i32_0 : i32, i32
  }
  func.func @transform_15(%arg0: i32, %arg1: memref<24xf32, #tpu.memory_space<smem>>) -> (i32, i32) {
    %c0_i32 = arith.constant 0 : i32
    %c0_i32_0 = arith.constant 0 : i32
    return %arg0, %c0_i32 : i32, i32
  }
}

</mosaic_0001>

<bundles_post_ra>
// kernel: tpu_custom_call.1
= control target key start
LH: loop header
LB: loop body
LE: loop exit
PB: predicated region body
PF: predicated region fallthrough
CT: control target
= control target key end

     0   :  { %s6019_s21 = smov [#allocation3]   ;;  %s8796_s0 = inlined_call_operand.hbm [shape: f32[24], index: 0, kind: input, shape index: {}]   ;;  %s8797_s1 = inlined_call_operand.vmem [shape: f32[16,16], index: 1, kind: input, shape index: {}]   ;;  %s8798_s2 = inlined_call_operand.vmem [shape: f32[1,16], index: 2, kind: input, shape index: {}]   ;;  %s8799_s3 = inlined_call_operand.vmem [shape: f32[1,16], index: 3, kind: input, shape index: {}]   ;;  %s8800_s4 = inlined_call_operand.vmem [shape: f32[16,32], index: 4, kind: input, shape index: {}]   ;;  %s8801_s5 = inlined_call_operand.hbm [shape: f32[1,32], index: 5, kind: input, shape index: {}]   ;;  %s8802_s6 = inlined_call_operand.hbm [shape: f32[1,32], index: 6, kind: input, shape index: {}]   ;;  %s8803_s7 = inlined_call_operand.hbm [shape: f32[1,32], index: 7, kind: input, shape index: {}]   ;;  %s8804_s8 = inlined_call_operand.hbm [shape: f32[1,32], index: 8, kind: input, shape index: {}]   ;;  %s8805_s9 = inlined_call_operand.hbm [shape: f32[1,32], index: 9, kind: input, shape index: {}]   ;;  %s8806_s10 = inlined_call_operand.vmem [shape: f32[32,16], index: 10, kind: input, shape index: {}]   ;;  %s8807_s11 = inlined_call_operand.vmem [shape: f32[1,16], index: 11, kind: input, shape index: {}]   ;;  %s8808_s12 = inlined_call_operand.vmem [shape: f32[1,16], index: 12, kind: input, shape index: {}]   ;;  %s8809_s13 = inlined_call_operand.vmem [shape: f32[1,16], index: 13, kind: input, shape index: {}]   ;;  %s8810_s14 = inlined_call_operand.vmem [shape: f32[16,128], index: 14, kind: input, shape index: {}]   ;;  %s8811_s15 = inlined_call_operand.vmem [shape: f32[1,128], index: 15, kind: input, shape index: {}]   ;;  %s8812_s16 = inlined_call_operand.hbm [shape: f32[16,128], index: 16, kind: output, shape index: {}]  }
   0x1   :  { %8916 = sst [smem:[#allocation57_spill]] %s8796_s0 }
   0x2   :  { %8917 = sst [smem:[#allocation58_spill]] %s8802_s6 }
   0x3   :  { %8918 = sst [smem:[#allocation59_spill]] %s8806_s10 }
   0x4   :  { %s8919_s10 = sld [smem:[#allocation57_spill]] }
   0xa   :  { %22 = dma.hbm_to_smem %s8919_s10, 16, %s6019_s21, [#allocation2] }
   0xb   :  { %5985 = dma.done.wait [#allocation2], 16 }
   0xc   :  { %5986 = vsyncadd [#allocation2], 4294967280 }
   0xd   :  { %24 = sfence }
   0xe   :  { %25 = vsyncpa [#allocation5], 0 }
   0xf   :  { %26 = vsyncpa [#allocation8], 0 }
  0x10   :  { %27 = vsyncpa [#allocation11], 0 }
  0x11   :  { %28 = vsyncpa [#allocation6], 0 }
  0x12   :  { %30 = vsyncpa [#allocation6 + $0x1], 0  ;;  %s6117_s24 = smov 0   ;;  %s6119_s25 = smov 0  }
  0x13   :  { %s6121_s26 = smov 0   ;;  %s6123_s27 = smov 0  }
  0x14 LB: > { %8920 = sst [smem:[#allocation19_spill]] %s6005_s24  ;;  %s6138_s10 = sadd.s32 4294967295, %s6017_s27   ;;  %s6017_s27 = sphi %s6123_s27, %s9124_s27   ;;  %s6013_s26 = sphi %s6121_s26, %s9126_s26   ;;  %s6009_s25 = sphi %s6119_s25, %s9128_s25   ;;  %s6005_s24 = sphi %s6117_s24, %s9127_s24  }
  0x15   : > { %8921 = sst [smem:[#allocation20_spill]] %s6013_s26  ;;  %s5032_s28 = sadd.s32 4294967294, %s6017_s27  }
  0x16   : > { %s6142_s29 = sadd.s32 1, %s6017_s27   ;;  %s363_s30 = sadd.s32 1, %s6013_s26 }
  0x17   : > { %8922 = sst [smem:[#allocation21_spill]] %s6142_s29  ;;  %s360_s0 = ssub.s32 %s6017_s27, %s6142_s29 }
  0x18   : > { %p373_p0 = scmp.ne.s32.totalorder %s6013_s26, %s6009_s25  ;;  %p361_p1 = scmp.eq.s32.totalorder %s360_s0, 0 }
  0x19   : > { %p374_p2 = scmp.eq.s32.totalorder %s6138_s10, 1  ;;  %p379_p3 = scmp.ne.s32.totalorder %s6009_s25, %s6005_s24 }
  0x1a   : > { %p380_p4 = scmp.eq.s32.totalorder %s5032_s28, 1  ;;  %p5033_p7 = scmp.ge.s32.totalorder %s6017_s27, 1 }
  0x1b   : > { %s6153_s17 = scalar_select %p361_p1, %s6013_s26, %s363_s30  }
  0x1c   : > { %p6155_p5 = por %p374_p2, %p373_p0  ;;  %p6159_p6 = por %p380_p4, %p379_p3 }
  0x1d   : > { %8923 = sst [smem:[#allocation22_spill]] %s6153_s17  ;;  %p387_p8 = scmp.lt.s32.totalorder %s6017_s27, 3 }
  0x1e   : > { %s8924_s18 = scalar_select %p6155_p5, 1, 0 }
  0x1f   : > { %s8925_s19 = scalar_select %p6159_p6, 1, 0 }
  0x20   : > { %p8818_p9 = scmp.eq.s32.totalorder %s6138_s10, 0  ;;  %p6166_p10 = pnand %p5033_p7, %p387_p8 }
  0x21   : > { %8926 = sst [smem:[#allocation23_spill]] %s8925_s19  ;;  %s6020_s21 = smov [#allocation7]  }
  0x22   : > { %s8927_s20 = scalar_select %p6166_p10, 1, 0 }
  0x23   : > { %s420_s22 = sshll.u32 %s6020_s21, 4  ;;  %p5147_p11 = pneg %p6166_p10  ;;  %s421_s22 = int_to_ptr.vmem [resolvable:$true] %s420_s22 }
  0x24   : > { %s6021_s23 = smov [#allocation10]   ;;  %s6022_s0 = smov [#allocation4]  }
  0x25   : > { %s442_s28 = sshll.u32 %s6021_s23, 4  ;;  %p6174_p12 = pnand %p8818_p9, %p5147_p11  ;;  %s443_s28 = int_to_ptr.vmem [resolvable:$true] %s442_s28 }
  0x26   : > { %s409_s17 = sshll.u32 %s6022_s0, 4  ;;  %s5824_s21 = scalar_lea.vmem %s421_s22, 16  ;;  %s6178_s17 = int_to_ptr.vmem [resolvable:$true] %s409_s17 }
  0x27   : > { %p6182_p13 = pneg %p6174_p12  ;;  %p5825_p0 = scmp.ne.s32.totalorder %s421_s22, %s5824_s21 }
  0x28   : > { %s5831_s23 = scalar_lea.vmem %s421_s22, 32  ;;  %p5832_p3 = scmp.lt.s32.totalorder %s421_s22, %s421_s22 }
  0x29   : > { %p5827_p1 = pnand %p5825_p0, %p6182_p13  ;;  %p5833_p4 = scmp.lt.s32.totalorder %s5831_s23, %s5824_s21 }
  0x2b   : > { %p5828_p2 = pneg %p5827_p1  ;;  %p5834_p7 = por %p5833_p4, %p5832_p3 }
  0x2d   : > { %p5835_p8 = pnand %p5834_p7, %p5828_p2 }
  0x2f   : > { %5838 = shalt.err (!%p5835_p8)
}
  0x30   : > { %s8930_s6 = sld [smem:[#allocation58_spill]]  ;;  %s5850_s19 = scalar_lea.vmem %s443_s28, 16 }
  0x31   : > { %p5851_p11 = scmp.ne.s32.totalorder %s443_s28, %s5850_s19  ;;  %s5857_s24 = scalar_lea.vmem %s443_s28, 32 }
  0x32   : > { %p5858_p0 = scmp.lt.s32.totalorder %s443_s28, %s443_s28  ;;  %p5859_p1 = scmp.lt.s32.totalorder %s5857_s24, %s5850_s19 }
  0x33   : > { %p5853_p9 = pnand %p5851_p11, %p6182_p13 }
  0x34   : > { %p5860_p5 = por %p5859_p1, %p5858_p0 }
  0x35   : > { %p5854_p6 = pneg %p5853_p9 }
  0x36   : > { %5153 = dma.hbm_to_vmem [thread:$0]  (!%p6174_p12), %s8930_s6, 16, %s421_s22, [#allocation8]  }
  0x37   : > { %p5861_p10 = pnand %p5860_p5, %p5854_p6 }
  0x39   : > { %5864 = shalt.err (!%p5861_p10)
}
  0x3a   : > { %5159 = dma.hbm_to_vmem [thread:$0]  (!%p6174_p12), %s8804_s8, 16, %s443_s28, [#allocation11]  }
  0x3b   : > { %s5876_s29 = scalar_lea.vmem %s6178_s17, 16  ;;  %s5883_s24 = scalar_lea.vmem %s6178_s17, 32 }
  0x3c   : > { %p5877_p2 = scmp.ne.s32.totalorder %s6178_s17, %s5876_s29  ;;  %p5884_p5 = scmp.lt.s32.totalorder %s6178_s17, %s6178_s17 }
  0x3d   : > { %p5885_p6 = scmp.lt.s32.totalorder %s5883_s24, %s5876_s29 }
  0x3e   : > { %p5879_p9 = pnand %p5877_p2, %p6182_p13 }
  0x3f   : > { %p5886_p10 = por %p5885_p6, %p5884_p5 }
  0x40   : > { %p5880_p3 = pneg %p5879_p9 }
  0x42   : > { %p5887_p4 = pnand %p5886_p10, %p5880_p3 }
  0x44   : > { %5890 = shalt.err (!%p5887_p4)
}
  0x45   : > { %5150 = dma.hbm_to_vmem [thread:$0]  (!%p6174_p12), %s8801_s5, 16, %s6178_s17, [#allocation5]  }
  0x46   : > { %s6023_s28 = smov [#allocation9]   ;;  %s6024_s21 = smov [#allocation12]  }
  0x47   : > { %s431_s0 = sshll.u32 %s6023_s28, 4  ;;  %s453_s23 = sshll.u32 %s6024_s21, 4  ;;  %s432_s0 = int_to_ptr.vmem [resolvable:$true] %s431_s0  ;;  %s454_s23 = int_to_ptr.vmem [resolvable:$true] %s453_s23 }
  0x48   : > { %s5902_s6 = scalar_lea.vmem %s432_s0, 16  ;;  %s5909_s29 = scalar_lea.vmem %s432_s0, 32 }
  0x49   : > { %p5903_p7 = scmp.ne.s32.totalorder %s432_s0, %s5902_s6  ;;  %p5910_p0 = scmp.lt.s32.totalorder %s432_s0, %s432_s0 }
  0x4a   : > { %p5911_p1 = scmp.lt.s32.totalorder %s5909_s29, %s5902_s6 }
  0x4b   : > { %p5905_p8 = pnand %p5903_p7, %p6182_p13 }
  0x4c   : > { %p5912_p2 = por %p5911_p1, %p5910_p0 }
  0x4d   : > { %p5906_p11 = pneg %p5905_p8 }
  0x4f   : > { %p5913_p9 = pnand %p5912_p2, %p5906_p11 }
  0x51   : > { %5916 = shalt.err (!%p5913_p9)
}
  0x52   : > { %5156 = dma.hbm_to_vmem [thread:$0]  (!%p6174_p12), %s8803_s7, 16, %s432_s0, [#allocation8]  }
  0x53   : > { %s5928_s19 = scalar_lea.vmem %s454_s23, 16  ;;  %s5935_s22 = scalar_lea.vmem %s454_s23, 32 }
  0x54   : > { %p5929_p3 = scmp.ne.s32.totalorder %s454_s23, %s5928_s19  ;;  %p5936_p10 = scmp.lt.s32.totalorder %s454_s23, %s454_s23 }
  0x55   : > { %p5937_p4 = scmp.lt.s32.totalorder %s5935_s22, %s5928_s19 }
  0x56   : > { %p5931_p5 = pnand %p5929_p3, %p6182_p13 }
  0x57   : > { %p5938_p7 = por %p5937_p4, %p5936_p10 }
  0x58   : > { %p5932_p6 = pneg %p5931_p5 }
  0x5a   : > { %p5939_p8 = pnand %p5938_p7, %p5932_p6 }
  0x5c   : > { %5942 = shalt.err (!%p5939_p8)
}
  0x5d   : > { %5162 = dma.hbm_to_vmem [thread:$0]  (!%p6174_p12), %s8805_s9, 16, %s454_s23, [#allocation11]  }
  0x5e   : > { %p8931_p11 = scmp.ne.s32.totalorder %s8927_s20, 0 }
  0x60   : > { %491 = sbr.rel (%p8931_p11) target bundleno = 3258 (0xcba), region = 80 }
  0x65   : > { %p8932_p0 = scmp.eq.s32.totalorder %s6138_s10, 0 }
  0x67   : > { %5988 = dma.done.wait (%p8932_p0), [#allocation5], 16   ;;  %p8933_p13 = pmov %p8932_p0 }
  0x68   : > { %p8934_p1 = pmov %p8932_p0 }
  0x69   : > { %5990 = vsyncadd (%p8933_p13), [#allocation5], 4294967280 }
  0x6a   : > { %5992 = dma.done.wait (%p8934_p1), [#allocation8], 32   ;;  %p8935_p2 = pmov %p8932_p0 }
  0x6b   : > { %p8936_p9 = pmov %p8932_p0 }
  0x6c   : > { %5994 = vsyncadd (%p8935_p2), [#allocation8], 4294967264 }
  0x6d   : > { %5996 = dma.done.wait (%p8936_p9), [#allocation11], 32   ;;  %p8937_p12 = pmov %p8932_p0 }
  0x6e   : > { %p554_p3 = scmp.lt.s32.totalorder %s6138_s10, 1  ;;  %v600_v0 = vlaneseq  ;;  %s558_s26 = sld [smem:[#allocation3]]  ;;  %v6025_v35 = vmov 1966171168   ;;  %vm853_vm0 = vcmask 130048   ;;  %vm1971_vm1 = vcmask 130112  }
  0x6f   : > { %5998 = vsyncadd (%p8937_p12), [#allocation11], 4294967264  ;;  %s5048_s30 = sld [smem:[#allocation3 + $0x1]]  ;;  %v598_v36 = vunpack.c.l.s4 %v6025_v35  ;;  %vm2036_vm2 = vcmask 1041409   ;;  %vm2038_vm3 = vcmask 1042434   ;;  %vm2040_vm4 = vcmask 1043459  }
  0x70   : > { %s555_s20 = scalar_select %p554_p3, %s6138_s10, 1  ;;  %v6244_v1 = vshrl.u32 %v600_v0, 7  ;;  %vm2042_vm5 = vcmask 1044484   ;;  %vm2044_vm6 = vcmask 1045509   ;;  %vm2046_vm7 = vcmask 1046534  }
  0x71   : > { %s5053_s21 = sld [smem:[#allocation3 + $0x6]]  ;;  %v599_v39 = vunpack.c.0.s8 %v598_v36  ;;  %vm2048_vm8 = vcmask 1047559   ;;  %vm6027_vm9 = vmmov 0   ;;  %vm2168_vm10 = vcmask 261120   ;;  %p9120_p6 = scmp.ne.s32.totalorder %s8924_s18, 0 }
  0x72   : > { %s5047_s0 = sshll.u32 %s555_s20, 3  ;;  %8938 = vst [vmem:[#allocation24_spill] sm:$0xff] %v6244_v1  ;;  %s5054_s17 = sld [smem:[#allocation3 + $0x7]]  ;;  %v6256_v5 = vsub.s32 0, %v6244_v1  ;;  %v6259_v6 = vsub.s32 1, %v6244_v1  ;;  %v6267_v17 = vsub.s32 2, %v6244_v1 }
  0x73   : > { %s6249_s24 = scalar_lea.vmem %s8797_s1, %s5047_s0  ;;  %v6272_v20 = vsub.s32 3, %v6244_v1  ;;  %v6277_v23 = vsub.s32 4, %v6244_v1  ;;  %v6282_v26 = vsub.s32 5, %v6244_v1  ;;  %v6287_v29 = vsub.s32 6, %v6244_v1  ;;  %s5049_s19 = sld [smem:[#allocation3 + $0x2]] }
  0x74   : > { %v6252_v2 = vld [vmem:[%s6249_s24] sm:$0xff]  ;;  %v583_v3 = vstv %s558_s26  ;;  %8939 = vst [vmem:[#allocation25_spill] sm:$0xff] %v6256_v5  ;;  %8940 = vst [vmem:[#allocation26_spill] sm:$0xff] %v6259_v6  ;;  %v6292_v32 = vsub.s32 7, %v6244_v1  ;;  %s5050_s22 = sld [smem:[#allocation3 + $0x3]]  ;;  %v6300_v42 = vsub.s32 %v599_v39, %v6244_v1  ;;  %vm4531_vm11 = vcmask 195712  }
  0x75   : > { %v584_v4 = vmul.f32 %v583_v3, %v6252_v2  ;;  %v585_v7 = vstv %s5048_s30  ;;  %8941 = vst [vmem:[#allocation27_spill] sm:$0xff] %v6267_v17  ;;  %8942 = vst [vmem:[#allocation28_spill] sm:$0xff] %v6272_v20  ;;  %s5055_s6 = sld [smem:[#allocation3 + $0x8]]  ;;  %vm4538_vm12 = vcmask 261312  }
  0x76   : > { %8943 = vst [vmem:[#allocation29_spill] sm:$0xff] %v6277_v23  ;;  %8944 = vst [vmem:[#allocation30_spill] sm:$0xff] %v6282_v26  ;;  %s5056_s28 = sld [smem:[#allocation3 + $0x9]] }
  0x77   : > { %v586_v8 = vadd.f32 %v585_v7, %v584_v4  ;;  %v1264_v9 = vstv %s5053_s21  ;;  %8945 = vst [vmem:[#allocation31_spill] sm:$0xff] %v6287_v29  ;;  %8946 = vst [vmem:[#allocation32_spill] sm:$0xff] %v6292_v32  ;;  %s6587_s26 = sld [smem:[#allocation3 + $0x4]] }
  0x78   : > { %v1265_v10 = vmul.f32 %v1264_v9, %v6252_v2  ;;  %v1266_v11 = vstv %s5054_s17  ;;  %8947 = vst [vmem:[#allocation33_spill] sm:$0xff] %v6300_v42  ;;  %s6599_s20 = sld [smem:[#allocation3 + $0x5]] }
  0x79   : > { %v648_v12 = vrot.slane %v586_v8, %v6256_v5  ;;  %v659_v13 = vrot.slane %v586_v8, %v6259_v6  ;;  %v670_v18 = vrot.slane %v586_v8, %v6267_v17  ;;  %v681_v21 = vrot.slane %v586_v8, %v6272_v20  ;;  %s6612_s30 = sld [smem:[#allocation3 + $0xa]] }
  0x7a   : > { %v1267_v14 = vadd.f32 %v1266_v11, %v1265_v10  ;;  %v692_v24 = vrot.slane %v586_v8, %v6277_v23  ;;  %v703_v27 = vrot.slane %v586_v8, %v6282_v26  ;;  %v714_v30 = vrot.slane %v586_v8, %v6287_v29  ;;  %s6626_s0 = sld [smem:[#allocation3 + $0xb]] }
  0x7b   : > { %650 = vbcast.lane.b32.xlu0 %v648_v12, 256  ;;  %661 = vbcast.lane.b32.xlu1 %v659_v13, 256  ;;  %v725_v33 = vrot.slane %v586_v8, %v6292_v32  ;;  %v587_v37 = vstv %s5049_s19  ;;  %v589_v40 = vstv %s5050_s22  ;;  %v1268_v43 = vstv %s5055_s6  ;;  %s5062_s21 = sld [smem:[#allocation3 + $0xf]] }
  0x7c   : > { %v1329_v15 = vrot.slane %v1267_v14, %v6256_v5  ;;  %v1340_v16 = vrot.slane %v1267_v14, %v6259_v6  ;;  %v1351_v19 = vrot.slane %v1267_v14, %v6267_v17  ;;  %v1362_v22 = vrot.slane %v1267_v14, %v6272_v20  ;;  %s5067_s23 = sld [smem:[#allocation3 + $0x14]] }
  0x7d   : > { %v1373_v25 = vrot.slane %v1267_v14, %v6277_v23  ;;  %v1384_v28 = vrot.slane %v1267_v14, %v6282_v26  ;;  %v1395_v31 = vrot.slane %v1267_v14, %v6287_v29  ;;  %v1406_v34 = vrot.slane %v1267_v14, %v6292_v32  ;;  %s5068_s29 = sld [smem:[#allocation3 + $0x15]] }
  0x7e   : > { %v588_v38 = vmul.f32 %v587_v37, %v6252_v2  ;;  %v1269_v45 = vmul.f32 %v1268_v43, %v6252_v2  ;;  %v1270_v47 = vstv %s5056_s28  ;;  %s5059_s28 = sld [smem:[#allocation3 + $0xc]] }
  0x7f   : > { %654 = vbcast.lane.b32.xlu0 %v648_v12, 264  ;;  %665 = vbcast.lane.b32.xlu1 %v659_v13, 264  ;;  %s7972_s17 = sld [smem:[#allocation3 + $0x11]] }
  0x80   : > { %v6297_v41 = vadd.f32 %v589_v40, %v588_v38  ;;  %v6305_v48 = vadd.f32 %v1270_v47, %v1269_v45  ;;  %s7985_s19 = sld [smem:[#allocation3 + $0x16]] }
  0x81   : > { %s5070_s22 = sld [smem:[#allocation3 + $0x17]] }
  0x82   : > { %v603_v44 = vrot.slane %v6297_v41, %v6300_v42  ;;  %v1284_v51 = vrot.slane %v6305_v48, %v6300_v42 }
  0x83   : > { %1331 = vbcast.lane.b32.xlu0 %v1329_v15, 256  ;;  %1335 = vbcast.lane.b32.xlu1 %v1329_v15, 264 }
  0x84   : > { %v611_v46 = vcombine.high %v603_v44, %v603_v44  ;;  %v619_v49 = vrot.slane %v603_v44, %v6300_v42  ;;  %v1300_v56 = vrot.slane %v1284_v51, %v6300_v42  ;;  %v1292_v57 = vcombine.high %v1284_v51, %v1284_v51 }
  0x85   : > { %v596_v44 = vcombine.high %v6297_v41, %v6297_v41  ;;  %v1277_v51 = vcombine.high %v6305_v48, %v6305_v48 }
  0x86   : > { %v6309_v50 = vrot.slane %v611_v46, %v6300_v42  ;;  %v736_v52 = vrot.slane %v619_v49, %v6256_v5  ;;  %v1417_v2 = vrot.slane %v1300_v56, %v6256_v5  ;;  %v6319_v3 = vrot.slane %v1292_v57, %v6300_v42 }
  0x87   : > { %1342 = vbcast.lane.b32.xlu0 %v1340_v16, 256  ;;  %1346 = vbcast.lane.b32.xlu1 %v1340_v16, 264  ;;  %v641_v15 = vcombine.high %v619_v49, %v619_v49  ;;  %v610_v57 = vrot.slane %v596_v44, %v6300_v42 }
  0x88   : > { %v740_v53 = vrot.slane %v6309_v50, %v6256_v5  ;;  %v1421_v14 = vrot.slane %v6319_v3, %v6256_v5  ;;  %v643_v43 = vcombine.high %v6309_v50, %v6309_v50  ;;  %v1324_v41 = vcombine.high %v6319_v3, %v6319_v3 }
  0x8a   : > { %v748_v50 = vrot.slane %v643_v43, %v6256_v5 }
  0x8b   : > { %672 = vbcast.lane.b32.xlu0 %v670_v18, 256  ;;  %676 = vbcast.lane.b32.xlu1 %v670_v18, 264 }
  0x8f   : > { %1353 = vbcast.lane.b32.xlu0 %v1351_v19, 256  ;;  %1357 = vbcast.lane.b32.xlu1 %v1351_v19, 264 }
  0x93   : > { %683 = vbcast.lane.b32.xlu0 %v681_v21, 256  ;;  %687 = vbcast.lane.b32.xlu1 %v681_v21, 264 }
  0x97   : > { %1364 = vbcast.lane.b32.xlu0 %v1362_v22, 256  ;;  %1368 = vbcast.lane.b32.xlu1 %v1362_v22, 264 }
  0x9b   : > { %694 = vbcast.lane.b32.xlu0 %v692_v24, 256  ;;  %698 = vbcast.lane.b32.xlu1 %v692_v24, 264 }
  0x9f   : > { %1375 = vbcast.lane.b32.xlu0 %v1373_v25, 256  ;;  %1379 = vbcast.lane.b32.xlu1 %v1373_v25, 264 }
  0xa3   : > { %705 = vbcast.lane.b32.xlu0 %v703_v27, 256  ;;  %709 = vbcast.lane.b32.xlu1 %v703_v27, 264 }
  0xa7   : > { %1386 = vbcast.lane.b32.xlu0 %v1384_v28, 256  ;;  %1390 = vbcast.lane.b32.xlu1 %v1384_v28, 264  ;;  %v744_v28 = vrot.slane %v641_v15, %v6256_v5 }
  0xab   : > { %716 = vbcast.lane.b32.xlu0 %v714_v30, 256  ;;  %720 = vbcast.lane.b32.xlu1 %v714_v30, 264  ;;  %v1322_v30 = vcombine.high %v1300_v56, %v1300_v56 }
  0xad   : > { %v1425_v40 = vrot.slane %v1322_v30, %v6256_v5 }
  0xaf   : > { %1397 = vbcast.lane.b32.xlu0 %v1395_v31, 256  ;;  %1401 = vbcast.lane.b32.xlu1 %v1395_v31, 264 }
  0xb3   : > { %727 = vbcast.lane.b32.xlu0 %v725_v33, 256  ;;  %731 = vbcast.lane.b32.xlu1 %v725_v33, 264 }
  0xb7   : > { %1408 = vbcast.lane.b32.xlu0 %v1406_v34, 256  ;;  %1412 = vbcast.lane.b32.xlu1 %v1406_v34, 264 }
  0xed   : > { %v651_v54 = vpop.permute.xlu0 %650  ;;  %v662_v55 = vpop.permute.xlu1 %661 }
  0xee   : > { %v773_v58 = vsub.f32 %v736_v52, %v651_v54  ;;  %v775_v59 = vsub.f32 %v740_v53, %v662_v55 }
  0xf0   : > { %v789_v60 = vand.u32 2147483647, %v773_v58  ;;  %v791_v61 = vand.u32 2147483647, %v775_v59 }
  0xf1   : > { %v655_v62 = vpop.permute.xlu0 %654  ;;  %v666_v63 = vpop.permute.xlu1 %665 }
  0xf2   : > { %v805_v4 = vadd.f32 1e-08, %v789_v60  ;;  %v807_v7 = vadd.f32 1e-08, %v791_v61  ;;  %v774_v8 = vsub.f32 %v736_v52, %v655_v62  ;;  %v776_v9 = vsub.f32 %v740_v53, %v666_v63 }
  0xf3   : > { %v6342_v63 = vrot.slane %v1277_v51, %v6300_v42 }
  0xf4   : > { %5219 = vrcp.f32 %v805_v4  ;;  %v790_v10 = vand.u32 2147483647, %v774_v8  ;;  %v792_v11 = vand.u32 2147483647, %v776_v9 }
  0xf5   : > { %5221 = vrcp.f32 %v807_v7  ;;  %v1332_v12 = vpop.permute.xlu0 %1331  ;;  %v1336_v13 = vpop.permute.xlu1 %1335  ;;  %v1293_v51 = vcombine.high %v6342_v63, %v6342_v63 }
  0xf6   : > { %v806_v16 = vadd.f32 1e-08, %v790_v10  ;;  %v808_v18 = vadd.f32 1e-08, %v792_v11  ;;  %v1454_v19 = vsub.f32 %v1417_v2, %v1332_v12  ;;  %v1455_v21 = vsub.f32 %v1417_v2, %v1336_v13 }
  0xf7   : > { %v1429_v10 = vrot.slane %v1324_v41, %v6256_v5  ;;  %v6350_v11 = vrot.slane %v610_v57, %v6300_v42 }
  0xf8   : > { %5223 = vrcp.f32 %v806_v16  ;;  %v1470_v22 = vand.u32 2147483647, %v1454_v19  ;;  %v1471_v24 = vand.u32 2147483647, %v1455_v21  ;;  %v6358_v19 = vrot.slane %v6342_v63, %v6300_v42 }
  0xf9   : > { %5225 = vrcp.f32 %v808_v18  ;;  %v1343_v25 = vpop.permute.xlu0 %1342  ;;  %v1347_v27 = vpop.permute.xlu1 %1346  ;;  %v752_v30 = vrot.slane %v6350_v11, %v6256_v5 }
  0xfa   : > { %v1486_v31 = vadd.f32 1e-08, %v1470_v22  ;;  %v1487_v33 = vadd.f32 1e-08, %v1471_v24  ;;  %v1456_v34 = vsub.f32 %v1421_v14, %v1343_v25  ;;  %v1457_v35 = vsub.f32 %v1421_v14, %v1347_v27 }
  0xfb   : > { %v1433_v43 = vrot.slane %v6358_v19, %v6256_v5 }
  0xfc   : > { %5227 = vrcp.f32 %v1486_v31  ;;  %v1472_v36 = vand.u32 2147483647, %v1456_v34  ;;  %v1473_v37 = vand.u32 2147483647, %v1457_v35  ;;  %v612_v31 = vcombine.high %v610_v57, %v610_v57 }
  0xfd   : > { %5229 = vrcp.f32 %v1487_v33  ;;  %v673_v38 = vpop.permute.xlu0 %672  ;;  %v677_v39 = vpop.permute.xlu1 %676 }
  0xfe   : > { %v1488_v45 = vadd.f32 1e-08, %v1472_v36  ;;  %v1489_v46 = vadd.f32 1e-08, %v1473_v37  ;;  %v777_v47 = vsub.f32 %v744_v28, %v673_v38  ;;  %v778_v49 = vsub.f32 %v744_v28, %v677_v39 }
 0x100   : > { %5231 = vrcp.f32 %v1488_v45  ;;  %v793_v52 = vand.u32 2147483647, %v777_v47  ;;  %v794_v53 = vand.u32 2147483647, %v778_v49  ;;  %v6377_v49 = vrot.slane %v612_v31, %v6300_v42 }
 0x101   : > { %v6331_v54 = vpop.eup %5219  ;;  %5233 = vrcp.f32 %v1489_v46  ;;  %v1354_v55 = vpop.permute.xlu0 %1353 }
 0x102   : > { %v1358_v56 = vpop.permute.xlu1 %1357  ;;  %v6337_v58 = vpop.eup %5221  ;;  %v809_v59 = vadd.f32 1e-08, %v793_v52  ;;  %v810_v60 = vadd.f32 1e-08, %v794_v53  ;;  %v1458_v48 = vsub.f32 %v1425_v40, %v1354_v55  ;;  %v854_v61 = vsel %vm853_vm0, %v6331_v54, -inf }
 0x103   : > { %855 = vmax.xlane.f32.xlu0 %v854_v61  ;;  %v1459_v62 = vsub.f32 %v1425_v40, %v1358_v56  ;;  %v860_v3 = vsel %vm853_vm0, %v6337_v58, -inf  ;;  %v756_v63 = vrot.slane %v6377_v49, %v6256_v5 }
 0x104   : > { %5235 = vrcp.f32 %v809_v59  ;;  %v1474_v2 = vand.u32 2147483647, %v1458_v48 }
 0x105   : > { %v6346_v4 = vpop.eup %5223  ;;  %5237 = vrcp.f32 %v810_v60  ;;  %v1475_v7 = vand.u32 2147483647, %v1459_v62  ;;  %v684_v8 = vpop.permute.xlu0 %683 }
 0x106   : > { %v688_v9 = vpop.permute.xlu1 %687  ;;  %v6352_v12 = vpop.eup %5225  ;;  %v1490_v13 = vadd.f32 1e-08, %v1474_v2  ;;  %v779_v14 = vsub.f32 %v748_v50, %v684_v8  ;;  %v857_v15 = vsel %vm853_vm0, %v6346_v4, -inf  ;;  %v6392_v2 = vrot.slane %v1293_v51, %v6300_v42 }
 0x107   : > { %v780_v16 = vsub.f32 %v748_v50, %v688_v9  ;;  %v1491_v18 = vadd.f32 1e-08, %v1475_v7  ;;  %861 = vmax.xlane.f32.xlu0 %v860_v3  ;;  %858 = vmax.xlane.f32.xlu1 %v857_v15  ;;  %v863_v24 = vsel %vm853_vm0, %v6352_v12, -inf }
 0x108   : > { %5239 = vrcp.f32 %v1490_v13  ;;  %v795_v21 = vand.u32 2147483647, %v779_v14 }
 0x109   : > { %v796_v22 = vand.u32 2147483647, %v780_v16  ;;  %v6362_v25 = vpop.eup %5227  ;;  %5241 = vrcp.f32 %v1491_v18  ;;  %v1365_v27 = vpop.permute.xlu0 %1364 }
 0x10a   : > { %v1369_v28 = vpop.permute.xlu1 %1368  ;;  %v6366_v33 = vpop.eup %5229  ;;  %v811_v34 = vadd.f32 1e-08, %v795_v21  ;;  %v1460_v36 = vsub.f32 %v1429_v10, %v1365_v27  ;;  %v1534_v37 = vsel %vm853_vm0, %v6362_v25, -inf  ;;  %v642_v27 = vcombine.high %v6350_v11, %v6350_v11 }
 0x10b   : > { %v812_v35 = vadd.f32 1e-08, %v796_v22  ;;  %864 = vmax.xlane.f32.xlu0 %v863_v24  ;;  %1535 = vmax.xlane.f32.xlu1 %v1534_v37  ;;  %v1461_v38 = vsub.f32 %v1429_v10, %v1369_v28  ;;  %v1537_v40 = vsel %vm853_vm0, %v6366_v33, -inf  ;;  %v1437_v24 = vrot.slane %v6392_v2, %v6256_v5 }
 0x10c   : > { %5243 = vrcp.f32 %v811_v34  ;;  %v1476_v39 = vand.u32 2147483647, %v1460_v36 }
 0x10d   : > { %v6374_v44 = vpop.eup %5231  ;;  %5245 = vrcp.f32 %v812_v35  ;;  %v1477_v45 = vand.u32 2147483647, %v1461_v38  ;;  %v695_v46 = vpop.permute.xlu0 %694 }
 0x10e   : > { %v699_v47 = vpop.permute.xlu1 %698  ;;  %v6381_v52 = vpop.eup %5233  ;;  %v1492_v53 = vadd.f32 1e-08, %v1476_v39  ;;  %v781_v55 = vsub.f32 %v752_v30, %v695_v46  ;;  %v1540_v56 = vsel %vm853_vm0, %v6374_v44, -inf  ;;  %v1323_v46 = vcombine.high %v6358_v19, %v6358_v19 }
 0x10f   : > { %v782_v50 = vsub.f32 %v752_v30, %v699_v47  ;;  %v1493_v41 = vadd.f32 1e-08, %v1477_v45  ;;  %1538 = vmax.xlane.f32.xlu0 %v1537_v40  ;;  %1541 = vmax.xlane.f32.xlu1 %v1540_v56  ;;  %v1543_v60 = vsel %vm853_vm0, %v6381_v52, -inf  ;;  %v760_v45 = vrot.slane %v642_v27, %v6256_v5 }
 0x110   : > { %5247 = vrcp.f32 %v1492_v53  ;;  %v797_v57 = vand.u32 2147483647, %v781_v55 }
 0x111   : > { %v798_v59 = vand.u32 2147483647, %v782_v50  ;;  %v6387_v48 = vpop.eup %5235  ;;  %5249 = vrcp.f32 %v1493_v41  ;;  %v1376_v61 = vpop.permute.xlu0 %1375 }
 0x112   : > { %v1380_v62 = vpop.permute.xlu1 %1379  ;;  %v6394_v3 = vpop.eup %5237  ;;  %v813_v7 = vadd.f32 1e-08, %v797_v57  ;;  %v1462_v9 = vsub.f32 %v1433_v43, %v1376_v61  ;;  %v866_v10 = vsel %vm853_vm0, %v6387_v48, -inf }
 0x113   : > { %v814_v8 = vadd.f32 1e-08, %v798_v59  ;;  %1544 = vmax.xlane.f32.xlu0 %v1543_v60  ;;  %867 = vmax.xlane.f32.xlu1 %v866_v10  ;;  %v1463_v13 = vsub.f32 %v1433_v43, %v1380_v62  ;;  %v869_v15 = vsel %vm853_vm0, %v6394_v3, -inf  ;;  %v1441_v62 = vrot.slane %v1323_v46, %v6256_v5 }
 0x114   : > { %5251 = vrcp.f32 %v813_v7  ;;  %v1478_v14 = vand.u32 2147483647, %v1462_v9 }
 0x115   : > { %v6400_v16 = vpop.eup %5239  ;;  %5253 = vrcp.f32 %v814_v8  ;;  %v1479_v18 = vand.u32 2147483647, %v1463_v13  ;;  %v706_v21 = vpop.permute.xlu0 %705 }
 0x116   : > { %v710_v22 = vpop.permute.xlu1 %709  ;;  %v6406_v28 = vpop.eup %5241  ;;  %v1494_v30 = vadd.f32 1e-08, %v1478_v14  ;;  %v783_v31 = vsub.f32 %v756_v63, %v706_v21  ;;  %v1546_v34 = vsel %vm853_vm0, %v6400_v16, -inf }
 0x117   : > { %v784_v35 = vsub.f32 %v756_v63, %v710_v22  ;;  %v1495_v36 = vadd.f32 1e-08, %v1479_v18  ;;  %870 = vmax.xlane.f32.xlu0 %v869_v15  ;;  %1547 = vmax.xlane.f32.xlu1 %v1546_v34  ;;  %v1549_v39 = vsel %vm853_vm0, %v6406_v28, -inf  ;;  %v644_v63 = vcombine.high %v6377_v49, %v6377_v49 }
 0x118   : > { %5255 = vrcp.f32 %v1494_v30  ;;  %v799_v37 = vand.u32 2147483647, %v783_v31  ;;  %v1325_v30 = vcombine.high %v6392_v2, %v6392_v2 }
 0x119   : > { %v800_v38 = vand.u32 2147483647, %v784_v35  ;;  %v6412_v40 = vpop.eup %5243  ;;  %5257 = vrcp.f32 %v1495_v36  ;;  %v1387_v11 = vpop.permute.xlu0 %1386  ;;  %v764_v27 = vrot.slane %v644_v63, %v6256_v5 }
 0x11a   : > { %v1391_v43 = vpop.permute.xlu1 %1390  ;;  %v6417_v47 = vpop.eup %5245  ;;  %v815_v51 = vadd.f32 1e-08, %v799_v37  ;;  %v1464_v55 = vsub.f32 %v1437_v24, %v1387_v11  ;;  %v872_v56 = vsel %vm853_vm0, %v6412_v40, -inf }
 0x11b   : > { %v816_v53 = vadd.f32 1e-08, %v800_v38  ;;  %1550 = vmax.xlane.f32.xlu0 %v1549_v39  ;;  %873 = vmax.xlane.f32.xlu1 %v872_v56  ;;  %v1465_v50 = vsub.f32 %v1437_v24, %v1391_v43  ;;  %v875_v57 = vsel %vm853_vm0, %v6417_v47, -inf }
 0x11c   : > { %5259 = vrcp.f32 %v815_v51  ;;  %v1480_v41 = vand.u32 2147483647, %v1464_v55  ;;  %v1445_v51 = vrot.slane %v1325_v30, %v6256_v5 }
 0x11d   : > { %v6423_v59 = vpop.eup %5247  ;;  %5261 = vrcp.f32 %v816_v53  ;;  %v1481_v19 = vand.u32 2147483647, %v1465_v50  ;;  %v717_v60 = vpop.permute.xlu0 %716 }
 0x11e   : > { %v721_v61 = vpop.permute.xlu1 %720  ;;  %v6428_v7 = vpop.eup %5249  ;;  %v1496_v8 = vadd.f32 1e-08, %v1480_v41  ;;  %v785_v9 = vsub.f32 %v760_v45, %v717_v60  ;;  %v1552_v10 = vsel %vm853_vm0, %v6423_v59, -inf }
 0x11f   : > { %v786_v13 = vsub.f32 %v760_v45, %v721_v61  ;;  %v1497_v14 = vadd.f32 1e-08, %v1481_v19  ;;  %876 = vmax.xlane.f32.xlu0 %v875_v57  ;;  %1553 = vmax.xlane.f32.xlu1 %v1552_v10  ;;  %v1555_v21 = vsel %vm853_vm0, %v6428_v7, -inf }
 0x120   : > { %5263 = vrcp.f32 %v1496_v8  ;;  %v801_v15 = vand.u32 2147483647, %v785_v9 }
 0x121   : > { %v802_v18 = vand.u32 2147483647, %v786_v13  ;;  %v6434_v22 = vpop.eup %5251  ;;  %5265 = vrcp.f32 %v1497_v14  ;;  %v1398_v49 = vpop.permute.xlu0 %1397 }
 0x122   : > { %v1402_v24 = vpop.permute.xlu1 %1401  ;;  %v6439_v31 = vpop.eup %5253  ;;  %v817_v34 = vadd.f32 1e-08, %v801_v15  ;;  %v1466_v36 = vsub.f32 %v1441_v62, %v1398_v49  ;;  %v878_v37 = vsel %vm853_vm0, %v6434_v22, -inf }
 0x123   : > { %v818_v35 = vadd.f32 1e-08, %v802_v18  ;;  %1556 = vmax.xlane.f32.xlu0 %v1555_v21  ;;  %879 = vmax.xlane.f32.xlu1 %v878_v37  ;;  %v1467_v38 = vsub.f32 %v1441_v62, %v1402_v24  ;;  %v881_v11 = vsel %vm853_vm0, %v6439_v31, -inf }
 0x124   : > { %5267 = vrcp.f32 %v817_v34  ;;  %v1482_v39 = vand.u32 2147483647, %v1466_v36 }
 0x125   : > { %v6445_v43 = vpop.eup %5255  ;;  %5269 = vrcp.f32 %v818_v35  ;;  %v1483_v2 = vand.u32 2147483647, %v1467_v38  ;;  %v728_v45 = vpop.permute.xlu0 %727 }
 0x126   : > { %v732_v46 = vpop.permute.xlu1 %731  ;;  %v6448_v53 = vpop.eup %5257  ;;  %v1498_v55 = vadd.f32 1e-08, %v1482_v39  ;;  %v787_v56 = vsub.f32 %v764_v27, %v728_v45  ;;  %v1558_v50 = vsel %vm853_vm0, %v6445_v43, -inf }
 0x127   : > { %v788_v41 = vsub.f32 %v764_v27, %v732_v46  ;;  %v1499_v57 = vadd.f32 1e-08, %v1483_v2  ;;  %882 = vmax.xlane.f32.xlu0 %v881_v11  ;;  %1559 = vmax.xlane.f32.xlu1 %v1558_v50  ;;  %v1561_v61 = vsel %vm853_vm0, %v6448_v53, -inf }
 0x128   : > { %5271 = vrcp.f32 %v1498_v55  ;;  %v803_v19 = vand.u32 2147483647, %v787_v56 }
 0x129   : > { %v804_v60 = vand.u32 2147483647, %v788_v41  ;;  %v6454_v62 = vpop.eup %5259  ;;  %5273 = vrcp.f32 %v1499_v57  ;;  %v1409_v63 = vpop.permute.xlu0 %1408 }
 0x12a   : > { %v1413_v8 = vpop.permute.xlu1 %1412  ;;  %v6456_v9 = vpop.eup %5261  ;;  %v819_v10 = vadd.f32 1e-08, %v803_v19  ;;  %v1468_v14 = vsub.f32 %v1445_v51, %v1409_v63  ;;  %v884_v15 = vsel %vm853_vm0, %v6454_v62, -inf }
 0x12b   : > { %v820_v13 = vadd.f32 1e-08, %v804_v60  ;;  %1562 = vmax.xlane.f32.xlu0 %v1561_v61  ;;  %885 = vmax.xlane.f32.xlu1 %v884_v15  ;;  %v1469_v18 = vsub.f32 %v1445_v51, %v1413_v8  ;;  %v887_v49 = vsel %vm853_vm0, %v6456_v9, -inf }
 0x12c   : > { %5275 = vrcp.f32 %v819_v10  ;;  %v1484_v21 = vand.u32 2147483647, %v1468_v14 }
 0x12d   : > { %v6462_v24 = vpop.eup %5263  ;;  %5277 = vrcp.f32 %v820_v13  ;;  %v1485_v27 = vand.u32 2147483647, %v1469_v18 }
 0x12e   : > { %v6464_v30 = vpop.eup %5265  ;;  %v1500_v34 = vadd.f32 1e-08, %v1484_v21  ;;  %v1564_v35 = vsel %vm853_vm0, %v6462_v24, -inf }
 0x12f   : > { %v1501_v36 = vadd.f32 1e-08, %v1485_v27  ;;  %888 = vmax.xlane.f32.xlu0 %v887_v49  ;;  %1565 = vmax.xlane.f32.xlu1 %v1564_v35  ;;  %v1567_v37 = vsel %vm853_vm0, %v6464_v30, -inf }
 0x130   : > { %5279 = vrcp.f32 %v1500_v34 }
 0x131   : > { %v6470_v38 = vpop.eup %5267  ;;  %5281 = vrcp.f32 %v1501_v36 }
 0x132   : > { %v6472_v39 = vpop.eup %5269  ;;  %v890_v11 = vsel %vm853_vm0, %v6470_v38, -inf }
 0x133   : > { %1568 = vmax.xlane.f32.xlu0 %v1567_v37  ;;  %891 = vmax.xlane.f32.xlu1 %v890_v11  ;;  %v893_v2 = vsel %vm853_vm0, %v6472_v39, -inf }
 0x135   : > { %v6478_v45 = vpop.eup %5271 }
 0x136   : > { %v6480_v46 = vpop.eup %5273  ;;  %v1570_v51 = vsel %vm853_vm0, %v6478_v45, -inf }
 0x137   : > { %894 = vmax.xlane.f32.xlu0 %v893_v2  ;;  %1571 = vmax.xlane.f32.xlu1 %v1570_v51  ;;  %v1573_v55 = vsel %vm853_vm0, %v6480_v46, -inf }
 0x139   : > { %v6486_v56 = vpop.eup %5275 }
 0x13a   : > { %v6488_v50 = vpop.eup %5277  ;;  %v896_v41 = vsel %vm853_vm0, %v6486_v56, -inf }
 0x13b   : > { %1574 = vmax.xlane.f32.xlu0 %v1573_v55  ;;  %897 = vmax.xlane.f32.xlu1 %v896_v41  ;;  %v899_v57 = vsel %vm853_vm0, %v6488_v50, -inf }
 0x13d   : > { %v6494_v19 = vpop.eup %5279 }
 0x13e   : > { %v6496_v60 = vpop.eup %5281  ;;  %v1576_v61 = vsel %vm853_vm0, %v6494_v19, -inf }
 0x13f   : > { %900 = vmax.xlane.f32.xlu0 %v899_v57  ;;  %1577 = vmax.xlane.f32.xlu1 %v1576_v61  ;;  %v1579_v63 = vsel %vm853_vm0, %v6496_v60, -inf }
 0x143   : > { %1580 = vmax.xlane.f32.xlu0 %v1579_v63 }
 0x18c   : > { %v856_v8 = vpop.xlane.xlu0 %855 }
 0x18d   : > { %v902_v10 = vsub.f32 %v6331_v54, %v856_v8 }
 0x18f   : > { %v918_v13 = vmul.f32 1.442695, %v902_v10 }
 0x190   : > { %v859_v14 = vpop.xlane.xlu1 %858  ;;  %v862_v15 = vpop.xlane.xlu0 %861 }
 0x191   : > { %5283 = vpow2.f32 %v918_v13  ;;  %v903_v18 = vsub.f32 %v6346_v4, %v859_v14  ;;  %v904_v21 = vsub.f32 %v6337_v58, %v862_v15 }
 0x193   : > { %v920_v49 = vmul.f32 1.442695, %v903_v18  ;;  %v922_v27 = vmul.f32 1.442695, %v904_v21 }
 0x194   : > { %v1536_v34 = vpop.xlane.xlu1 %1535  ;;  %v865_v35 = vpop.xlane.xlu0 %864 }
 0x195   : > { %5285 = vpow2.f32 %v920_v49  ;;  %v1582_v36 = vsub.f32 %v6362_v25, %v1536_v34  ;;  %v905_v37 = vsub.f32 %v6352_v12, %v865_v35 }
 0x196   : > { %5287 = vpow2.f32 %v922_v27 }
 0x197   : > { %v1598_v11 = vmul.f32 1.442695, %v1582_v36  ;;  %v924_v54 = vmul.f32 1.442695, %v905_v37 }
 0x198   : > { %v1542_v2 = vpop.xlane.xlu1 %1541  ;;  %v1539_v51 = vpop.xlane.xlu0 %1538 }
 0x199   : > { %5289 = vpow2.f32 %v1598_v11  ;;  %v1584_v55 = vsub.f32 %v6374_v44, %v1542_v2  ;;  %v1583_v4 = vsub.f32 %v6366_v33, %v1539_v51 }
 0x19a   : > { %5291 = vpow2.f32 %v924_v54 }
 0x19b   : > { %v1602_v58 = vmul.f32 1.442695, %v1584_v55  ;;  %v1600_v41 = vmul.f32 1.442695, %v1583_v4 }
 0x19c   : > { %v868_v57 = vpop.xlane.xlu1 %867  ;;  %v1545_v61 = vpop.xlane.xlu0 %1544 }
 0x19d   : > { %5293 = vpow2.f32 %v1602_v58  ;;  %v906_v25 = vsub.f32 %v6387_v48, %v868_v57  ;;  %v1585_v12 = vsub.f32 %v6381_v52, %v1545_v61 }
 0x19e   : > { %v6511_v63 = vpop.eup %5283  ;;  %5295 = vpow2.f32 %v1600_v41 }
 0x19f   : > { %v926_v8 = vmul.f32 1.442695, %v906_v25  ;;  %v1604_v10 = vmul.f32 1.442695, %v1585_v12  ;;  %v1104_v44 = vsel %vm853_vm0, %v6511_v63, 0.0 }
 0x1a0   : > { %v1548_v13 = vpop.xlane.xlu1 %1547  ;;  %1105 = vadd.xlane.f32.xlu1 %v1104_v44  ;;  %v871_v33 = vpop.xlane.xlu0 %870 }
 0x1a1   : > { %5297 = vpow2.f32 %v926_v8  ;;  %v1586_v14 = vsub.f32 %v6400_v16, %v1548_v13  ;;  %v907_v15 = vsub.f32 %v6394_v3, %v871_v33 }
 0x1a2   : > { %v6517_v18 = vpop.eup %5285  ;;  %5299 = vpow2.f32 %v1604_v10 }
 0x1a3   : > { %v6519_v52 = vpop.eup %5287  ;;  %v1606_v48 = vmul.f32 1.442695, %v1586_v14  ;;  %v928_v21 = vmul.f32 1.442695, %v907_v15  ;;  %v1107_v49 = vsel %vm853_vm0, %v6517_v18, 0.0 }
 0x1a4   : > { %1108 = vadd.xlane.f32.xlu0 %v1107_v49  ;;  %v874_v27 = vpop.xlane.xlu1 %873  ;;  %v1110_v34 = vsel %vm853_vm0, %v6519_v52, 0.0  ;;  %v1551_v35 = vpop.xlane.xlu0 %1550 }
 0x1a5   : > { %5301 = vpow2.f32 %v1606_v48  ;;  %v908_v16 = vsub.f32 %v6412_v40, %v874_v27  ;;  %1111 = vadd.xlane.f32.xlu1 %v1110_v34  ;;  %v1587_v3 = vsub.f32 %v6406_v28, %v1551_v35 }
 0x1a6   : > { %v6527_v36 = vpop.eup %5289  ;;  %5303 = vpow2.f32 %v928_v21 }
 0x1a7   : > { %v6529_v37 = vpop.eup %5291  ;;  %v930_v11 = vmul.f32 1.442695, %v908_v16  ;;  %v1608_v54 = vmul.f32 1.442695, %v1587_v3  ;;  %v1784_v2 = vsel %vm853_vm0, %v6527_v36, 0.0 }
 0x1a8   : > { %v1554_v51 = vpop.xlane.xlu1 %1553  ;;  %v1113_v55 = vsel %vm853_vm0, %v6529_v37, 0.0  ;;  %v877_v4 = vpop.xlane.xlu0 %876 }
 0x1a9   : > { %5305 = vpow2.f32 %v930_v11  ;;  %v1588_v40 = vsub.f32 %v6423_v59, %v1554_v51  ;;  %1785 = vadd.xlane.f32.xlu1 %v1784_v2  ;;  %1114 = vadd.xlane.f32.xlu0 %v1113_v55  ;;  %v909_v28 = vsub.f32 %v6417_v47, %v877_v4 }
 0x1aa   : > { %v6537_v58 = vpop.eup %5293  ;;  %5307 = vpow2.f32 %v1608_v54 }
 0x1ab   : > { %v6539_v41 = vpop.eup %5295  ;;  %v1610_v57 = vmul.f32 1.442695, %v1588_v40  ;;  %v932_v61 = vmul.f32 1.442695, %v909_v28  ;;  %v1790_v25 = vsel %vm853_vm0, %v6537_v58, 0.0 }
 0x1ac   : > { %v880_v12 = vpop.xlane.xlu1 %879  ;;  %v1787_v8 = vsel %vm853_vm0, %v6539_v41, 0.0  ;;  %v1557_v10 = vpop.xlane.xlu0 %1556 }
 0x1ad   : > { %5309 = vpow2.f32 %v1610_v57  ;;  %v910_v59 = vsub.f32 %v6434_v22, %v880_v12  ;;  %1791 = vadd.xlane.f32.xlu1 %v1790_v25  ;;  %1788 = vadd.xlane.f32.xlu0 %v1787_v8  ;;  %v1589_v47 = vsub.f32 %v6428_v7, %v1557_v10 }
 0x1ae   : > { %v6547_v44 = vpop.eup %5297  ;;  %5311 = vpow2.f32 %v932_v61 }
 0x1af   : > { %v6549_v13 = vpop.eup %5299  ;;  %v934_v33 = vmul.f32 1.442695, %v910_v59  ;;  %v1612_v14 = vmul.f32 1.442695, %v1589_v47  ;;  %v1116_v15 = vsel %vm853_vm0, %v6547_v44, 0.0 }
 0x1b0   : > { %v1560_v48 = vpop.xlane.xlu1 %1559  ;;  %v1793_v21 = vsel %vm853_vm0, %v6549_v13, 0.0  ;;  %v883_v49 = vpop.xlane.xlu0 %882 }
 0x1b1   : > { %5313 = vpow2.f32 %v934_v33  ;;  %v1590_v22 = vsub.f32 %v6445_v43, %v1560_v48  ;;  %1117 = vadd.xlane.f32.xlu1 %v1116_v15  ;;  %1794 = vadd.xlane.f32.xlu0 %v1793_v21  ;;  %v911_v7 = vsub.f32 %v6439_v31, %v883_v49 }
 0x1b2   : > { %v6557_v27 = vpop.eup %5301  ;;  %5315 = vpow2.f32 %v1612_v14 }
 0x1b3   : > { %v6559_v34 = vpop.eup %5303  ;;  %v1614_v35 = vmul.f32 1.442695, %v1590_v22  ;;  %v936_v16 = vmul.f32 1.442695, %v911_v7  ;;  %v1796_v3 = vsel %vm853_vm0, %v6557_v27, 0.0 }
 0x1b4   : > { %v886_v11 = vpop.xlane.xlu1 %885  ;;  %v1119_v54 = vsel %vm853_vm0, %v6559_v34, 0.0  ;;  %v1563_v2 = vpop.xlane.xlu0 %1562 }
 0x1b5   : > { %5317 = vpow2.f32 %v1614_v35  ;;  %v912_v43 = vsub.f32 %v6454_v62, %v886_v11  ;;  %1797 = vadd.xlane.f32.xlu1 %v1796_v3  ;;  %1120 = vadd.xlane.f32.xlu0 %v1119_v54  ;;  %v1591_v31 = vsub.f32 %v6448_v53, %v1563_v2 }
 0x1b6   : > { %v6567_v51 = vpop.eup %5305  ;;  %5319 = vpow2.f32 %v936_v16 }
 0x1b7   : > { %v6569_v55 = vpop.eup %5307  ;;  %v938_v4 = vmul.f32 1.442695, %v912_v43  ;;  %v1616_v40 = vmul.f32 1.442695, %v1591_v31  ;;  %v1122_v28 = vsel %vm853_vm0, %v6567_v51, 0.0 }
 0x1b8   : > { %v1566_v57 = vpop.xlane.xlu1 %1565  ;;  %v1799_v61 = vsel %vm853_vm0, %v6569_v55, 0.0  ;;  %v889_v25 = vpop.xlane.xlu0 %888 }
 0x1b9   : > { %5321 = vpow2.f32 %v938_v4  ;;  %v1592_v62 = vsub.f32 %v6462_v24, %v1566_v57  ;;  %1123 = vadd.xlane.f32.xlu1 %v1122_v28  ;;  %1800 = vadd.xlane.f32.xlu0 %v1799_v61  ;;  %v913_v53 = vsub.f32 %v6456_v9, %v889_v25  ;;  %v591_v57 = vstv %s6587_s26  ;;  %s5065_s26 = sld [smem:[#allocation3 + $0x12]] }
 0x1ba   : > { %v6577_v12 = vpop.eup %5309  ;;  %5323 = vpow2.f32 %v1616_v40 }
 0x1bb   : > { %v6579_v8 = vpop.eup %5311  ;;  %v1618_v10 = vmul.f32 1.442695, %v1592_v62  ;;  %v940_v59 = vmul.f32 1.442695, %v913_v53  ;;  %v1802_v47 = vsel %vm853_vm0, %v6577_v12, 0.0 }
 0x1bc   : > { %v892_v33 = vpop.xlane.xlu1 %891  ;;  %v1125_v14 = vsel %vm853_vm0, %v6579_v8, 0.0  ;;  %v1569_v15 = vpop.xlane.xlu0 %1568 }
 0x1bd   : > { %5325 = vpow2.f32 %v1618_v10  ;;  %v914_v24 = vsub.f32 %v6470_v38, %v892_v33  ;;  %1803 = vadd.xlane.f32.xlu1 %v1802_v47  ;;  %1126 = vadd.xlane.f32.xlu0 %v1125_v14  ;;  %v1593_v9 = vsub.f32 %v6464_v30, %v1569_v15 }
 0x1be   : > { %v6589_v48 = vpop.eup %5313  ;;  %5327 = vpow2.f32 %v940_v59 }
 0x1bf   : > { %v6591_v21 = vpop.eup %5315  ;;  %v942_v49 = vmul.f32 1.442695, %v914_v24  ;;  %v1620_v22 = vmul.f32 1.442695, %v1593_v9  ;;  %v1128_v7 = vsel %vm853_vm0, %v6589_v48, 0.0  ;;  %v593_v24 = vstv %s6599_s20  ;;  %s5060_s20 = sld [smem:[#allocation3 + $0xd]] }
 0x1c0   : > { %v1572_v35 = vpop.xlane.xlu1 %1571  ;;  %v1805_v38 = vsel %vm853_vm0, %v6591_v21, 0.0  ;;  %v895_v16 = vpop.xlane.xlu0 %894 }
 0x1c1   : > { %5329 = vpow2.f32 %v942_v49  ;;  %v1594_v30 = vsub.f32 %v6478_v45, %v1572_v35  ;;  %1129 = vadd.xlane.f32.xlu1 %v1128_v7  ;;  %1806 = vadd.xlane.f32.xlu0 %v1805_v38  ;;  %v915_v3 = vsub.f32 %v6472_v39, %v895_v16 }
 0x1c2   : > { %v6601_v11 = vpop.eup %5317  ;;  %5331 = vpow2.f32 %v1620_v22 }
 0x1c3   : > { %v6603_v54 = vpop.eup %5319  ;;  %v1622_v2 = vmul.f32 1.442695, %v1594_v30  ;;  %v944_v43 = vmul.f32 1.442695, %v915_v3  ;;  %v1808_v31 = vsel %vm853_vm0, %v6601_v11, 0.0  ;;  %v1272_v30 = vstv %s6612_s30  ;;  %s5066_s30 = sld [smem:[#allocation3 + $0x13]] }
 0x1c4   : > { %v898_v4 = vpop.xlane.xlu1 %897  ;;  %v1131_v45 = vsel %vm853_vm0, %v6603_v54, 0.0  ;;  %v1575_v40 = vpop.xlane.xlu0 %1574 }
 0x1c5   : > { %5333 = vpow2.f32 %v1622_v2  ;;  %v916_v39 = vsub.f32 %v6486_v56, %v898_v4  ;;  %1809 = vadd.xlane.f32.xlu1 %v1808_v31  ;;  %1132 = vadd.xlane.f32.xlu0 %v1131_v45  ;;  %v1595_v28 = vsub.f32 %v6480_v46, %v1575_v40  ;;  %v5803_v46 = vld [vmem:[%s6249_s24] sm:$0xff] }
 0x1c6   : > { %v6614_v61 = vpop.eup %5321  ;;  %5335 = vpow2.f32 %v944_v43  ;;  %v592_v33 = vmul.f32 %v5803_v46, %v591_v57  ;;  %v1273_v40 = vmul.f32 %v5803_v46, %v1272_v30 }
 0x1c7   : > { %v6616_v25 = vpop.eup %5323  ;;  %v946_v62 = vmul.f32 1.442695, %v916_v39  ;;  %v1624_v53 = vmul.f32 1.442695, %v1595_v28  ;;  %v1134_v10 = vsel %vm853_vm0, %v6614_v61, 0.0 }
 0x1c8   : > { %v1578_v59 = vpop.xlane.xlu1 %1577  ;;  %v1811_v56 = vsel %vm853_vm0, %v6616_v25, 0.0  ;;  %v901_v47 = vpop.xlane.xlu0 %900  ;;  %v6636_v16 = vadd.f32 %v593_v24, %v592_v33 }
 0x1c9   : > { %5337 = vpow2.f32 %v946_v62  ;;  %v1596_v14 = vsub.f32 %v6494_v19, %v1578_v59  ;;  %1135 = vadd.xlane.f32.xlu1 %v1134_v10  ;;  %1812 = vadd.xlane.f32.xlu0 %v1811_v56  ;;  %v917_v15 = vsub.f32 %v6488_v50, %v901_v47 }
 0x1ca   : > { %v6628_v9 = vpop.eup %5325  ;;  %5339 = vpow2.f32 %v1624_v53  ;;  %v958_v45 = vrot.slane %v6636_v16, %v6300_v42 }
 0x1cb   : > { %v6630_v49 = vpop.eup %5327  ;;  %v1626_v22 = vmul.f32 1.442695, %v1596_v14  ;;  %v948_v7 = vmul.f32 1.442695, %v917_v15  ;;  %v1814_v35 = vsel %vm853_vm0, %v6628_v9, 0.0 }
 0x1cc   : > { %v1137_v19 = vsel %vm853_vm0, %v6630_v49, 0.0  ;;  %v1581_v38 = vpop.xlane.xlu0 %1580  ;;  %v974_v53 = vrot.slane %v958_v45, %v6300_v42  ;;  %v966_v10 = vcombine.high %v958_v45, %v958_v45 }
 0x1cd   : > { %5341 = vpow2.f32 %v1626_v22  ;;  %1815 = vadd.xlane.f32.xlu1 %v1814_v35  ;;  %1138 = vadd.xlane.f32.xlu0 %v1137_v19  ;;  %v1597_v50 = vsub.f32 %v6496_v60, %v1581_v38  ;;  %v1274_v60 = vstv %s6626_s0  ;;  %s5061_s0 = sld [smem:[#allocation3 + $0xe]] }
 0x1ce   : > { %v6640_v3 = vpop.eup %5329  ;;  %5343 = vpow2.f32 %v948_v7  ;;  %v6660_v59 = vadd.f32 %v1274_v60, %v1273_v40  ;;  %v1003_v14 = vrot.slane %v974_v53, %v6256_v5  ;;  %v988_v15 = vrot.slane %v966_v10, %v6300_v42 }
 0x1cf   : > { %v6642_v2 = vpop.eup %5331  ;;  %v1628_v43 = vmul.f32 1.442695, %v1597_v50  ;;  %v1140_v31 = vsel %vm853_vm0, %v6640_v3, 0.0  ;;  %v996_v10 = vcombine.high %v974_v53, %v974_v53 }
 0x1d0   : > { %v1817_v4 = vsel %vm853_vm0, %v6642_v2, 0.0  ;;  %v1638_v24 = vrot.slane %v6660_v59, %v6300_v42  ;;  %v1040_v50 = vmul.f32 %v6511_v63, %v1003_v14  ;;  %v1007_v30 = vrot.slane %v988_v15, %v6256_v5 }
 0x1d1   : > { %5345 = vpow2.f32 %v1628_v43  ;;  %1141 = vadd.xlane.f32.xlu1 %v1140_v31  ;;  %1818 = vadd.xlane.f32.xlu0 %v1817_v4 }
 0x1d2   : > { %v6651_v39 = vpop.eup %5333  ;;  %v1646_v19 = vcombine.high %v1638_v24, %v1638_v24  ;;  %v1654_v43 = vrot.slane %v1638_v24, %v6300_v42  ;;  %v1056_v40 = vsel %vm853_vm0, %v1040_v50, 0.0  ;;  %v1042_v60 = vmul.f32 %v6519_v52, %v1007_v30 }
 0x1d3   : > { %v6653_v28 = vpop.eup %5335  ;;  %v1820_v57 = vsel %vm853_vm0, %v6651_v39, 0.0  ;;  %v1011_v52 = vrot.slane %v996_v10, %v6256_v5 }
 0x1d4   : > { %v1143_v62 = vsel %vm853_vm0, %v6653_v28, 0.0  ;;  %v1668_v45 = vrot.slane %v1646_v19, %v6300_v42  ;;  %v1683_v63 = vrot.slane %v1654_v43, %v6256_v5 }
 0x1d5   : > { %1821 = vadd.xlane.f32.xlu1 %v1820_v57  ;;  %1144 = vadd.xlane.f32.xlu0 %v1143_v62  ;;  %v1041_v57 = vmul.f32 %v6517_v18, %v1003_v14  ;;  %v1676_v18 = vcombine.high %v1654_v43, %v1654_v43 }
 0x1d6   : > { %v6662_v56 = vpop.eup %5337  ;;  %v1687_v62 = vrot.slane %v1668_v45, %v6256_v5  ;;  %v1720_v24 = vmul.f32 %v6527_v36, %v1683_v63  ;;  %v1721_v53 = vmul.f32 %v6539_v41, %v1683_v63  ;;  %v998_v36 = vcombine.high %v988_v15, %v988_v15 }
 0x1d7   : > { %v6664_v47 = vpop.eup %5339  ;;  %v1146_v46 = vsel %vm853_vm0, %v6662_v56, 0.0  ;;  %v1691_v50 = vrot.slane %v1676_v18, %v6256_v5  ;;  %v1678_v41 = vcombine.high %v1668_v45, %v1668_v45  ;;  %v1631_v15 = vcombine.high %v6660_v59, %v6660_v59 }
 0x1d8   : > { %v1823_v33 = vsel %vm853_vm0, %v6664_v47, 0.0  ;;  %v1736_v14 = vsel %vm853_vm0, %v1720_v24, 0.0  ;;  %v1739_v43 = vsel %vm853_vm0, %v1721_v53, 0.0 }
 0x1d9   : > { %1147 = vadd.xlane.f32.xlu1 %v1146_v46  ;;  %1824 = vadd.xlane.f32.xlu0 %v1823_v33  ;;  %v1062_v46 = vsel %vm853_vm0, %v1042_v60, 0.0  ;;  %v1059_v33 = vsel %vm853_vm0, %v1041_v57, 0.0  ;;  %v1724_v63 = vmul.f32 %v6557_v27, %v1691_v50  ;;  %v1645_v45 = vrot.slane %v1631_v15, %v6300_v42 }
 0x1da   : > { %v6674_v22 = vpop.eup %5341 }
 0x1db   : > { %v6676_v7 = vpop.eup %5343  ;;  %v1826_v35 = vsel %vm853_vm0, %v6674_v22, 0.0  ;;  %v1748_v10 = vsel %vm853_vm0, %v1724_v63, 0.0 }
 0x1dc   : > { %v1149_v38 = vsel %vm853_vm0, %v6676_v7, 0.0 }
 0x1dd   : > { %1827 = vadd.xlane.f32.xlu1 %v1826_v35  ;;  %1150 = vadd.xlane.f32.xlu0 %v1149_v38  ;;  %v1043_v35 = vmul.f32 %v6529_v37, %v1007_v30  ;;  %v1722_v38 = vmul.f32 %v6537_v58, %v1687_v62  ;;  %v951_v37 = vcombine.high %v6636_v16, %v6636_v16 }
 0x1de   : > { %v6685_v31 = vpop.eup %5345  ;;  %v1015_v58 = vrot.slane %v998_v36, %v6256_v5 }
 0x1df   : > { %v1829_v4 = vsel %vm853_vm0, %v6685_v31, 0.0  ;;  %v1065_v19 = vsel %vm853_vm0, %v1043_v35, 0.0  ;;  %v1742_v30 = vsel %vm853_vm0, %v1722_v38, 0.0  ;;  %v965_v60 = vrot.slane %v951_v37, %v6300_v42 }
 0x1e1   : > { %1057 = vadd.xlane.f32.xlu1 %v1056_v40  ;;  %1830 = vadd.xlane.f32.xlu0 %v1829_v4  ;;  %v1044_v4 = vmul.f32 %v6547_v44, %v1011_v52  ;;  %v1723_v40 = vmul.f32 %v6549_v13, %v1687_v62  ;;  %v1045_v44 = vmul.f32 %v6559_v34, %v1011_v52 }
 0x1e2   : > { %v1695_v13 = vrot.slane %v1678_v41, %v6256_v5  ;;  %v981_v62 = vrot.slane %v965_v60, %v6300_v42  ;;  %v1661_v34 = vrot.slane %v1645_v45, %v6300_v42  ;;  %v967_v24 = vcombine.high %v965_v60, %v965_v60 }
 0x1e3   : > { %v1068_v16 = vsel %vm853_vm0, %v1044_v4, 0.0  ;;  %v1745_v57 = vsel %vm853_vm0, %v1723_v40, 0.0  ;;  %v1071_v59 = vsel %vm853_vm0, %v1045_v44, 0.0 }
 0x1e4   : > { %v1019_v27 = vrot.slane %v981_v62, %v6256_v5  ;;  %v1726_v18 = vmul.f32 %v6577_v12, %v1695_v13  ;;  %v1727_v36 = vmul.f32 %v6591_v21, %v1695_v13  ;;  %v997_v40 = vcombine.high %v981_v62, %v981_v62 }
 0x1e5   : > { %1063 = vadd.xlane.f32.xlu1 %v1062_v46  ;;  %1060 = vadd.xlane.f32.xlu0 %v1059_v33  ;;  %v1046_v46 = vmul.f32 %v6567_v51, %v1015_v58  ;;  %v1725_v33 = vmul.f32 %v6569_v55, %v1691_v50  ;;  %v1699_v51 = vrot.slane %v1661_v34, %v6256_v5 }
 0x1e6   : > { %v995_v55 = vrot.slane %v967_v24, %v6300_v42  ;;  %v1754_v38 = vsel %vm853_vm0, %v1726_v18, 0.0  ;;  %v1048_v50 = vmul.f32 %v6589_v48, %v1019_v27  ;;  %v1049_v4 = vmul.f32 %v6603_v54, %v1019_v27 }
 0x1e7   : > { %v1074_v35 = vsel %vm853_vm0, %v1046_v46, 0.0  ;;  %v1751_v52 = vsel %vm853_vm0, %v1725_v33, 0.0  ;;  %v1729_v60 = vmul.f32 %v6616_v25, %v1699_v51  ;;  %v1027_v15 = vrot.slane %v997_v40, %v6256_v5 }
 0x1e8   : > { %v1023_v12 = vrot.slane %v995_v55, %v6256_v5  ;;  %v1080_v37 = vsel %vm853_vm0, %v1048_v50, 0.0 }
 0x1e9   : > { %1737 = vadd.xlane.f32.xlu1 %v1736_v14  ;;  %1066 = vadd.xlane.f32.xlu0 %v1065_v19  ;;  %v1047_v14 = vmul.f32 %v6579_v8, %v1015_v58  ;;  %v1647_v19 = vcombine.high %v1645_v45, %v1645_v45  ;;  %v1083_v58 = vsel %vm853_vm0, %v1049_v4, 0.0  ;;  %v1052_v62 = vmul.f32 %v6640_v3, %v1027_v15 }
 0x1ea   : > { %v1050_v41 = vmul.f32 %v6614_v61, %v1023_v12  ;;  %v1051_v63 = vmul.f32 %v6630_v49, %v1023_v12  ;;  %v999_v61 = vcombine.high %v995_v55, %v995_v55  ;;  %v1053_v33 = vmul.f32 %v6653_v28, %v1027_v15 }
 0x1eb   : > { %v1077_v53 = vsel %vm853_vm0, %v1047_v14, 0.0  ;;  %v1675_v8 = vrot.slane %v1647_v19, %v6300_v42  ;;  %v1092_v49 = vsel %vm853_vm0, %v1052_v62, 0.0 }
 0x1ec   : > { %v1086_v54 = vsel %vm853_vm0, %v1050_v41, 0.0  ;;  %v1089_v13 = vsel %vm853_vm0, %v1051_v63, 0.0 }
 0x1ed   : > { %1743 = vadd.xlane.f32.xlu1 %v1742_v30  ;;  %1740 = vadd.xlane.f32.xlu0 %v1739_v43  ;;  %v1757_v30 = vsel %vm853_vm0, %v1727_v36, 0.0  ;;  %v1728_v43 = vmul.f32 %v6601_v11, %v1699_v51  ;;  %v1703_v48 = vrot.slane %v1675_v8, %v6256_v5  ;;  %v1677_v11 = vcombine.high %v1661_v34, %v1661_v34 }
 0x1ef   : > { %v1760_v21 = vsel %vm853_vm0, %v1728_v43, 0.0  ;;  %v1707_v44 = vrot.slane %v1677_v11, %v6256_v5  ;;  %v1731_v45 = vmul.f32 %v6642_v2, %v1703_v48  ;;  %v1095_v2 = vsel %vm853_vm0, %v1053_v33, 0.0 }
 0x1f1   : > { %1069 = vadd.xlane.f32.xlu1 %v1068_v16  ;;  %1746 = vadd.xlane.f32.xlu0 %v1745_v57  ;;  %v1763_v16 = vsel %vm853_vm0, %v1729_v60, 0.0  ;;  %v1730_v57 = vmul.f32 %v6628_v9, %v1703_v48  ;;  %v1679_v9 = vcombine.high %v1675_v8, %v1675_v8  ;;  %v1732_v46 = vmul.f32 %v6651_v39, %v1707_v44 }
 0x1f2   : > { %v1733_v24 = vmul.f32 %v6664_v47, %v1707_v44 }
 0x1f3   : > { %v1766_v25 = vsel %vm853_vm0, %v1730_v57, 0.0  ;;  %v1711_v27 = vrot.slane %v1679_v9, %v6256_v5  ;;  %v1772_v3 = vsel %vm853_vm0, %v1732_v46, 0.0 }
 0x1f4   : > { %v1775_v39 = vsel %vm853_vm0, %v1733_v24, 0.0 }
 0x1f5   : > { %1749 = vadd.xlane.f32.xlu1 %v1748_v10  ;;  %1072 = vadd.xlane.f32.xlu0 %v1071_v59  ;;  %v1031_v10 = vrot.slane %v999_v61, %v6256_v5  ;;  %v1769_v59 = vsel %vm853_vm0, %v1731_v45, 0.0  ;;  %v1734_v28 = vmul.f32 %v6674_v22, %v1711_v27 }
 0x1f7   : > { %v1054_v34 = vmul.f32 %v6662_v56, %v1031_v10  ;;  %v1778_v18 = vsel %vm853_vm0, %v1734_v28, 0.0  ;;  %v1735_v56 = vmul.f32 %v6685_v31, %v1711_v27 }
 0x1f9   : > { %1075 = vadd.xlane.f32.xlu1 %v1074_v35  ;;  %1752 = vadd.xlane.f32.xlu0 %v1751_v52  ;;  %v1098_v35 = vsel %vm853_vm0, %v1054_v34, 0.0  ;;  %v1055_v52 = vmul.f32 %v6676_v7, %v1031_v10  ;;  %v1781_v47 = vsel %vm853_vm0, %v1735_v56, 0.0  ;;  %v6865_v56 = vand.u32 127, %v600_v0 }
 0x1fb   : > { %v1101_v14 = vsel %vm853_vm0, %v1055_v52, 0.0  ;;  %8949 = vst [vmem:[#allocation35_spill] sm:$0xff] %v6865_v56 }
 0x1fd   : > { %1755 = vadd.xlane.f32.xlu1 %v1754_v38  ;;  %1078 = vadd.xlane.f32.xlu0 %v1077_v53 }
 0x201   : > { %1081 = vadd.xlane.f32.xlu1 %v1080_v37  ;;  %1758 = vadd.xlane.f32.xlu0 %v1757_v30 }
 0x205   : > { %1761 = vadd.xlane.f32.xlu1 %v1760_v21  ;;  %1084 = vadd.xlane.f32.xlu0 %v1083_v58 }
 0x209   : > { %1087 = vadd.xlane.f32.xlu1 %v1086_v54  ;;  %1764 = vadd.xlane.f32.xlu0 %v1763_v16 }
 0x20d   : > { %1767 = vadd.xlane.f32.xlu1 %v1766_v25  ;;  %1090 = vadd.xlane.f32.xlu0 %v1089_v13 }
 0x211   : > { %1093 = vadd.xlane.f32.xlu1 %v1092_v49  ;;  %1770 = vadd.xlane.f32.xlu0 %v1769_v59 }
 0x215   : > { %1773 = vadd.xlane.f32.xlu1 %v1772_v3  ;;  %1096 = vadd.xlane.f32.xlu0 %v1095_v2 }
 0x219   : > { %1099 = vadd.xlane.f32.xlu1 %v1098_v35  ;;  %1776 = vadd.xlane.f32.xlu0 %v1775_v39 }
 0x21d   : > { %1779 = vadd.xlane.f32.xlu1 %v1778_v18  ;;  %1102 = vadd.xlane.f32.xlu0 %v1101_v14 }
 0x221   : > { %1782 = vadd.xlane.f32.xlu0 %v1781_v47 }
 0x229   : > { %v1106_v51 = vpop.xlane.xlu1 %1105 }
 0x22a   : > { %5347 = vrcp.f32 %v1106_v51 }
 0x22d   : > { %v1109_v55 = vpop.xlane.xlu0 %1108 }
 0x22e   : > { %v1112_v19 = vpop.xlane.xlu1 %1111  ;;  %5349 = vrcp.f32 %v1109_v55 }
 0x22f   : > { %5351 = vrcp.f32 %v1112_v19 }
 0x232   : > { %v1786_v38 = vpop.xlane.xlu1 %1785  ;;  %v1115_v22 = vpop.xlane.xlu0 %1114 }
 0x233   : > { %5353 = vrcp.f32 %v1786_v38 }
 0x234   : > { %5355 = vrcp.f32 %v1115_v22 }
 0x236   : > { %v6777_v53 = vpop.xlane.xlu1 %1791  ;;  %v6779_v7 = vpop.xlane.xlu0 %1788 }
 0x237   : > { %5357 = vrcp.f32 %v6777_v53  ;;  %v5348_v9 = vpop.eup %5347 }
 0x238   : > { %5359 = vrcp.f32 %v6779_v7  ;;  %v1168_v2 = vmul.f32 %v5348_v9, %v1106_v51 }
 0x23a   : > { %v6781_v50 = vpop.xlane.xlu1 %1117  ;;  %v6783_v36 = vpop.xlane.xlu0 %1794 }
 0x23b   : > { %5361 = vrcp.f32 %v6781_v50  ;;  %v5350_v49 = vpop.eup %5349 }
 0x23c   : > { %5363 = vrcp.f32 %v6783_v36  ;;  %v5352_v59 = vpop.eup %5351  ;;  %v1169_v34 = vmul.f32 %v5350_v49, %v1109_v55  ;;  %v1184_v55 = vsub.f32 2.0, %v1168_v2  ;;  %v6886_v2 = vsub.s32 %v6865_v56, %v6244_v1 }
 0x23d   : > { %v1170_v35 = vmul.f32 %v5352_v59, %v1112_v19 }
 0x23e   : > { %v6785_v12 = vpop.xlane.xlu1 %1797  ;;  %v6787_v31 = vpop.xlane.xlu0 %1120  ;;  %v1185_v19 = vsub.f32 2.0, %v1169_v34  ;;  %8952 = vst [vmem:[#allocation38_spill] sm:$0xff] %v6886_v2  ;;  %v1200_v17 = vmul.f32 %v5348_v9, %v1184_v55 }
 0x23f   : > { %5365 = vrcp.f32 %v6785_v12 }
 0x240   : > { %5367 = vrcp.f32 %v6787_v31  ;;  %v5354_v46 = vpop.eup %5353  ;;  %v1201_v6 = vmul.f32 %v5350_v49, %v1185_v19  ;;  %v6930_v55 = vmul.f32 0.25, %v1200_v17 }
 0x241   : > { %v5356_v3 = vpop.eup %5355  ;;  %v1848_v39 = vmul.f32 %v5354_v46, %v1786_v38 }
 0x242   : > { %v6789_v8 = vpop.xlane.xlu1 %1123  ;;  %v6791_v37 = vpop.xlane.xlu0 %1800  ;;  %v1171_v28 = vmul.f32 %v5356_v3, %v1115_v22  ;;  %v1186_v22 = vsub.f32 2.0, %v1170_v35 }
 0x243   : > { %5369 = vrcp.f32 %v6789_v8  ;;  %v1864_v42 = vsub.f32 2.0, %v1848_v39 }
 0x244   : > { %5371 = vrcp.f32 %v6791_v37  ;;  %v6854_v24 = vpop.eup %5357  ;;  %v1187_v32 = vsub.f32 2.0, %v1171_v28  ;;  %v1966_v28 = vadd.s32 4294967288, %v6865_v56 }
 0x245   : > { %v6861_v14 = vpop.eup %5359  ;;  %v1850_v23 = vmul.f32 %v6854_v24, %v6777_v53 }
 0x246   : > { %v6793_v30 = vpop.xlane.xlu1 %1803  ;;  %v6795_v43 = vpop.xlane.xlu0 %1126  ;;  %v1849_v35 = vmul.f32 %v6861_v14, %v6779_v7  ;;  %v1202_v7 = vmul.f32 %v5352_v59, %v1186_v22  ;;  %v6934_v22 = vmul.f32 0.25, %v1201_v6 }
 0x247   : > { %5373 = vrcp.f32 %v6793_v30 }
 0x248   : > { %5375 = vrcp.f32 %v6795_v43  ;;  %v6867_v47 = vpop.eup %5361  ;;  %v1865_v59 = vsub.f32 2.0, %v1849_v35  ;;  %v6932_v19 = vmul.f32 0.25, %v1202_v7 }
 0x249   : > { %v6870_v51 = vpop.eup %5363  ;;  %v1172_v39 = vmul.f32 %v6867_v47, %v6781_v50  ;;  %v1203_v50 = vmul.f32 %v5356_v3, %v1187_v32  ;;  %v6919_v32 = vsub.s32 %v1966_v28, %v6244_v1 }
 0x24a   : > { %v6797_v4 = vpop.xlane.xlu1 %1129  ;;  %v6799_v48 = vpop.xlane.xlu0 %1806  ;;  %v1851_v53 = vmul.f32 %v6870_v51, %v6783_v36  ;;  %v1881_v7 = vmul.f32 %v6861_v14, %v1865_v59 }
 0x24b   : > { %5377 = vrcp.f32 %v6797_v4  ;;  %8955 = vst [vmem:[#allocation41_spill] sm:$0xff] %v6919_v32  ;;  %v6944_v1 = vmul.f32 0.25, %v1203_v50 }
 0x24c   : > { %5379 = vrcp.f32 %v6799_v48  ;;  %v6872_v38 = vpop.eup %5365 }
 0x24d   : > { %v6879_v0 = vpop.eup %5367  ;;  %v1852_v36 = vmul.f32 %v6872_v38, %v6785_v12 }
 0x24e   : > { %v6801_v40 = vpop.xlane.xlu1 %1809  ;;  %v6803_v21 = vpop.xlane.xlu0 %1132  ;;  %v1173_v9 = vmul.f32 %v6879_v0, %v6787_v31 }
 0x24f   : > { %5381 = vrcp.f32 %v6801_v40 }
 0x250   : > { %5383 = vrcp.f32 %v6803_v21  ;;  %v6888_v34 = vpop.eup %5369 }
 0x251   : > { %v6896_v20 = vpop.eup %5371  ;;  %v1174_v12 = vmul.f32 %v6888_v34, %v6789_v8 }
 0x252   : > { %v6805_v58 = vpop.xlane.xlu1 %1135  ;;  %v6807_v41 = vpop.xlane.xlu0 %1812  ;;  %v1853_v31 = vmul.f32 %v6896_v20, %v6791_v37  ;;  %v1189_v37 = vsub.f32 2.0, %v1173_v9 }
 0x253   : > { %5385 = vrcp.f32 %v6805_v58  ;;  %v1190_v32 = vsub.f32 2.0, %v1174_v12 }
 0x254   : > { %5387 = vrcp.f32 %v6807_v41  ;;  %v6901_v5 = vpop.eup %5373 }
 0x255   : > { %v6908_v56 = vpop.eup %5375  ;;  %v1854_v6 = vmul.f32 %v6901_v5, %v6793_v30 }
 0x256   : > { %v6809_v60 = vpop.xlane.xlu1 %1815  ;;  %v6811_v15 = vpop.xlane.xlu0 %1138 }
 0x257   : > { %5389 = vrcp.f32 %v6809_v60 }
 0x258   : > { %5391 = vrcp.f32 %v6811_v15  ;;  %v6915_v49 = vpop.eup %5377 }
 0x25a   : > { %v6813_v11 = vpop.xlane.xlu1 %1141  ;;  %v6815_v54 = vpop.xlane.xlu0 %1818 }
 0x25b   : > { %5393 = vrcp.f32 %v6813_v11 }
 0x25c   : > { %5395 = vrcp.f32 %v6815_v54 }
 0x25e   : > { %v6817_v16 = vpop.xlane.xlu1 %1821  ;;  %v6819_v57 = vpop.xlane.xlu0 %1144 }
 0x25f   : > { %5397 = vrcp.f32 %v6817_v16 }
 0x260   : > { %5399 = vrcp.f32 %v6819_v57 }
 0x262   : > { %v6821_v63 = vpop.xlane.xlu1 %1147  ;;  %v6823_v44 = vpop.xlane.xlu0 %1824 }
 0x263   : > { %5401 = vrcp.f32 %v6821_v63 }
 0x264   : > { %5403 = vrcp.f32 %v6823_v44 }
 0x266   : > { %v6825_v61 = vpop.xlane.xlu1 %1827  ;;  %v6827_v25 = vpop.xlane.xlu0 %1150 }
 0x267   : > { %5405 = vrcp.f32 %v6825_v61 }
 0x268   : > { %5407 = vrcp.f32 %v6827_v25 }
 0x26a   : > { %v6831_v13 = vpop.xlane.xlu1 %1057  ;;  %v6833_v62 = vpop.xlane.xlu0 %1830 }
 0x26b   : > { %5409 = vrcp.f32 %v6833_v62 }
 0x26e   : > { %v6839_v45 = vpop.xlane.xlu1 %1063  ;;  %v6841_v10 = vpop.xlane.xlu0 %1060 }
 0x272   : > { %v6847_v33 = vpop.xlane.xlu1 %1737  ;;  %v6849_v27 = vpop.xlane.xlu0 %1066 }
 0x273   : > { %8948 = vst [vmem:[#allocation34_spill] sm:$0xff] %v6849_v27  ;;  %v1866_v27 = vsub.f32 2.0, %v1850_v23  ;;  %v1867_v23 = vsub.f32 2.0, %v1851_v53  ;;  %v1868_v53 = vsub.f32 2.0, %v1852_v36  ;;  %v1869_v36 = vsub.f32 2.0, %v1853_v31 }
 0x275   : > { %v1883_v9 = vmul.f32 %v6870_v51, %v1867_v23  ;;  %v1884_v51 = vmul.f32 %v6872_v38, %v1868_v53  ;;  %v1885_v38 = vmul.f32 %v6896_v20, %v1869_v36 }
 0x276   : > { %v6857_v52 = vpop.xlane.xlu1 %1743  ;;  %v6859_v18 = vpop.xlane.xlu0 %1740 }
 0x27a   : > { %v6875_v29 = vpop.xlane.xlu1 %1069  ;;  %v6877_v26 = vpop.xlane.xlu0 %1746 }
 0x27b   : > { %8950 = vst [vmem:[#allocation36_spill] sm:$0xff] %v6875_v29  ;;  %8951 = vst [vmem:[#allocation37_spill] sm:$0xff] %v6877_v26  ;;  %v1880_v29 = vmul.f32 %v5354_v46, %v1864_v42  ;;  %v1188_v42 = vsub.f32 2.0, %v1172_v39  ;;  %v6921_v46 = vpop.eup %5379 }
 0x27c   : > { %v6928_v3 = vpop.eup %5381  ;;  %v1855_v30 = vmul.f32 %v6921_v46, %v6799_v48  ;;  %v1205_v48 = vmul.f32 %v6879_v0, %v1189_v37 }
 0x27d   : > { %v6936_v35 = vmul.f32 0.25, %v1880_v29  ;;  %v6942_v8 = vpop.eup %5383  ;;  %v1175_v29 = vmul.f32 %v6908_v56, %v6795_v43  ;;  %v1204_v50 = vmul.f32 %v6867_v47, %v1188_v42  ;;  %v1856_v43 = vmul.f32 %v6928_v3, %v6801_v40 }
 0x27e   : > { %v6904_v26 = vpop.xlane.xlu1 %1749  ;;  %v6906_v2 = vpop.xlane.xlu0 %1072  ;;  %v1177_v47 = vmul.f32 %v6942_v8, %v6803_v21  ;;  %v1870_v40 = vsub.f32 2.0, %v1854_v6  ;;  %v6984_v21 = vmul.f32 0.25, %v1881_v7  ;;  %v1871_v37 = vsub.f32 2.0, %v1855_v30 }
 0x27f   : > { %8953 = vst [vmem:[#allocation39_spill] sm:$0xff] %v6904_v26  ;;  %8954 = vst [vmem:[#allocation40_spill] sm:$0xff] %v6906_v2  ;;  %v1882_v2 = vmul.f32 %v6854_v24, %v1866_v27  ;;  %v6947_v17 = vpop.eup %5385  ;;  %v1176_v27 = vmul.f32 %v6915_v49, %v6797_v4  ;;  %v1191_v23 = vsub.f32 2.0, %v1175_v29  ;;  %v1872_v6 = vsub.f32 2.0, %v1856_v43 }
 0x280   : > { %v1178_v4 = vmul.f32 %v6947_v17, %v6805_v58  ;;  %v1206_v58 = vmul.f32 %v6888_v34, %v1190_v32  ;;  %v6990_v29 = vmul.f32 0.25, %v1204_v50  ;;  %v7000_v34 = vmul.f32 0.25, %v1884_v51 }
 0x281   : > { %v1192_v0 = vsub.f32 2.0, %v1176_v27  ;;  %v7004_v36 = vmul.f32 0.25, %v1205_v48  ;;  %v1886_v50 = vmul.f32 %v6901_v5, %v1870_v40  ;;  %v1207_v27 = vmul.f32 %v6908_v56, %v1191_v23 }
 0x282   : > { %v6938_v39 = vpop.xlane.xlu1 %1075  ;;  %v6940_v28 = vpop.xlane.xlu0 %1752  ;;  %v1194_v7 = vsub.f32 2.0, %v1178_v4  ;;  %v7014_v4 = vmul.f32 0.25, %v1885_v38  ;;  %v1887_v5 = vmul.f32 %v6921_v46, %v1871_v37  ;;  %v1888_v56 = vmul.f32 %v6928_v3, %v1872_v6 }
 0x283   : > { %8956 = vst [vmem:[#allocation42_spill] sm:$0xff] %v6938_v39  ;;  %8957 = vst [vmem:[#allocation43_spill] sm:$0xff] %v6940_v28  ;;  %v5388_v39 = vpop.eup %5387  ;;  %v6998_v28 = vmul.f32 0.25, %v1883_v9  ;;  %v7012_v9 = vmul.f32 0.25, %v1206_v58  ;;  %v7033_v46 = vmul.f32 0.25, %v1886_v50  ;;  %v7035_v3 = vmul.f32 0.25, %v1207_v27 }
 0x284   : > { %v6968_v59 = vpop.eup %5389  ;;  %v1857_v12 = vmul.f32 %v5388_v39, %v6807_v41 }
 0x285   : > { %v6976_v42 = vpop.eup %5391  ;;  %v1858_v43 = vmul.f32 %v6968_v59, %v6809_v60 }
 0x286   : > { %v6964_v24 = vpop.xlane.xlu1 %1755  ;;  %v6966_v14 = vpop.xlane.xlu0 %1078  ;;  %v1873_v32 = vsub.f32 2.0, %v1857_v12  ;;  %v1208_v12 = vmul.f32 %v6915_v49, %v1192_v0 }
 0x287   : > { %8958 = vst [vmem:[#allocation44_spill] sm:$0xff] %v6964_v24  ;;  %8959 = vst [vmem:[#allocation45_spill] sm:$0xff] %v6966_v14  ;;  %v6980_v31 = vpop.eup %5393  ;;  %v6982_v14 = vmul.f32 0.25, %v1882_v2  ;;  %v1193_v2 = vsub.f32 2.0, %v1177_v47  ;;  %v1179_v47 = vmul.f32 %v6976_v42, %v6811_v15  ;;  %v1874_v37 = vsub.f32 2.0, %v1858_v43 }
 0x288   : > { %v6988_v53 = vpop.eup %5395  ;;  %v1180_v48 = vmul.f32 %v6980_v31, %v6813_v11  ;;  %v1210_v11 = vmul.f32 %v6947_v17, %v1194_v7  ;;  %v1889_v38 = vmul.f32 %v5388_v39, %v1873_v32  ;;  %v7041_v17 = vmul.f32 0.25, %v1888_v56 }
 0x289   : > { %v6996_v26 = vpop.eup %5397  ;;  %v1859_v15 = vmul.f32 %v6988_v53, %v6815_v54  ;;  %v1209_v58 = vmul.f32 %v6942_v8, %v1193_v2  ;;  %v1195_v6 = vsub.f32 2.0, %v1179_v47  ;;  %v1903_v8 = vmul.f32 0.25, %v1887_v5 }
 0x28a   : > { %v6992_v41 = vpop.xlane.xlu1 %1081  ;;  %v6994_v24 = vpop.xlane.xlu0 %1758  ;;  %v1860_v23 = vmul.f32 %v6996_v26, %v6817_v16  ;;  %v1196_v16 = vsub.f32 2.0, %v1180_v48  ;;  %v7049_v27 = vmul.f32 0.25, %v1210_v11  ;;  %v1912_v43 = vmul.f32 %v6936_v35, %v6847_v33 }
 0x28b   : > { %8960 = vst [vmem:[#allocation46_spill] sm:$0xff] %v6992_v41  ;;  %v7002_v20 = vpop.eup %5399  ;;  %v1875_v50 = vsub.f32 2.0, %v1859_v15  ;;  %v7047_v32 = vmul.f32 0.25, %v1209_v58  ;;  %v1905_v47 = vmul.f32 0.25, %v1889_v38  ;;  %v1890_v56 = vmul.f32 %v6968_v59, %v1874_v37  ;;  %v8963_v37 = vld [vmem:[#allocation34_spill] sm:$0xff] }
 0x28c   : > { %v5402_v30 = vpop.eup %5401  ;;  %v1181_v49 = vmul.f32 %v7002_v20, %v6819_v57  ;;  %v1876_v39 = vsub.f32 2.0, %v1860_v23  ;;  %v1232_v23 = vmul.f32 %v6930_v55, %v6831_v13  ;;  %v1914_v58 = vmul.f32 %v6982_v14, %v6857_v52 }
 0x28d   : > { %v5404_v51 = vpop.eup %5403  ;;  %v1182_v54 = vmul.f32 %v5402_v30, %v6821_v63  ;;  %v1212_v33 = vmul.f32 %v6980_v31, %v1196_v16  ;;  %v1234_v35 = vmul.f32 %v6932_v19, %v6839_v45  ;;  %v1913_v59 = vmul.f32 %v6984_v21, %v6859_v18 }
 0x28e   : > { %v7021_v40 = vpop.xlane.xlu1 %1761  ;;  %v7023_v60 = vpop.xlane.xlu0 %1084  ;;  %v1861_v41 = vmul.f32 %v5404_v51, %v6823_v44  ;;  %v1197_v63 = vsub.f32 2.0, %v1181_v49  ;;  %v7069_v55 = vadd.f32 %v1912_v43, %v1232_v23  ;;  %v1233_v14 = vmul.f32 %v6934_v22, %v6841_v10 }
 0x28f   : > { %8961 = vst [vmem:[#allocation47_spill] sm:$0xff] %v7023_v60  ;;  %v5406_v0 = vpop.eup %5405  ;;  %v7039_v60 = vmul.f32 0.25, %v1208_v12  ;;  %v1198_v12 = vsub.f32 2.0, %v1182_v54  ;;  %v1906_v31 = vmul.f32 0.25, %v1890_v56  ;;  %v7074_v38 = vadd.f32 %v1914_v58, %v1234_v35  ;;  %v8969_v35 = vld [vmem:[#allocation36_spill] sm:$0xff] }
 0x290   : > { %v5408_v7 = vpop.eup %5407  ;;  %v1862_v44 = vmul.f32 %v5406_v0, %v6825_v61  ;;  %v1877_v5 = vsub.f32 2.0, %v1861_v41  ;;  %v1213_v52 = vmul.f32 %v7002_v20, %v1197_v63  ;;  %v1228_v21 = vmul.f32 0.25, %v1212_v33 }
 0x291   : > { %v5410_v48 = vpop.eup %5409  ;;  %v1183_v15 = vmul.f32 %v5408_v7, %v6827_v25  ;;  %v1892_v25 = vmul.f32 %v6996_v26, %v1876_v39  ;;  %v1214_v49 = vmul.f32 %v5402_v30, %v1198_v12  ;;  %v8967_v12 = vld [vmem:[#allocation39_spill] sm:$0xff]  ;;  %v1919_v56 = vmul.f32 %v1903_v8, %v6994_v24 }
 0x292   : > { %v7043_v2 = vpop.xlane.xlu1 %1087  ;;  %v7045_v57 = vpop.xlane.xlu0 %1764  ;;  %v1878_v41 = vsub.f32 2.0, %v1862_v44  ;;  %v1863_v13 = vmul.f32 %v5410_v48, %v6833_v62  ;;  %v1893_v45 = vmul.f32 %v5404_v51, %v1877_v5  ;;  %v1235_v62 = vmul.f32 %v6944_v1, %v8963_v37  ;;  %v8965_v51 = vld [vmem:[#allocation37_spill] sm:$0xff] }
 0x293   : > { %8962 = vst [vmem:[#allocation48_spill] sm:$0xff] %v7043_v2  ;;  %v1211_v2 = vmul.f32 %v6976_v42, %v1195_v6  ;;  %v1891_v42 = vmul.f32 %v6988_v53, %v1875_v50  ;;  %v1199_v19 = vsub.f32 2.0, %v1183_v15  ;;  %v1929_v6 = vadd.f32 %v1913_v59, %v1233_v14  ;;  %v8964_v50 = vld [vmem:[#allocation38_spill] sm:$0xff]  ;;  %v8970_v59 = vld [vmem:[#allocation40_spill] sm:$0xff] }
 0x294   : > { %v1908_v16 = vmul.f32 0.25, %v1892_v25  ;;  %v1879_v20 = vsub.f32 2.0, %v1863_v13  ;;  %v1965_v10 = vrot.slane %v7069_v55, %v8964_v50  ;;  %v1229_v22 = vmul.f32 0.25, %v1213_v52  ;;  %v8973_v55 = vld [vmem:[#allocation42_spill] sm:$0xff] }
 0x295   : > { %v1227_v18 = vmul.f32 0.25, %v1211_v2  ;;  %v1907_v54 = vmul.f32 0.25, %v1891_v42  ;;  %v1894_v30 = vmul.f32 %v5406_v0, %v1878_v41  ;;  %v1915_v39 = vmul.f32 %v6998_v28, %v8965_v51  ;;  %v8966_v2 = vld [vmem:[#allocation43_spill] sm:$0xff]  ;;  %v8968_v0 = vld [vmem:[#allocation41_spill] sm:$0xff]  ;;  %v8971_v42 = vld [vmem:[#allocation44_spill] sm:$0xff] }
 0x296   : > { %v1768_v61 = vpop.xlane.xlu1 %1767  ;;  %v1091_v11 = vpop.xlane.xlu0 %1090  ;;  %v1917_v63 = vmul.f32 %v7014_v4, %v8966_v2  ;;  %v1230_v44 = vmul.f32 0.25, %v1214_v49  ;;  %v1909_v43 = vmul.f32 0.25, %v1893_v45  ;;  %v1976_v1 = vrot.slane %v7074_v38, %v8964_v50  ;;  %v8972_v41 = vld [vmem:[#allocation45_spill] sm:$0xff]  ;;  %v8974_v45 = vld [vmem:[#allocation47_spill] sm:$0xff] }
 0x297   : > { %v1916_v5 = vmul.f32 %v7000_v34, %v8967_v12  ;;  %v1215_v58 = vmul.f32 %v5408_v7, %v1199_v19  ;;  %v1970_v33 = vrot.slane %v1929_v6, %v8968_v0  ;;  %v1236_v28 = vmul.f32 %v6990_v29, %v8969_v35 }
 0x298   : > { %v1237_v4 = vmul.f32 %v7004_v36, %v8970_v59  ;;  %v1918_v25 = vmul.f32 %v7033_v46, %v8971_v42  ;;  %v1239_v13 = vmul.f32 %v7035_v3, %v8972_v41  ;;  %v1921_v34 = vmul.f32 %v1905_v47, %v7045_v57 }
 0x299   : > { %v1910_v24 = vmul.f32 0.25, %v1894_v30  ;;  %v1895_v8 = vmul.f32 %v5410_v48, %v1879_v20  ;;  %v1931_v7 = vadd.f32 %v1915_v39, %v1235_v62  ;;  %v1238_v52 = vmul.f32 %v7012_v9, %v8973_v55  ;;  %v8975_v62 = vld [vmem:[#allocation46_spill] sm:$0xff] }
 0x29a   : > { %v1094_v53 = vpop.xlane.xlu1 %1093  ;;  %v1771_v26 = vpop.xlane.xlu0 %1770  ;;  %v1933_v14 = vadd.f32 %v1917_v63, %v1237_v4  ;;  %v1932_v49 = vadd.f32 %v1916_v5, %v1236_v28  ;;  %v1935_v36 = vadd.f32 %v1919_v56, %v1239_v13  ;;  %v1920_v46 = vmul.f32 %v7041_v17, %v7021_v40  ;;  %v8976_v17 = vld [vmem:[#allocation48_spill] sm:$0xff] }
 0x29b   : > { %v1923_v29 = vmul.f32 %v1907_v54, %v1771_v26  ;;  %v1241_v3 = vmul.f32 %v7047_v32, %v8974_v45  ;;  %v1934_v47 = vadd.f32 %v1918_v25, %v1238_v52  ;;  %v1922_v48 = vmul.f32 %v1906_v31, %v1768_v61 }
 0x29c   : > { %v1243_v38 = vmul.f32 %v1227_v18, %v1091_v11  ;;  %v1240_v9 = vmul.f32 %v7039_v60, %v8975_v62  ;;  %v1980_v20 = vrot.slane %v1931_v7, %v8968_v0  ;;  %v1989_v40 = vrot.slane %v1933_v14, %v8968_v0 }
 0x29d   : > { %v1937_v26 = vadd.f32 %v1921_v34, %v1241_v3  ;;  %v1242_v32 = vmul.f32 %v7049_v27, %v8976_v17  ;;  %v1998_v51 = vrot.slane %v1935_v36, %v8968_v0  ;;  %v1244_v61 = vmul.f32 %v1228_v21, %v1094_v53  ;;  %v5804_v36 = vld [vmem:[%s6249_s24] sm:$0xff]  ;;  %s7961_s24 = sld [smem:[#allocation3 + $0x10]] }
 0x29e   : > { %v1774_v15 = vpop.xlane.xlu1 %1773  ;;  %v1097_v23 = vpop.xlane.xlu0 %1096  ;;  %v1939_v30 = vadd.f32 %v1923_v29, %v1243_v38  ;;  %v1936_v39 = vadd.f32 %v1920_v46, %v1240_v9  ;;  %v1972_v60 = vsel %vm1971_vm1, %v1970_v33, %v1965_v10  ;;  %v1985_v63 = vrot.slane %v1932_v49, %v8964_v50  ;;  %v2083_v9 = vld [vmem:[%s8800_s4] sm:$0xff] }
 0x29f   : > { %v1924_v6 = vmul.f32 %v1908_v16, %v1774_v15  ;;  %v1245_v54 = vmul.f32 %v1229_v22, %v1097_v23  ;;  %v1938_v2 = vadd.f32 %v1922_v48, %v1242_v32  ;;  %v1231_v22 = vmul.f32 0.25, %v1215_v58  ;;  %v5072_v32 = vld [vmem:[%s8799_s3] ss:$0 sm:$0xff] }
 0x2a0   : > { %v2007_v12 = vrot.slane %v1937_v26, %v8968_v0  ;;  %v1981_v5 = vsel %vm1971_vm1, %v1980_v20, %v1976_v1  ;;  %v2016_v56 = vrot.slane %v1939_v30, %v8968_v0  ;;  %v1911_v53 = vmul.f32 0.25, %v1895_v8 }
 0x2a1   : > { %v1940_v27 = vadd.f32 %v1924_v6, %v1244_v61  ;;  %v1990_v15 = vsel %vm1971_vm1, %v1989_v40, %v1985_v63  ;;  %v2003_v23 = vrot.slane %v1936_v39, %v8964_v50  ;;  %v2012_v35 = vrot.slane %v1938_v2, %v8964_v50  ;;  %v5071_v40 = vld [vmem:[%s8798_s2] ss:$0 sm:$0xff] }
 0x2a2   : > { %v1100_v19 = vpop.xlane.xlu1 %1099  ;;  %v1777_v57 = vpop.xlane.xlu0 %1776  ;;  %v2037_v1 = vsel %vm2036_vm2, %v1981_v5, %v1972_v60  ;;  %v8846_v62 = vmov 0.0   ;;  %v5073_v39 = vld [vmem:[#allocation4] ss:$0 sm:$0xff] }
 0x2a3   : > { %v1925_v37 = vmul.f32 %v1909_v43, %v1777_v57  ;;  %v1994_v43 = vrot.slane %v1934_v47, %v8964_v50  ;;  %v1246_v21 = vmul.f32 %v1230_v44, %v1100_v19  ;;  %v2008_v42 = vsel %vm1971_vm1, %v2007_v12, %v2003_v23  ;;  %5100 = vmatprep.subr.mxu0 %v8846_v62 }
 0x2a4   : > { %v2021_v44 = vrot.slane %v1940_v27, %v8964_v50  ;;  %v2039_v25 = vsel %vm2038_vm3, %v1990_v15, %v2037_v1  ;;  %v2017_v41 = vsel %vm1971_vm1, %v2016_v56, %v2012_v35  ;;  %5104 = vmatprep.mubr.msk.f32.mxu0 %vm6027_vm9, %v8846_v62  ;;  %5107 = vmatprep.subr.mxu1 %v8846_v62  ;;  %v5076_v15 = vld [vmem:[#allocation9] ss:$0 sm:$0xff]  ;;  %v2197_v23 = vstv %s5059_s28 }
 0x2a5   : > { %v1941_v11 = vadd.f32 %v1925_v37, %v1245_v54  ;;  %v1999_v10 = vsel %vm1971_vm1, %v1998_v51, %v1994_v43  ;;  %v2084_v37 = vld [vmem:[%s8800_s4 + $0x8] sm:$0xff]  ;;  %5115 = vmatprep.mubr.msk.f32.mxu1 %vm6027_vm9, %v8846_v62  ;;  %v2199_v35 = vstv %s5060_s20 }
 0x2a6   : > { %v1780_v31 = vpop.xlane.xlu1 %1779  ;;  %v1103_v18 = vpop.xlane.xlu0 %1102  ;;  %v2041_v34 = vsel %vm2040_vm4, %v1999_v10, %v2039_v25  ;;  %5101 = vmatpush3.msra.mxu0 %v2084_v37 }
 0x2a7   : > { %v1926_v16 = vmul.f32 %v1910_v24, %v1780_v31  ;;  %v2025_v58 = vrot.slane %v1941_v11, %v8968_v0  ;;  %v1247_v59 = vmul.f32 %v1231_v22, %v1103_v18  ;;  %v2043_v55 = vsel %vm2042_vm5, %v2008_v42, %v2041_v34  ;;  %5102 = vmatprep.subr.mxu0 %v8846_v62  ;;  %v8978_v42 = vld [vmem:[#allocation25_spill] sm:$0xff] }
 0x2a8   : > { %v2045_v52 = vsel %vm2044_vm6, %v2017_v41, %v2043_v55  ;;  %5103 = vmatpush3.msra.mxu0 %v2083_v9  ;;  %v2201_v9 = vstv %s5061_s0 }
 0x2a9   : > { %v1942_v28 = vadd.f32 %v1926_v16, %v1246_v21  ;;  %v2026_v24 = vsel %vm1971_vm1, %v2025_v58, %v2021_v44  ;;  %5118 = vmatprep.subr.mxu0 %v8846_v62  ;;  %v5075_v21 = vld [vmem:[#allocation7] ss:$0 sm:$0xff]  ;;  %v3341_v58 = vstv %s5065_s26  ;;  %s9117_s26 = sld [smem:[#allocation59_spill]] }
 0x2aa   : > { %v1783_v33 = vpop.xlane.xlu0 %1782  ;;  %v2047_v29 = vsel %vm2046_vm7, %v2026_v24, %v2045_v52  ;;  %v8981_v52 = vld [vmem:[#allocation28_spill] sm:$0xff] }
 0x2ab   : > { %v1927_v4 = vmul.f32 %v1911_v53, %v1783_v33  ;;  %v2030_v8 = vrot.slane %v1942_v28, %v8964_v50 }
 0x2ad   : > { %v1943_v13 = vadd.f32 %v1927_v4, %v1247_v59  ;;  %v3343_v4 = vstv %s5066_s30 }
 0x2af   : > { %v2034_v7 = vrot.slane %v1943_v13, %v8968_v0  ;;  %v8979_v13 = vld [vmem:[#allocation26_spill] sm:$0xff]  ;;  %s9118_s20 = smov %s9117_s26 }
 0x2b1   : > { %v2035_v14 = vsel %vm1971_vm1, %v2034_v7, %v2030_v8  ;;  %v8980_v8 = vld [vmem:[#allocation27_spill] sm:$0xff] }
 0x2b2   : > { %v2049_v49 = vsel %vm2048_vm8, %v2035_v14, %v2047_v29 }
 0x2b3   : > { %v2051_v46 = vadd.f32 %v5804_v36, %v2049_v49  ;;  %v8982_v49 = vld [vmem:[#allocation29_spill] sm:$0xff] }
 0x2b5   : > { %v2052_v45 = vmax.f32 %v2051_v46, 0.0 }
 0x2b7   : > { %v2055_v3 = vsel %vm853_vm0, %v2052_v45, 0.0 }
 0x2b8   : > { %2056 = vadd.xlane.f32.xlu1 %v2055_v3 }
 0x341   : > { %v2057_v19 = vpop.xlane.xlu1 %2056 }
 0x342   : > { %v2059_v57 = vmul.f32 0.0625, %v2057_v19 }
 0x344   : > { %v2060_v47 = vsub.f32 %v2052_v45, %v2059_v57  ;;  %v8983_v45 = vld [vmem:[#allocation30_spill] sm:$0xff]  ;;  %v8984_v57 = vld [vmem:[#allocation31_spill] sm:$0xff] }
 0x346   : > { %v2061_v48 = vmul.f32 %v2060_v47, %v2060_v47 }
 0x348   : > { %v2062_v38 = vsel %vm853_vm0, %v2061_v48, 0.0 }
 0x349   : > { %2063 = vadd.xlane.f32.xlu0 %v2062_v38  ;;  %v8985_v38 = vld [vmem:[#allocation32_spill] sm:$0xff] }
 0x3d2   : > { %v2064_v26 = vpop.xlane.xlu0 %2063 }
 0x3d3   : > { %v2065_v6 = vmul.f32 0.0625, %v2064_v26 }
 0x3d5   : > { %v2066_v54 = vadd.f32 1e-05, %v2065_v6  ;;  %v2203_v6 = vstv %s5062_s21 }
 0x3d7   : > { %5411 = vrsqrt.f32 %v2066_v54 }
 0x3e4   : > { %v5412_v20 = vpop.eup %5411 }
 0x3e5   : > { %v2068_v17 = vmul.f32 %v5412_v20, %v2060_v47 }
 0x3e7   : > { %v2075_v30 = vmul.f32 %v5071_v40, %v2068_v17  ;;  %v8986_v40 = vld [vmem:[#allocation33_spill] sm:$0xff] }
 0x3e9   : > { %v2082_v51 = vadd.f32 %v5072_v32, %v2075_v30  ;;  %v3345_v32 = vstv %s5067_s23 }
 0x3eb   : > { %5105 = vmatmul.mubr.msk.f32.vlgmr.msra.gmra.mxu0 %vm853_vm0, %v2082_v51 }
 0x3ec   : > { %5122 = vmatprep.mubr.msk.f32.mxu0 %vm6027_vm9, %v8846_v62 }
 0x4ab   : > { %v2161_v61 = vpop.f32.mrf.mxu0 }
 0x4ac   : > { %v2162_v11 = vadd.f32 %v5073_v39, %v2161_v61 }
 0x4ad   : > { %v5106_v31 = vpop.f32.mrf.mxu0 }
 0x4ae   : > { %v2165_v18 = vmax.f32 %v2162_v11, 0.0  ;;  %v3347_v31 = vstv %s5068_s29  ;;  %s551_s29 = sand.u32 1, %s6009_s25  }
 0x4af   : > { %s4910_s21 = scalar_lea.sflag [#allocation6], %s551_s29 }
 0x4b0   : > { %v2169_v60 = vsel %vm2168_vm10, %v2165_v18, 0.0 }
 0x4b1   : > { %2170 = vadd.xlane.f32.xlu1 %v2169_v60 }
 0x53a   : > { %v2171_v2 = vpop.xlane.xlu1 %2170 }
 0x53b   : > { %v2173_v16 = vmul.f32 0.03125, %v2171_v2 }
 0x53d   : > { %v2174_v22 = vsub.f32 %v2165_v18, %v2173_v16 }
 0x53f   : > { %v2175_v63 = vmul.f32 %v2174_v22, %v2174_v22 }
 0x541   : > { %v2176_v43 = vsel %vm2168_vm10, %v2175_v63, 0.0 }
 0x542   : > { %2177 = vadd.xlane.f32.xlu0 %v2176_v43 }
 0x5cb   : > { %v2178_v12 = vpop.xlane.xlu0 %2177 }
 0x5cc   : > { %v2179_v27 = vmul.f32 0.03125, %v2178_v12 }
 0x5ce   : > { %v2180_v5 = vadd.f32 1e-05, %v2179_v27 }
 0x5d0   : > { %5413 = vrsqrt.f32 %v2180_v5 }
 0x5dd   : > { %v5414_v56 = vpop.eup %5413 }
 0x5de   : > { %v2182_v53 = vmul.f32 %v5414_v56, %v2174_v22 }
 0x5e0   : > { %v2189_v10 = vmul.f32 %v5075_v21, %v2182_v53 }
 0x5e2   : > { %v7165_v33 = vadd.f32 %v5076_v15, %v2189_v10 }
 0x5e4   : > { %8977 = vst [vmem:[#allocation34_spill] sm:$0xff] %v7165_v33  ;;  %v2198_v28 = vmul.f32 %v2197_v23, %v7165_v33  ;;  %v3342_v59 = vmul.f32 %v3341_v58, %v7165_v33  ;;  %v2202_v26 = vmul.f32 %v2201_v9, %v7165_v33  ;;  %v3346_v61 = vmul.f32 %v3345_v32, %v7165_v33 }
 0x5e6   : > { %v7169_v1 = vadd.f32 %v2199_v35, %v2198_v28  ;;  %v7173_v25 = vadd.f32 %v3343_v4, %v3342_v59  ;;  %v7206_v20 = vadd.f32 %v2203_v6, %v2202_v26  ;;  %v7215_v16 = vadd.f32 %v3347_v31, %v3346_v61 }
 0x5e8   : > { %v2262_v44 = vrot.slane %v7169_v1, %v8978_v42  ;;  %v3406_v41 = vrot.slane %v7173_v25, %v8978_v42  ;;  %v2281_v34 = vrot.slane %v7169_v1, %v8979_v13  ;;  %v3425_v24 = vrot.slane %v7173_v25, %v8979_v13 }
 0x5e9   : > { %v2300_v7 = vrot.slane %v7169_v1, %v8980_v8  ;;  %v3444_v55 = vrot.slane %v7173_v25, %v8980_v8  ;;  %v2319_v14 = vrot.slane %v7169_v1, %v8981_v52  ;;  %v3463_v29 = vrot.slane %v7173_v25, %v8981_v52 }
 0x5ea   : > { %2268 = vbcast.lane.b32.xlu0 %v2262_v44, 264  ;;  %2264 = vbcast.lane.b32.xlu1 %v2262_v44, 256  ;;  %v2338_v36 = vrot.slane %v7169_v1, %v8982_v49  ;;  %v3482_v46 = vrot.slane %v7173_v25, %v8982_v49  ;;  %v2357_v3 = vrot.slane %v7169_v1, %v8983_v45 }
 0x5eb   : > { %v3501_v19 = vrot.slane %v7173_v25, %v8983_v45  ;;  %v2376_v47 = vrot.slane %v7169_v1, %v8984_v57  ;;  %v3520_v48 = vrot.slane %v7173_v25, %v8984_v57  ;;  %v2395_v37 = vrot.slane %v7169_v1, %v8985_v38 }
 0x5ec   : > { %v3539_v54 = vrot.slane %v7173_v25, %v8985_v38  ;;  %v2217_v17 = vrot.slane %v7206_v20, %v8986_v40  ;;  %v3361_v27 = vrot.slane %v7215_v16, %v8986_v40 }
 0x5ee   : > { %3408 = vbcast.lane.b32.xlu0 %v3406_v41, 256  ;;  %2283 = vbcast.lane.b32.xlu1 %v2281_v34, 256  ;;  %v2233_v39 = vrot.slane %v2217_v17, %v8986_v40  ;;  %v2225_v11 = vcombine.high %v2217_v17, %v2217_v17  ;;  %v7229_v10 = vrot.slane %v3361_v27, %v8986_v40 }
 0x5ef   : > { %v3369_v23 = vcombine.high %v3361_v27, %v3361_v27 }
 0x5f0   : > { %v7213_v2 = vrot.slane %v2233_v39, %v8978_v42  ;;  %v7218_v22 = vrot.slane %v2225_v11, %v8986_v40  ;;  %v7236_v1 = vrot.slane %v7229_v10, %v8978_v42  ;;  %v3399_v31 = vcombine.high %v7229_v10, %v7229_v10 }
 0x5f1   : > { %v7240_v25 = vrot.slane %v3369_v23, %v8986_v40 }
 0x5f2   : > { %3427 = vbcast.lane.b32.xlu0 %v3425_v24, 256  ;;  %2287 = vbcast.lane.b32.xlu1 %v2281_v34, 264  ;;  %v7225_v5 = vrot.slane %v7218_v22, %v8978_v42  ;;  %v7278_v10 = vrot.slane %v3399_v31, %v8978_v42 }
 0x5f6   : > { %2272 = vbcast.lane.b32.xlu0 %v2262_v44, 272  ;;  %3412 = vbcast.lane.b32.xlu1 %v3406_v41, 264 }
 0x5fa   : > { %2302 = vbcast.lane.b32.xlu0 %v2300_v7, 256  ;;  %3431 = vbcast.lane.b32.xlu1 %v3425_v24, 264 }
 0x5fe   : > { %3416 = vbcast.lane.b32.xlu0 %v3406_v41, 272  ;;  %2291 = vbcast.lane.b32.xlu1 %v2281_v34, 272 }
 0x602   : > { %3446 = vbcast.lane.b32.xlu0 %v3444_v55, 256  ;;  %2306 = vbcast.lane.b32.xlu1 %v2300_v7, 264 }
 0x606   : > { %2276 = vbcast.lane.b32.xlu0 %v2262_v44, 280  ;;  %3435 = vbcast.lane.b32.xlu1 %v3425_v24, 272 }
 0x60a   : > { %2310 = vbcast.lane.b32.xlu0 %v2300_v7, 272  ;;  %3450 = vbcast.lane.b32.xlu1 %v3444_v55, 264 }
 0x60e   : > { %2325 = vbcast.lane.b32.xlu0 %v2319_v14, 264  ;;  %2295 = vbcast.lane.b32.xlu1 %v2281_v34, 280 }
 0x612   : > { %3439 = vbcast.lane.b32.xlu0 %v3425_v24, 280  ;;  %2321 = vbcast.lane.b32.xlu1 %v2319_v14, 256 }
 0x616   : > { %3465 = vbcast.lane.b32.xlu0 %v3463_v29, 256  ;;  %3420 = vbcast.lane.b32.xlu1 %v3406_v41, 280 }
 0x61a   : > { %2314 = vbcast.lane.b32.xlu0 %v2300_v7, 280  ;;  %3454 = vbcast.lane.b32.xlu1 %v3444_v55, 272 }
 0x61e   : > { %2340 = vbcast.lane.b32.xlu0 %v2338_v36, 256  ;;  %3469 = vbcast.lane.b32.xlu1 %v3463_v29, 264 }
 0x622   : > { %3458 = vbcast.lane.b32.xlu0 %v3444_v55, 280  ;;  %2329 = vbcast.lane.b32.xlu1 %v2319_v14, 272  ;;  %v7247_v55 = vrot.slane %v7240_v25, %v8978_v42 }
 0x626   : > { %3484 = vbcast.lane.b32.xlu0 %v3482_v46, 256  ;;  %2344 = vbcast.lane.b32.xlu1 %v2338_v36, 264 }
 0x62a   : > { %2333 = vbcast.lane.b32.xlu0 %v2319_v14, 280  ;;  %3473 = vbcast.lane.b32.xlu1 %v3463_v29, 272 }
 0x62e   : > { %2359 = vbcast.lane.b32.xlu0 %v2357_v3, 256  ;;  %3488 = vbcast.lane.b32.xlu1 %v3482_v46, 264 }
 0x632   : > { %3477 = vbcast.lane.b32.xlu0 %v3463_v29, 280  ;;  %2348 = vbcast.lane.b32.xlu1 %v2338_v36, 272 }
 0x636   : > { %3503 = vbcast.lane.b32.xlu0 %v3501_v19, 256  ;;  %2363 = vbcast.lane.b32.xlu1 %v2357_v3, 264 }
 0x63a   : > { %2352 = vbcast.lane.b32.xlu0 %v2338_v36, 280  ;;  %3492 = vbcast.lane.b32.xlu1 %v3482_v46, 272 }
 0x63e   : > { %2378 = vbcast.lane.b32.xlu0 %v2376_v47, 256  ;;  %3507 = vbcast.lane.b32.xlu1 %v3501_v19, 264 }
 0x642   : > { %3496 = vbcast.lane.b32.xlu0 %v3482_v46, 280  ;;  %2367 = vbcast.lane.b32.xlu1 %v2357_v3, 272 }
 0x646   : > { %3522 = vbcast.lane.b32.xlu0 %v3520_v48, 256  ;;  %2382 = vbcast.lane.b32.xlu1 %v2376_v47, 264 }
 0x64a   : > { %2371 = vbcast.lane.b32.xlu0 %v2357_v3, 280  ;;  %3511 = vbcast.lane.b32.xlu1 %v3501_v19, 272  ;;  %v2255_v3 = vcombine.high %v2233_v39, %v2233_v39 }
 0x64c   : > { %v7258_v26 = vrot.slane %v2255_v3, %v8978_v42 }
 0x64e   : > { %2397 = vbcast.lane.b32.xlu0 %v2395_v37, 256  ;;  %3526 = vbcast.lane.b32.xlu1 %v3520_v48, 264 }
 0x652   : > { %3515 = vbcast.lane.b32.xlu0 %v3501_v19, 280  ;;  %2386 = vbcast.lane.b32.xlu1 %v2376_v47, 272 }
 0x656   : > { %3541 = vbcast.lane.b32.xlu0 %v3539_v54, 256  ;;  %2401 = vbcast.lane.b32.xlu1 %v2395_v37, 264 }
 0x65a   : > { %2390 = vbcast.lane.b32.xlu0 %v2376_v47, 280  ;;  %3530 = vbcast.lane.b32.xlu1 %v3520_v48, 272 }
 0x65c   : > { %v2269_v30 = vpop.permute.xlu0 %2268  ;;  %v2265_v51 = vpop.permute.xlu1 %2264 }
 0x65d   : > { %v2451_v63 = vsub.f32 %v7213_v2, %v2265_v51  ;;  %v2452_v44 = vsub.f32 %v7213_v2, %v2269_v30 }
 0x65e   : > { %3534 = vbcast.lane.b32.xlu0 %v3520_v48, 280  ;;  %3545 = vbcast.lane.b32.xlu1 %v3539_v54, 264 }
 0x65f   : > { %v2483_v56 = vand.u32 2147483647, %v2451_v63  ;;  %v2484_v7 = vand.u32 2147483647, %v2452_v44 }
 0x660   : > { %v3409_v18 = vpop.permute.xlu0 %3408  ;;  %v2284_v60 = vpop.permute.xlu1 %2283 }
 0x661   : > { %v2455_v21 = vsub.f32 %v7225_v5, %v2284_v60  ;;  %v2515_v58 = vadd.f32 1e-08, %v2483_v56  ;;  %v3595_v52 = vsub.f32 %v7236_v1, %v3409_v18  ;;  %v2516_v45 = vadd.f32 1e-08, %v2484_v7 }
 0x662   : > { %2409 = vbcast.lane.b32.xlu0 %v2395_v37, 280  ;;  %2405 = vbcast.lane.b32.xlu1 %v2395_v37, 272 }
 0x663   : > { %v2487_v35 = vand.u32 2147483647, %v2455_v21  ;;  %5415 = vrcp.f32 %v2515_v58  ;;  %v3627_v19 = vand.u32 2147483647, %v3595_v52 }
 0x664   : > { %v3428_v43 = vpop.permute.xlu0 %3427  ;;  %v2288_v12 = vpop.permute.xlu1 %2287 }
 0x665   : > { %v2456_v28 = vsub.f32 %v7225_v5, %v2288_v12  ;;  %v2519_v41 = vadd.f32 1e-08, %v2487_v35  ;;  %v3599_v9 = vsub.f32 %v7247_v55, %v3428_v43  ;;  %v3659_v6 = vadd.f32 1e-08, %v3627_v19 }
 0x666   : > { %3549 = vbcast.lane.b32.xlu1 %v3539_v54, 272 }
 0x667   : > { %v2488_v13 = vand.u32 2147483647, %v2456_v28  ;;  %5417 = vrcp.f32 %v2519_v41  ;;  %v3631_v61 = vand.u32 2147483647, %v3599_v9 }
 0x668   : > { %v2273_v53 = vpop.permute.xlu0 %2272  ;;  %v3413_v15 = vpop.permute.xlu1 %3412 }
 0x669   : > { %v3596_v34 = vsub.f32 %v7236_v1, %v3413_v15  ;;  %v2520_v14 = vadd.f32 1e-08, %v2488_v13  ;;  %v2453_v11 = vsub.f32 %v7213_v2, %v2273_v53  ;;  %v3663_v21 = vadd.f32 1e-08, %v3631_v61 }
 0x66a   : > { %3553 = vbcast.lane.b32.xlu1 %v3539_v54, 280 }
 0x66b   : > { %v3628_v29 = vand.u32 2147483647, %v3596_v34  ;;  %5419 = vrcp.f32 %v2520_v14  ;;  %v2485_v15 = vand.u32 2147483647, %v2453_v11  ;;  %v3401_v11 = vcombine.high %v7240_v25, %v7240_v25 }
 0x66c   : > { %v7232_v59 = vpop.permute.xlu0 %2302  ;;  %v3432_v4 = vpop.permute.xlu1 %3431  ;;  %5421 = vrcp.f32 %v2516_v45 }
 0x66d   : > { %v3600_v49 = vsub.f32 %v7247_v55, %v3432_v4  ;;  %v3660_v57 = vadd.f32 1e-08, %v3628_v29  ;;  %v2459_v53 = vsub.f32 %v7258_v26, %v7232_v59  ;;  %v2517_v13 = vadd.f32 1e-08, %v2485_v15 }
 0x66f   : > { %v3632_v47 = vand.u32 2147483647, %v3600_v49  ;;  %5423 = vrcp.f32 %v3660_v57  ;;  %v2491_v59 = vand.u32 2147483647, %v2459_v53 }
 0x670   : > { %v7243_v24 = vpop.permute.xlu0 %3416  ;;  %v2292_v8 = vpop.permute.xlu1 %2291  ;;  %5425 = vrcp.f32 %v3659_v6 }
 0x671   : > { %v2457_v48 = vsub.f32 %v7225_v5, %v2292_v8  ;;  %v7260_v54 = vpop.eup %5415  ;;  %v3664_v17 = vadd.f32 1e-08, %v3632_v47  ;;  %v3597_v34 = vsub.f32 %v7236_v1, %v7243_v24  ;;  %v2257_v8 = vcombine.high %v7218_v22, %v7218_v22 }
 0x672   : > { %v2611_v18 = vsel %vm2168_vm10, %v7260_v54, -inf  ;;  %v2523_v24 = vadd.f32 1e-08, %v2491_v59 }
 0x673   : > { %v2489_v32 = vand.u32 2147483647, %v2457_v48  ;;  %5427 = vrcp.f32 %v3664_v17  ;;  %v3629_v19 = vand.u32 2147483647, %v3597_v34  ;;  %v7303_v57 = vrot.slane %v2257_v8, %v8978_v42 }
 0x674   : > { %v7251_v36 = vpop.permute.xlu0 %3446  ;;  %v2307_v46 = vpop.permute.xlu1 %2306 }
 0x675   : > { %v2460_v30 = vsub.f32 %v7258_v26, %v2307_v46  ;;  %v7270_v60 = vpop.eup %5417  ;;  %v2521_v63 = vadd.f32 1e-08, %v2489_v32  ;;  %v3603_v22 = vsub.f32 %v7278_v10, %v7251_v36 }
 0x676   : > { %v2623_v23 = vsel %vm2168_vm10, %v7270_v60, -inf }
 0x677   : > { %v2492_v43 = vand.u32 2147483647, %v2460_v30  ;;  %5429 = vrcp.f32 %v2521_v63  ;;  %v3661_v30 = vadd.f32 1e-08, %v3629_v19 }
 0x678   : > { %v7254_v38 = vpop.permute.xlu0 %2276  ;;  %v3436_v37 = vpop.permute.xlu1 %3435  ;;  %5431 = vrcp.f32 %v3663_v21 }
 0x679   : > { %v3601_v12 = vsub.f32 %v7247_v55, %v3436_v37  ;;  %v7282_v58 = vpop.eup %5419  ;;  %v2524_v35 = vadd.f32 1e-08, %v2492_v43  ;;  %v2454_v61 = vsub.f32 %v7213_v2, %v7254_v38 }
 0x67a   : > { %v7291_v7 = vpop.eup %5421  ;;  %v2626_v52 = vsel %vm2168_vm10, %v7282_v58, -inf }
 0x67b   : > { %v3633_v28 = vand.u32 2147483647, %v3601_v12  ;;  %5433 = vrcp.f32 %v2524_v35  ;;  %v2614_v48 = vsel %vm2168_vm10, %v7291_v7, -inf  ;;  %v2486_v15 = vand.u32 2147483647, %v2454_v61 }
 0x67c   : > { %v7263_v51 = vpop.permute.xlu0 %2310  ;;  %v3451_v39 = vpop.permute.xlu1 %3450  ;;  %5435 = vrcp.f32 %v2517_v13 }
 0x67d   : > { %v3604_v4 = vsub.f32 %v7278_v10, %v3451_v39  ;;  %v7295_v14 = vpop.eup %5423  ;;  %v3665_v29 = vadd.f32 1e-08, %v3633_v28  ;;  %v3635_v39 = vand.u32 2147483647, %v3603_v22 }
 0x67e   : > { %v3758_v47 = vsel %vm2168_vm10, %v7295_v14, -inf }
 0x67f   : > { %v3636_v49 = vand.u32 2147483647, %v3604_v4  ;;  %5437 = vrcp.f32 %v3665_v29  ;;  %v3667_v38 = vadd.f32 1e-08, %v3635_v39 }
 0x680   : > { %v7273_v27 = vpop.permute.xlu0 %2325  ;;  %v2296_v56 = vpop.permute.xlu1 %2295  ;;  %5439 = vrcp.f32 %v2523_v24 }
 0x681   : > { %2612 = vmax.xlane.f32.xlu0 %v2611_v18  ;;  %v2458_v46 = vsub.f32 %v7225_v5, %v2296_v56  ;;  %v7309_v5 = vpop.eup %5425  ;;  %v3668_v37 = vadd.f32 1e-08, %v3636_v49  ;;  %v2464_v53 = vsub.f32 %v7303_v57, %v7273_v27  ;;  %v2518_v27 = vadd.f32 1e-08, %v2486_v15 }
 0x682   : > { %v7314_v32 = vpop.eup %5427  ;;  %v3755_v18 = vsel %vm2168_vm10, %v7309_v5, -inf }
 0x683   : > { %v2490_v9 = vand.u32 2147483647, %v2458_v46  ;;  %5441 = vrcp.f32 %v3668_v37  ;;  %v3770_v21 = vsel %vm2168_vm10, %v7314_v32, -inf  ;;  %v2496_v29 = vand.u32 2147483647, %v2464_v53 }
 0x684   : > { %v7285_v44 = vpop.permute.xlu0 %3439  ;;  %v2322_v41 = vpop.permute.xlu1 %2321  ;;  %5443 = vrcp.f32 %v3661_v30 }
 0x685   : > { %2624 = vmax.xlane.f32.xlu0 %v2623_v23  ;;  %v2463_v6 = vsub.f32 %v7303_v57, %v2322_v41  ;;  %v2522_v63 = vadd.f32 1e-08, %v2490_v9  ;;  %v7327_v2 = vpop.eup %5429  ;;  %v2210_v23 = vcombine.high %v7206_v20, %v7206_v20  ;;  %v7339_v41 = vrot.slane %v3401_v11, %v8978_v42 }
 0x686   : > { %v7331_v25 = vpop.eup %5431  ;;  %v2629_v59 = vsel %vm2168_vm10, %v7327_v2, -inf  ;;  %v3602_v49 = vsub.f32 %v7247_v55, %v7285_v44  ;;  %v3354_v55 = vcombine.high %v7215_v16, %v7215_v16 }
 0x687   : > { %v2495_v43 = vand.u32 2147483647, %v2463_v6  ;;  %5445 = vrcp.f32 %v2522_v63  ;;  %v3767_v8 = vsel %vm2168_vm10, %v7331_v25, -inf  ;;  %v7354_v46 = vrot.slane %v2210_v23, %v8986_v40 }
 0x688   : > { %v7298_v45 = vpop.permute.xlu0 %3465  ;;  %v3421_v3 = vpop.permute.xlu1 %3420  ;;  %5447 = vrcp.f32 %v3667_v38  ;;  %v3634_v30 = vand.u32 2147483647, %v3602_v49 }
 0x689   : > { %2627 = vmax.xlane.f32.xlu0 %v2626_v52  ;;  %v3598_v31 = vsub.f32 %v7236_v1, %v3421_v3  ;;  %v2461_v1 = vsub.f32 %v7258_v26, %v7263_v51  ;;  %v2527_v4 = vadd.f32 1e-08, %v2495_v43  ;;  %v7345_v34 = vpop.eup %5433  ;;  %v3607_v39 = vsub.f32 %v7339_v41, %v7298_v45 }
 0x68a   : > { %v7349_v52 = vpop.eup %5435  ;;  %v7373_v61 = vrot.slane %v7354_v46, %v8986_v40  ;;  %v7383_v45 = vrot.slane %v3354_v55, %v8986_v40  ;;  %v3666_v15 = vadd.f32 1e-08, %v3634_v30 }
 0x68b   : > { %v3630_v35 = vand.u32 2147483647, %v3598_v31  ;;  %v2493_v20 = vand.u32 2147483647, %v2461_v1  ;;  %5449 = vrcp.f32 %v2527_v4  ;;  %v2617_v44 = vsel %vm2168_vm10, %v7349_v52, -inf }
 0x68c   : > { %v7312_v17 = vpop.permute.xlu0 %2314  ;;  %v3455_v36 = vpop.permute.xlu1 %3454  ;;  %5451 = vrcp.f32 %v2518_v27  ;;  %v3639_v1 = vand.u32 2147483647, %v3607_v39  ;;  %v7391_v53 = vrot.slane %v7373_v61, %v8978_v42 }
 0x68d   : > { %3759 = vmax.xlane.f32.xlu0 %v3758_v47  ;;  %v3605_v28 = vsub.f32 %v7278_v10, %v3455_v36  ;;  %v3662_v3 = vadd.f32 1e-08, %v3630_v35  ;;  %v7361_v37 = vpop.eup %5437  ;;  %v2525_v9 = vadd.f32 1e-08, %v2493_v20  ;;  %v2528_v36 = vadd.f32 1e-08, %v2496_v29 }
 0x68e   : > { %2615 = vmax.xlane.f32.xlu1 %v2614_v48  ;;  %v2638_v48 = vsel %vm2168_vm10, %v7345_v34, -inf  ;;  %v7367_v6 = vpop.eup %5439  ;;  %v3773_v43 = vsel %vm2168_vm10, %v7361_v37, -inf  ;;  %v2462_v23 = vsub.f32 %v7258_v26, %v7312_v17  ;;  %v3671_v26 = vadd.f32 1e-08, %v3639_v1 }
 0x68f   : > { %v3637_v24 = vand.u32 2147483647, %v3605_v28  ;;  %5453 = vrcp.f32 %v3662_v3  ;;  %v7408_v17 = vrot.slane %v7383_v45, %v8986_v40 }
 0x690   : > { %v7323_v12 = vpop.permute.xlu0 %2340  ;;  %v3470_v56 = vpop.permute.xlu1 %3469  ;;  %5455 = vrcp.f32 %v2525_v9  ;;  %v2494_v49 = vand.u32 2147483647, %v2462_v23 }
 0x691   : > { %3771 = vmax.xlane.f32.xlu0 %v3770_v21  ;;  %v3608_v19 = vsub.f32 %v7339_v41, %v3470_v56  ;;  %v3669_v11 = vadd.f32 1e-08, %v3637_v24  ;;  %v7380_v56 = vpop.eup %5441  ;;  %v2635_v21 = vsel %vm2168_vm10, %v7367_v6, -inf  ;;  %5457 = vrcp.f32 %v2528_v36 }
 0x692   : > { %3756 = vmax.xlane.f32.xlu1 %v3755_v18  ;;  %v7387_v38 = vpop.eup %5443  ;;  %v3782_v27 = vsel %vm2168_vm10, %v7380_v56, -inf  ;;  %v7425_v39 = vrot.slane %v7408_v17, %v8978_v42 }
 0x693   : > { %v3640_v31 = vand.u32 2147483647, %v3608_v19  ;;  %5459 = vrcp.f32 %v3669_v11  ;;  %v2226_v11 = vcombine.high %v7354_v46, %v7354_v46 }
 0x694   : > { %v7341_v13 = vpop.permute.xlu0 %3458  ;;  %v2330_v51 = vpop.permute.xlu1 %2329  ;;  %5461 = vrcp.f32 %v3666_v15 }
 0x695   : > { %2630 = vmax.xlane.f32.xlu0 %v2629_v59  ;;  %v2465_v16 = vsub.f32 %v7303_v57, %v2330_v51  ;;  %v3672_v35 = vadd.f32 1e-08, %v3640_v31  ;;  %v7400_v20 = vpop.eup %5445  ;;  %v2526_v31 = vadd.f32 1e-08, %v2494_v49 }
 0x696   : > { %3768 = vmax.xlane.f32.xlu1 %v3767_v8  ;;  %v3761_v8 = vsel %vm2168_vm10, %v7387_v38, -inf  ;;  %v7404_v29 = vpop.eup %5447  ;;  %v2632_v9 = vsel %vm2168_vm10, %v7400_v20, -inf }
 0x697   : > { %v2497_v28 = vand.u32 2147483647, %v2465_v16  ;;  %5463 = vrcp.f32 %v3672_v35  ;;  %v3779_v36 = vsel %vm2168_vm10, %v7404_v29, -inf  ;;  %v3606_v35 = vsub.f32 %v7278_v10, %v7341_v13 }
 0x698   : > { %v7357_v22 = vpop.permute.xlu0 %3484  ;;  %v2345_v47 = vpop.permute.xlu1 %2344  ;;  %5465 = vrcp.f32 %v3671_v26 }
 0x699   : > { %2639 = vmax.xlane.f32.xlu0 %v2638_v48  ;;  %v2468_v4 = vsub.f32 %v7391_v53, %v2345_v47  ;;  %v2529_v3 = vadd.f32 1e-08, %v2497_v28  ;;  %v7415_v55 = vpop.eup %5449 }
 0x69a   : > { %2618 = vmax.xlane.f32.xlu1 %v2617_v44  ;;  %v2467_v44 = vsub.f32 %v7391_v53, %v7323_v12  ;;  %v7421_v30 = vpop.eup %5451  ;;  %v2647_v1 = vsel %vm2168_vm10, %v7415_v55, -inf }
 0x69b   : > { %v2500_v24 = vand.u32 2147483647, %v2468_v4  ;;  %5467 = vrcp.f32 %v2529_v3  ;;  %v2620_v46 = vsel %vm2168_vm10, %v7421_v30, -inf  ;;  %v7443_v4 = vrot.slane %v2226_v11, %v8986_v40 }
 0x69c   : > { %v7376_v18 = vpop.permute.xlu0 %2333  ;;  %v3474_v63 = vpop.permute.xlu1 %3473  ;;  %v2499_v23 = vand.u32 2147483647, %v2467_v44  ;;  %5469 = vrcp.f32 %v2526_v31  ;;  %v3370_v11 = vcombine.high %v7383_v45, %v7383_v45 }
 0x69d   : > { %3774 = vmax.xlane.f32.xlu0 %v3773_v43  ;;  %v3609_v19 = vsub.f32 %v7339_v41, %v3474_v63  ;;  %v7429_v16 = vpop.eup %5453  ;;  %v2532_v12 = vadd.f32 1e-08, %v2500_v24 }
 0x69e   : > { %2636 = vmax.xlane.f32.xlu1 %v2635_v21  ;;  %v7440_v28 = vpop.eup %5455  ;;  %v2531_v24 = vadd.f32 1e-08, %v2499_v23 }
 0x69f   : > { %v3641_v63 = vand.u32 2147483647, %v3609_v19  ;;  %5471 = vrcp.f32 %v2532_v12  ;;  %v3638_v19 = vand.u32 2147483647, %v3606_v35  ;;  %v2641_v44 = vsel %vm2168_vm10, %v7440_v28, -inf }
 0x6a0   : > { %v7396_v51 = vpop.permute.xlu0 %2359  ;;  %v3489_v59 = vpop.permute.xlu1 %3488 }
 0x6a1   : > { %3783 = vmax.xlane.f32.xlu0 %v3782_v27  ;;  %v3612_v43 = vsub.f32 %v7425_v39, %v3489_v59  ;;  %v7445_v59 = vpop.eup %5457  ;;  %v3764_v27 = vsel %vm2168_vm10, %v7429_v16, -inf  ;;  %v3673_v10 = vadd.f32 1e-08, %v3641_v63  ;;  %v3670_v45 = vadd.f32 1e-08, %v3638_v19 }
 0x6a2   : > { %3762 = vmax.xlane.f32.xlu1 %v3761_v8  ;;  %v7449_v8 = vpop.eup %5459 }
 0x6a3   : > { %v3644_v13 = vand.u32 2147483647, %v3612_v43  ;;  %v3785_v31 = vsel %vm2168_vm10, %v7449_v8, -inf  ;;  %5473 = vrcp.f32 %v3673_v10 }
 0x6a4   : > { %v7411_v47 = vpop.permute.xlu0 %3477  ;;  %v2349_v48 = vpop.permute.xlu1 %2348  ;;  %5475 = vrcp.f32 %v2531_v24 }
 0x6a5   : > { %2633 = vmax.xlane.f32.xlu0 %v2632_v9  ;;  %v2469_v26 = vsub.f32 %v7391_v53, %v2349_v48  ;;  %v3611_v9 = vsub.f32 %v7425_v39, %v7357_v22  ;;  %v7464_v48 = vpop.eup %5461  ;;  %v2650_v22 = vsel %vm2168_vm10, %v7445_v59, -inf  ;;  %v3676_v63 = vadd.f32 1e-08, %v3644_v13 }
 0x6a6   : > { %3780 = vmax.xlane.f32.xlu1 %v3779_v36  ;;  %v7460_v36 = vrot.slane %v7443_v4, %v8978_v42  ;;  %v7470_v12 = vpop.eup %5463 }
 0x6a7   : > { %v2501_v43 = vand.u32 2147483647, %v2469_v26  ;;  %v7480_v62 = vpop.eup %5465  ;;  %v3794_v10 = vsel %vm2168_vm10, %v7470_v12, -inf  ;;  %5477 = vrcp.f32 %v3676_v63  ;;  %v2256_v63 = vcombine.high %v7373_v61, %v7373_v61 }
 0x6a8   : > { %v7432_v21 = vpop.permute.xlu0 %3503  ;;  %v2364_v15 = vpop.permute.xlu1 %2363  ;;  %5479 = vrcp.f32 %v3670_v45  ;;  %v3610_v61 = vsub.f32 %v7339_v41, %v7411_v47 }
 0x6a9   : > { %2648 = vmax.xlane.f32.xlu0 %v2647_v1  ;;  %v2472_v1 = vsub.f32 %v7460_v36, %v2364_v15  ;;  %v3776_v15 = vsel %vm2168_vm10, %v7464_v48, -inf  ;;  %v7486_v13 = vpop.eup %5467  ;;  %v2533_v26 = vadd.f32 1e-08, %v2501_v43  ;;  %v3791_v43 = vsel %vm2168_vm10, %v7480_v62, -inf }
 0x6aa   : > { %2621 = vmax.xlane.f32.xlu1 %v2620_v46  ;;  %v3643_v46 = vand.u32 2147483647, %v3611_v9  ;;  %v7511_v50 = vrot.slane %v2256_v63, %v8978_v42 }
 0x6ab   : > { %v2504_v24 = vand.u32 2147483647, %v2472_v1  ;;  %v7503_v1 = vpop.eup %5469  ;;  %5481 = vrcp.f32 %v2533_v26 }
 0x6ac   : > { %v7452_v49 = vpop.permute.xlu0 %2352  ;;  %v3493_v3 = vpop.permute.xlu1 %3492  ;;  %v3675_v19 = vadd.f32 1e-08, %v3643_v46 }
 0x6ad   : > { %3765 = vmax.xlane.f32.xlu0 %v3764_v27  ;;  %v2466_v27 = vsub.f32 %v7303_v57, %v7376_v18  ;;  %v3613_v57 = vsub.f32 %v7425_v39, %v3493_v3  ;;  %v2653_v3 = vsel %vm2168_vm10, %v7486_v13, -inf }
 0x6ae   : > { %2642 = vmax.xlane.f32.xlu1 %v2641_v44  ;;  %v7478_v44 = vrot.slane %v3370_v11, %v8986_v40  ;;  %v2471_v11 = vsub.f32 %v7460_v36, %v7396_v51  ;;  %v2536_v51 = vadd.f32 1e-08, %v2504_v24  ;;  %5483 = vrcp.f32 %v3675_v19 }
 0x6af   : > { %v2498_v9 = vand.u32 2147483647, %v2466_v27  ;;  %v3645_v45 = vand.u32 2147483647, %v3613_v57  ;;  %v2644_v24 = vsel %vm2168_vm10, %v7503_v1, -inf }
 0x6b0   : > { %v7473_v23 = vpop.permute.xlu0 %2378  ;;  %v3508_v35 = vpop.permute.xlu1 %3507  ;;  %v2503_v0 = vand.u32 2147483647, %v2471_v11  ;;  %5485 = vrcp.f32 %v2536_v51  ;;  %v3642_v11 = vand.u32 2147483647, %v3610_v61 }
 0x6b1   : > { %3786 = vmax.xlane.f32.xlu0 %v3785_v31  ;;  %v7493_v31 = vrot.slane %v7478_v44, %v8978_v42 }
 0x6b2   : > { %2651 = vmax.xlane.f32.xlu1 %v2650_v22  ;;  %v2535_v47 = vadd.f32 1e-08, %v2503_v0  ;;  %v3674_v61 = vadd.f32 1e-08, %v3642_v11 }
 0x6b3   : > { %v3616_v46 = vsub.f32 %v7493_v31, %v3508_v35  ;;  %v3677_v35 = vadd.f32 1e-08, %v3645_v45 }
 0x6b4   : > { %v2368_v18 = vpop.permute.xlu1 %2367  ;;  %v7495_v22 = vpop.permute.xlu0 %3496 }
 0x6b5   : > { %3795 = vmax.xlane.f32.xlu0 %v3794_v10  ;;  %v7506_v10 = vpop.eup %5471  ;;  %v2473_v26 = vsub.f32 %v7460_v36, %v2368_v18  ;;  %v3648_v57 = vand.u32 2147483647, %v3616_v46  ;;  %v3615_v18 = vsub.f32 %v7493_v31, %v7432_v21  ;;  %v3400_v46 = vcombine.high %v7408_v17, %v7408_v17 }
 0x6b6   : > { %3777 = vmax.xlane.f32.xlu1 %v3776_v15  ;;  %v2530_v15 = vadd.f32 1e-08, %v2498_v9  ;;  %v2662_v9 = vsel %vm2168_vm10, %v7506_v10, -inf  ;;  %v7520_v41 = vpop.eup %5473 }
 0x6b7   : > { %v7524_v63 = vpop.eup %5475  ;;  %v3680_v45 = vadd.f32 1e-08, %v3648_v57 }
 0x6b8   : > { %v2383_v27 = vpop.permute.xlu1 %2382  ;;  %v7516_v40 = vpop.permute.xlu0 %3522  ;;  %5487 = vrcp.f32 %v2530_v15  ;;  %v3797_v15 = vsel %vm2168_vm10, %v7520_v41, -inf }
 0x6b9   : > { %2654 = vmax.xlane.f32.xlu0 %v2653_v3  ;;  %v2470_v3 = vsub.f32 %v7391_v53, %v7452_v49  ;;  %v2476_v51 = vsub.f32 %v7511_v50, %v2383_v27  ;;  %5489 = vrcp.f32 %v3677_v35  ;;  %v7533_v21 = vpop.eup %5477  ;;  %v2659_v53 = vsel %vm2168_vm10, %v7524_v63, -inf }
 0x6ba   : > { %3792 = vmax.xlane.f32.xlu1 %v3791_v43  ;;  %v2505_v43 = vand.u32 2147483647, %v2473_v26  ;;  %8987 = vst [vmem:[#allocation37_spill] sm:$0xff] %v7533_v21  ;;  %5491 = vrcp.f32 %v2535_v47  ;;  %v7537_v49 = vpop.eup %5479  ;;  %v2475_v26 = vsub.f32 %v7511_v50, %v7473_v23  ;;  %v3806_v11 = vsel %vm2168_vm10, %v7533_v21, -inf }
 0x6bb   : > { %v2502_v27 = vand.u32 2147483647, %v2470_v3  ;;  %v2508_v35 = vand.u32 2147483647, %v2476_v51  ;;  %5493 = vrcp.f32 %v3680_v45  ;;  %v7549_v3 = vrot.slane %v3400_v46, %v8978_v42 }
 0x6bc   : > { %v3512_v19 = vpop.permute.xlu1 %3511  ;;  %v7541_v17 = vpop.permute.xlu0 %2371  ;;  %5495 = vrcp.f32 %v3674_v61  ;;  %v3788_v23 = vsel %vm2168_vm10, %v7537_v49, -inf  ;;  %v3614_v45 = vsub.f32 %v7425_v39, %v7495_v22 }
 0x6bd   : > { %2663 = vmax.xlane.f32.xlu0 %v2662_v9  ;;  %v3647_v9 = vand.u32 2147483647, %v3615_v18  ;;  %v3617_v57 = vsub.f32 %v7493_v31, %v3512_v19  ;;  %v7546_v18 = vpop.eup %5481  ;;  %v2534_v51 = vadd.f32 1e-08, %v2502_v27  ;;  %v2507_v19 = vand.u32 2147483647, %v2475_v26 }
 0x6be   : > { %2645 = vmax.xlane.f32.xlu1 %v2644_v24  ;;  %v2537_v24 = vadd.f32 1e-08, %v2505_v43  ;;  %8988 = vst [vmem:[#allocation43_spill] sm:$0xff] %v7546_v18  ;;  %v7553_v43 = vpop.eup %5483  ;;  %v3646_v26 = vand.u32 2147483647, %v3614_v45 }
 0x6bf   : > { %v3649_v33 = vand.u32 2147483647, %v3617_v57  ;;  %v7562_v21 = vpop.eup %5485  ;;  %v3803_v27 = vsel %vm2168_vm10, %v7553_v43, -inf  ;;  %v2539_v22 = vadd.f32 1e-08, %v2507_v19 }
 0x6c0   : > { %v3527_v0 = vpop.permute.xlu1 %3526  ;;  %5497 = vrcp.f32 %v2537_v24  ;;  %8989 = vst [vmem:[#allocation39_spill] sm:$0xff] %v7562_v21  ;;  %v3619_v24 = vsub.f32 %v7549_v3, %v7516_v40  ;;  %v3678_v19 = vadd.f32 1e-08, %v3646_v26 }
 0x6c1   : > { %3798 = vmax.xlane.f32.xlu0 %v3797_v15  ;;  %v3679_v15 = vadd.f32 1e-08, %v3647_v9  ;;  %v3620_v61 = vsub.f32 %v7549_v3, %v3527_v0  ;;  %v7558_v9 = vpop.permute.xlu0 %2397  ;;  %v2258_v0 = vcombine.high %v7443_v4, %v7443_v4 }
 0x6c2   : > { %2660 = vmax.xlane.f32.xlu1 %v2659_v53  ;;  %v2540_v53 = vadd.f32 1e-08, %v2508_v35  ;;  %v3681_v35 = vadd.f32 1e-08, %v3649_v33 }
 0x6c3   : > { %5499 = vrcp.f32 %v3679_v15  ;;  %v3652_v57 = vand.u32 2147483647, %v3620_v61  ;;  %v7582_v40 = vrot.slane %v2258_v0, %v8978_v42 }
 0x6c4   : > { %v2387_v47 = vpop.permute.xlu1 %2386  ;;  %5501 = vrcp.f32 %v2534_v51 }
 0x6c5   : > { %3807 = vmax.xlane.f32.xlu0 %v3806_v11  ;;  %v2665_v11 = vsel %vm2168_vm10, %v7546_v18, -inf  ;;  %v7566_v39 = vpop.eup %5487  ;;  %5503 = vrcp.f32 %v2540_v53  ;;  %v2477_v15 = vsub.f32 %v7511_v50, %v2387_v47  ;;  %v3516_v33 = vpop.permute.xlu0 %3515  ;;  %v3651_v47 = vand.u32 2147483647, %v3619_v24 }
 0x6c6   : > { %3789 = vmax.xlane.f32.xlu1 %v3788_v23  ;;  %v7575_v18 = vpop.eup %5489  ;;  %v2656_v51 = vsel %vm2168_vm10, %v7566_v39, -inf  ;;  %5505 = vrcp.f32 %v2539_v22  ;;  %v3684_v45 = vadd.f32 1e-08, %v3652_v57  ;;  %v2474_v22 = vsub.f32 %v7460_v36, %v7541_v17 }
 0x6c7   : > { %8990 = vst [vmem:[#allocation36_spill] sm:$0xff] %v7575_v18  ;;  %v7579_v4 = vpop.eup %5491  ;;  %5507 = vrcp.f32 %v3681_v35  ;;  %v2509_v53 = vand.u32 2147483647, %v2477_v15  ;;  %v3402_v24 = vcombine.high %v7478_v44, %v7478_v44 }
 0x6c8   : > { %v2402_v46 = vpop.permute.xlu1 %2401  ;;  %v2671_v26 = vsel %vm2168_vm10, %v7579_v4, -inf  ;;  %5509 = vrcp.f32 %v3678_v19  ;;  %v2479_v19 = vsub.f32 %v7582_v40, %v7558_v9 }
 0x6c9   : > { %2666 = vmax.xlane.f32.xlu0 %v2665_v11  ;;  %v2674_v11 = vsel %vm2168_vm10, %v7562_v21, -inf  ;;  %v2480_v61 = vsub.f32 %v7582_v40, %v2402_v46  ;;  %v7587_v21 = vpop.eup %5493  ;;  %v3683_v46 = vadd.f32 1e-08, %v3651_v47  ;;  %5511 = vrcp.f32 %v3684_v45  ;;  %v3542_v15 = vpop.permute.xlu0 %3541 }
 0x6ca   : > { %3804 = vmax.xlane.f32.xlu1 %v3803_v27  ;;  %8991 = vst [vmem:[#allocation40_spill] sm:$0xff] %v7587_v21  ;;  %v7593_v0 = vpop.eup %5495  ;;  %v2541_v57 = vadd.f32 1e-08, %v2509_v53  ;;  %v3818_v17 = vsel %vm2168_vm10, %v7587_v21, -inf  ;;  %v7609_v45 = vrot.slane %v3402_v24, %v8978_v42  ;;  %v2511_v21 = vand.u32 2147483647, %v2479_v19 }
 0x6cb   : > { %8992 = vst [vmem:[#allocation44_spill] sm:$0xff] %v7593_v0  ;;  %v3800_v44 = vsel %vm2168_vm10, %v7593_v0, -inf  ;;  %5513 = vrcp.f32 %v3683_v46  ;;  %v3618_v0 = vsub.f32 %v7493_v31, %v3516_v33 }
 0x6cc   : > { %v3531_v23 = vpop.permute.xlu1 %3530  ;;  %5515 = vrcp.f32 %v2541_v57 }
 0x6cd   : > { %2675 = vmax.xlane.f32.xlu0 %v2674_v11  ;;  %v3809_v11 = vsel %vm2168_vm10, %v7575_v18, -inf  ;;  %v7597_v35 = vpop.eup %5497  ;;  %v3621_v36 = vsub.f32 %v7549_v3, %v3531_v23  ;;  %v3650_v19 = vand.u32 2147483647, %v3618_v0 }
 0x6ce   : > { %2657 = vmax.xlane.f32.xlu1 %v2656_v51  ;;  %v2512_v51 = vand.u32 2147483647, %v2480_v61  ;;  %v2677_v23 = vsel %vm2168_vm10, %v7597_v35, -inf }
 0x6cf   : > { %v3682_v0 = vadd.f32 1e-08, %v3650_v19 }
 0x6d0   : > { %v3546_v27 = vpop.permute.xlu1 %3545  ;;  %v7606_v47 = vpop.eup %5499  ;;  %v2544_v9 = vadd.f32 1e-08, %v2512_v51 }
 0x6d1   : > { %3810 = vmax.xlane.f32.xlu0 %v3809_v11  ;;  %v2506_v11 = vand.u32 2147483647, %v2474_v22  ;;  %v7611_v53 = vpop.eup %5501  ;;  %v3653_v22 = vand.u32 2147483647, %v3621_v36  ;;  %v3815_v24 = vsel %vm2168_vm10, %v7606_v47, -inf }
 0x6d2   : > { %2672 = vmax.xlane.f32.xlu1 %v2671_v26  ;;  %8993 = vst [vmem:[#allocation45_spill] sm:$0xff] %v7611_v53  ;;  %v7615_v61 = vpop.eup %5503  ;;  %v3624_v26 = vsub.f32 %v7609_v45, %v3546_v27  ;;  %v2668_v51 = vsel %vm2168_vm10, %v7611_v53, -inf  ;;  %5517 = vrcp.f32 %v2544_v9 }
 0x6d3   : > { %8994 = vst [vmem:[#allocation42_spill] sm:$0xff] %v7615_v61  ;;  %v7621_v46 = vpop.eup %5505  ;;  %v2686_v57 = vsel %vm2168_vm10, %v7615_v61, -inf  ;;  %v3685_v36 = vadd.f32 1e-08, %v3653_v22 }
 0x6d4   : > { %v2406_v18 = vpop.permute.xlu1 %2405  ;;  %v7627_v27 = vpop.eup %5507  ;;  %v3656_v31 = vand.u32 2147483647, %v3624_v26  ;;  %v2683_v53 = vsel %vm2168_vm10, %v7621_v46, -inf }
 0x6d5   : > { %3819 = vmax.xlane.f32.xlu0 %v3818_v17  ;;  %v2538_v17 = vadd.f32 1e-08, %v2506_v11  ;;  %8995 = vst [vmem:[#allocation47_spill] sm:$0xff] %v7627_v27  ;;  %v2481_v33 = vsub.f32 %v7582_v40, %v2406_v18  ;;  %v2543_v11 = vadd.f32 1e-08, %v2511_v21  ;;  %v3821_v61 = vsel %vm2168_vm10, %v7627_v27, -inf }
 0x6d6   : > { %3801 = vmax.xlane.f32.xlu1 %v3800_v44  ;;  %v2391_v44 = vpop.permute.xlu0 %2390  ;;  %v3688_v18 = vadd.f32 1e-08, %v3656_v31 }
 0x6d7   : > { %5519 = vrcp.f32 %v2538_v17  ;;  %v2513_v26 = vand.u32 2147483647, %v2481_v33  ;;  %v2478_v17 = vsub.f32 %v7511_v50, %v2391_v44 }
 0x6d8   : > { %v3550_v42 = vpop.permute.xlu1 %3549  ;;  %5521 = vrcp.f32 %v3685_v36 }
 0x6d9   : > { %2678 = vmax.xlane.f32.xlu0 %v2677_v23  ;;  %v3623_v23 = vsub.f32 %v7609_v45, %v3542_v15  ;;  %v3625_v21 = vsub.f32 %v7609_v45, %v3550_v42  ;;  %5523 = vrcp.f32 %v2543_v11  ;;  %v2545_v31 = vadd.f32 1e-08, %v2513_v26 }
 0x6da   : > { %3816 = vmax.xlane.f32.xlu1 %v3815_v24  ;;  %v7631_v24 = vpop.eup %5509  ;;  %v3535_v22 = vpop.permute.xlu0 %3534  ;;  %5525 = vrcp.f32 %v3688_v18  ;;  %v2510_v44 = vand.u32 2147483647, %v2478_v17 }
 0x6db   : > { %v7637_v9 = vpop.eup %5511  ;;  %v3655_v15 = vand.u32 2147483647, %v3623_v23  ;;  %v3812_v27 = vsel %vm2168_vm10, %v7631_v24, -inf  ;;  %v3657_v33 = vand.u32 2147483647, %v3625_v21  ;;  %5527 = vrcp.f32 %v3682_v0 }
 0x6dc   : > { %v7645_v36 = vpop.eup %5513  ;;  %5529 = vrcp.f32 %v2545_v31  ;;  %v2542_v21 = vadd.f32 1e-08, %v2510_v44 }
 0x6dd   : > { %2687 = vmax.xlane.f32.xlu0 %v2686_v57  ;;  %v3554_v57 = vpop.permute.xlu1 %3553  ;;  %v7648_v11 = vpop.eup %5515  ;;  %v3687_v50 = vadd.f32 1e-08, %v3655_v15  ;;  %v3827_v19 = vsel %vm2168_vm10, %v7645_v36, -inf  ;;  %v3689_v23 = vadd.f32 1e-08, %v3657_v33 }
 0x6de   : > { %2669 = vmax.xlane.f32.xlu1 %v2668_v51  ;;  %v3830_v51 = vsel %vm2168_vm10, %v7637_v9, -inf  ;;  %v3626_v42 = vsub.f32 %v7609_v45, %v3554_v57  ;;  %v2689_v26 = vsel %vm2168_vm10, %v7648_v11, -inf }
 0x6df   : > { %v7655_v45 = vpop.eup %5517  ;;  %5531 = vrcp.f32 %v3687_v50 }
 0x6e0   : > { %v3658_v18 = vand.u32 2147483647, %v3626_v42  ;;  %5533 = vrcp.f32 %v3689_v23 }
 0x6e1   : > { %3822 = vmax.xlane.f32.xlu0 %v3821_v61  ;;  %v2410_v61 = vpop.permute.xlu0 %2409  ;;  %5535 = vrcp.f32 %v2542_v21 }
 0x6e2   : > { %2684 = vmax.xlane.f32.xlu1 %v2683_v53  ;;  %v3622_v53 = vsub.f32 %v7549_v3, %v3535_v22  ;;  %v2482_v15 = vsub.f32 %v7582_v40, %v2410_v61  ;;  %v2698_v22 = vsel %vm2168_vm10, %v7655_v45, -inf }
 0x6e4   : > { %v3654_v0 = vand.u32 2147483647, %v3622_v53  ;;  %v7658_v3 = vpop.eup %5519 }
 0x6e5   : > { %3831 = vmax.xlane.f32.xlu0 %v3830_v51  ;;  %v7662_v17 = vpop.eup %5521  ;;  %v2514_v51 = vand.u32 2147483647, %v2482_v15  ;;  %v2680_v31 = vsel %vm2168_vm10, %v7658_v3, -inf }
 0x6e6   : > { %3813 = vmax.xlane.f32.xlu1 %v3812_v27  ;;  %v3690_v27 = vadd.f32 1e-08, %v3658_v18  ;;  %v3686_v57 = vadd.f32 1e-08, %v3654_v0  ;;  %v7666_v33 = vpop.eup %5523  ;;  %v3833_v40 = vsel %vm2168_vm10, %v7662_v17, -inf }
 0x6e7   : > { %v7670_v42 = vpop.eup %5525  ;;  %v2546_v50 = vadd.f32 1e-08, %v2514_v51  ;;  %v2695_v44 = vsel %vm2168_vm10, %v7666_v33, -inf }
 0x6e8   : > { %5537 = vrcp.f32 %v3690_v27  ;;  %v7674_v53 = vpop.eup %5527  ;;  %v3842_v61 = vsel %vm2168_vm10, %v7670_v42, -inf }
 0x6e9   : > { %2690 = vmax.xlane.f32.xlu0 %v2689_v26  ;;  %5539 = vrcp.f32 %v3686_v57  ;;  %v3824_v23 = vsel %vm2168_vm10, %v7674_v53, -inf }
 0x6ea   : > { %3828 = vmax.xlane.f32.xlu1 %v3827_v19  ;;  %v7678_v19 = vpop.eup %5529  ;;  %5541 = vrcp.f32 %v2546_v50 }
 0x6eb   : > { %8996 = vst [vmem:[#allocation46_spill] sm:$0xff] %v7678_v19  ;;  %v2701_v26 = vsel %vm2168_vm10, %v7678_v19, -inf }
 0x6ec   : > { %v7682_v18 = vpop.eup %5531 }
 0x6ed   : > { %2699 = vmax.xlane.f32.xlu0 %v2698_v22  ;;  %v7686_v21 = vpop.eup %5533  ;;  %v3839_v0 = vsel %vm2168_vm10, %v7682_v18, -inf }
 0x6ee   : > { %2681 = vmax.xlane.f32.xlu1 %v2680_v31  ;;  %8997 = vst [vmem:[#allocation48_spill] sm:$0xff] %v7686_v21  ;;  %v7690_v15 = vpop.eup %5535  ;;  %v3845_v27 = vsel %vm2168_vm10, %v7686_v21, -inf }
 0x6ef   : > { %8998 = vst [vmem:[#allocation26_spill] sm:$0xff] %v7690_v15  ;;  %v2692_v57 = vsel %vm2168_vm10, %v7690_v15, -inf }
 0x6f1   : > { %3834 = vmax.xlane.f32.xlu0 %v3833_v40 }
 0x6f2   : > { %2696 = vmax.xlane.f32.xlu1 %v2695_v44 }
 0x6f5   : > { %3843 = vmax.xlane.f32.xlu0 %v3842_v61  ;;  %v7694_v22 = vpop.eup %5537 }
 0x6f6   : > { %3825 = vmax.xlane.f32.xlu1 %v3824_v23  ;;  %8999 = vst [vmem:[#allocation27_spill] sm:$0xff] %v7694_v22  ;;  %v7698_v51 = vpop.eup %5539  ;;  %v3848_v31 = vsel %vm2168_vm10, %v7694_v22, -inf }
 0x6f7   : > { %9000 = vst [vmem:[#allocation28_spill] sm:$0xff] %v7698_v51  ;;  %v3836_v40 = vsel %vm2168_vm10, %v7698_v51, -inf  ;;  %v7704_v50 = vpop.eup %5541 }
 0x6f8   : > { %9001 = vst [vmem:[#allocation29_spill] sm:$0xff] %v7704_v50  ;;  %v2704_v44 = vsel %vm2168_vm10, %v7704_v50, -inf }
 0x6f9   : > { %2702 = vmax.xlane.f32.xlu0 %v2701_v26 }
 0x6fa   : > { %3840 = vmax.xlane.f32.xlu1 %v3839_v0 }
 0x6fd   : > { %3846 = vmax.xlane.f32.xlu0 %v3845_v27 }
 0x6fe   : > { %2693 = vmax.xlane.f32.xlu1 %v2692_v57 }
 0x701   : > { %3849 = vmax.xlane.f32.xlu0 %v3848_v31 }
 0x702   : > { %3837 = vmax.xlane.f32.xlu1 %v3836_v40 }
 0x706   : > { %2705 = vmax.xlane.f32.xlu1 %v2704_v44 }
 0x70a   : > { %v2613_v61 = vpop.xlane.xlu0 %2612 }
 0x70b   : > { %v2707_v23 = vsub.f32 %v7260_v54, %v2613_v61 }
 0x70d   : > { %v2739_v26 = vmul.f32 1.442695, %v2707_v23 }
 0x70e   : > { %v2625_v0 = vpop.xlane.xlu0 %2624 }
 0x70f   : > { %5543 = vpow2.f32 %v2739_v26  ;;  %v2711_v27 = vsub.f32 %v7270_v60, %v2625_v0 }
 0x711   : > { %v2747_v57 = vmul.f32 1.442695, %v2711_v27 }
 0x712   : > { %v2628_v31 = vpop.xlane.xlu0 %2627 }
 0x713   : > { %5545 = vpow2.f32 %v2747_v57  ;;  %v2712_v22 = vsub.f32 %v7282_v58, %v2628_v31 }
 0x715   : > { %v2749_v44 = vmul.f32 1.442695, %v2712_v22 }
 0x716   : > { %v3760_v51 = vpop.xlane.xlu0 %3759 }
 0x717   : > { %v2616_v21 = vpop.xlane.xlu1 %2615  ;;  %v3852_v50 = vsub.f32 %v7295_v14, %v3760_v51 }
 0x718   : > { %v2708_v40 = vsub.f32 %v7291_v7, %v2616_v21 }
 0x719   : > { %v3885_v23 = vmul.f32 1.442695, %v3852_v50 }
 0x71a   : > { %v2741_v15 = vmul.f32 1.442695, %v2708_v40  ;;  %v3772_v19 = vpop.xlane.xlu0 %3771 }
 0x71b   : > { %v3757_v54 = vpop.xlane.xlu1 %3756  ;;  %v3856_v26 = vsub.f32 %v7314_v32, %v3772_v19 }
 0x71c   : > { %v7713_v61 = vpop.eup %5543  ;;  %5547 = vpow2.f32 %v2741_v15  ;;  %v3851_v60 = vsub.f32 %v7309_v5, %v3757_v54 }
 0x71d   : > { %v3021_v58 = vsel %vm2168_vm10, %v7713_v61, 0.0  ;;  %5549 = vpow2.f32 %v2749_v44  ;;  %v3893_v15 = vmul.f32 1.442695, %v3856_v26 }
 0x71e   : > { %v3883_v0 = vmul.f32 1.442695, %v3851_v60  ;;  %v2631_v7 = vpop.xlane.xlu0 %2630  ;;  %3022 = vadd.xlane.f32.xlu1 %v3021_v58 }
 0x71f   : > { %v3769_v14 = vpop.xlane.xlu1 %3768  ;;  %v2713_v5 = vsub.f32 %v7327_v2, %v2631_v7 }
 0x720   : > { %v7719_v21 = vpop.eup %5545  ;;  %5551 = vpow2.f32 %v3883_v0  ;;  %v3855_v22 = vsub.f32 %v7331_v25, %v3769_v14 }
 0x721   : > { %5553 = vpow2.f32 %v3885_v23  ;;  %v3033_v32 = vsel %vm2168_vm10, %v7719_v21, 0.0  ;;  %v2751_v57 = vmul.f32 1.442695, %v2713_v5 }
 0x722   : > { %v3891_v19 = vmul.f32 1.442695, %v3855_v22  ;;  %v2640_v51 = vpop.xlane.xlu0 %2639  ;;  %3034 = vadd.xlane.f32.xlu1 %v3033_v32 }
 0x723   : > { %v2619_v50 = vpop.xlane.xlu1 %2618  ;;  %v2716_v31 = vsub.f32 %v7345_v34, %v2640_v51 }
 0x724   : > { %5555 = vpow2.f32 %v3891_v19  ;;  %v2709_v27 = vsub.f32 %v7349_v52, %v2619_v50 }
 0x725   : > { %5557 = vpow2.f32 %v3893_v15  ;;  %v2757_v60 = vmul.f32 1.442695, %v2716_v31 }
 0x726   : > { %v2743_v40 = vmul.f32 1.442695, %v2709_v27  ;;  %v3775_v25 = vpop.xlane.xlu0 %3774 }
 0x727   : > { %v2637_v44 = vpop.xlane.xlu1 %2636  ;;  %v3857_v23 = vsub.f32 %v7361_v37, %v3775_v25 }
 0x728   : > { %5559 = vpow2.f32 %v2743_v40  ;;  %v2715_v2 = vsub.f32 %v7367_v6, %v2637_v44 }
 0x729   : > { %v7728_v54 = vpop.eup %5547  ;;  %5561 = vpow2.f32 %v2751_v57  ;;  %v3895_v6 = vmul.f32 1.442695, %v3857_v23 }
 0x72a   : > { %v2755_v26 = vmul.f32 1.442695, %v2715_v2  ;;  %v3784_v58 = vpop.xlane.xlu0 %3783  ;;  %v3024_v52 = vsel %vm2168_vm10, %v7728_v54, 0.0  ;;  %v7733_v0 = vpop.eup %5549 }
 0x72b   : > { %3025 = vadd.xlane.f32.xlu0 %v3024_v52  ;;  %v3763_v34 = vpop.xlane.xlu1 %3762  ;;  %v3860_v37 = vsub.f32 %v7380_v56, %v3784_v58  ;;  %v3036_v32 = vsel %vm2168_vm10, %v7733_v0, 0.0 }
 0x72c   : > { %5563 = vpow2.f32 %v2755_v26  ;;  %v3853_v7 = vsub.f32 %v7387_v38, %v3763_v34 }
 0x72d   : > { %v7736_v14 = vpop.eup %5551  ;;  %5565 = vpow2.f32 %v2757_v60  ;;  %v3901_v57 = vmul.f32 1.442695, %v3860_v37 }
 0x72e   : > { %v7738_v22 = vpop.eup %5553  ;;  %v3887_v15 = vmul.f32 1.442695, %v3853_v7  ;;  %v2634_v5 = vpop.xlane.xlu0 %2633  ;;  %v4165_v19 = vsel %vm2168_vm10, %v7736_v14, 0.0 }
 0x72f   : > { %3037 = vadd.xlane.f32.xlu0 %v3036_v32  ;;  %4166 = vadd.xlane.f32.xlu1 %v4165_v19  ;;  %v3781_v51 = vpop.xlane.xlu1 %3780  ;;  %v4168_v56 = vsel %vm2168_vm10, %v7738_v22, 0.0  ;;  %v2714_v31 = vsub.f32 %v7400_v20, %v2634_v5 }
 0x730   : > { %5567 = vpow2.f32 %v3887_v15  ;;  %v3859_v38 = vsub.f32 %v7404_v29, %v3781_v51 }
 0x731   : > { %v7746_v50 = vpop.eup %5555  ;;  %5569 = vpow2.f32 %v3895_v6  ;;  %v2753_v20 = vmul.f32 1.442695, %v2714_v31 }
 0x732   : > { %v7750_v27 = vpop.eup %5557  ;;  %v3899_v40 = vmul.f32 1.442695, %v3859_v38  ;;  %v2649_v25 = vpop.xlane.xlu0 %2648  ;;  %v4177_v44 = vsel %vm2168_vm10, %v7746_v50, 0.0 }
 0x733   : > { %4169 = vadd.xlane.f32.xlu0 %v4168_v56  ;;  %4178 = vadd.xlane.f32.xlu1 %v4177_v44  ;;  %v2622_v2 = vpop.xlane.xlu1 %2621  ;;  %v2719_v23 = vsub.f32 %v7415_v55, %v2649_v25  ;;  %v4180_v26 = vsel %vm2168_vm10, %v7750_v27, 0.0 }
 0x734   : > { %5571 = vpow2.f32 %v3899_v40  ;;  %v2710_v29 = vsub.f32 %v7421_v30, %v2622_v2 }
 0x735   : > { %v7756_v60 = vpop.eup %5559  ;;  %5573 = vpow2.f32 %v3901_v57  ;;  %v2763_v55 = vmul.f32 1.442695, %v2719_v23 }
 0x736   : > { %v7761_v58 = vpop.eup %5561  ;;  %v2745_v52 = vmul.f32 1.442695, %v2710_v29  ;;  %v3766_v34 = vpop.xlane.xlu0 %3765  ;;  %v3027_v7 = vsel %vm2168_vm10, %v7756_v60, 0.0 }
 0x737   : > { %4181 = vadd.xlane.f32.xlu0 %v4180_v26  ;;  %3028 = vadd.xlane.f32.xlu1 %v3027_v7  ;;  %v2643_v6 = vpop.xlane.xlu1 %2642  ;;  %v3039_v15 = vsel %vm2168_vm10, %v7761_v58, 0.0  ;;  %v3854_v32 = vsub.f32 %v7429_v16, %v3766_v34 }
 0x738   : > { %5575 = vpow2.f32 %v2745_v52  ;;  %v2717_v30 = vsub.f32 %v7440_v28, %v2643_v6 }
 0x739   : > { %v7766_v37 = vpop.eup %5563  ;;  %5577 = vpow2.f32 %v2753_v20  ;;  %v3889_v16 = vmul.f32 1.442695, %v3854_v32 }
 0x73a   : > { %v7770_v5 = vpop.eup %5565  ;;  %v2759_v19 = vmul.f32 1.442695, %v2717_v30  ;;  %v3787_v51 = vpop.xlane.xlu0 %3786  ;;  %v3045_v38 = vsel %vm2168_vm10, %v7766_v37, 0.0 }
 0x73b   : > { %3040 = vadd.xlane.f32.xlu0 %v3039_v15  ;;  %3046 = vadd.xlane.f32.xlu1 %v3045_v38  ;;  %v2652_v56 = vpop.xlane.xlu1 %2651  ;;  %v3048_v31 = vsel %vm2168_vm10, %v7770_v5, 0.0  ;;  %v3861_v25 = vsub.f32 %v7449_v8, %v3787_v51 }
 0x73c   : > { %5579 = vpow2.f32 %v2759_v19  ;;  %v2720_v28 = vsub.f32 %v7445_v59, %v2652_v56 }
 0x73d   : > { %v7776_v57 = vpop.eup %5567  ;;  %5581 = vpow2.f32 %v2763_v55  ;;  %v3903_v8 = vmul.f32 1.442695, %v3861_v25 }
 0x73e   : > { %v7780_v40 = vpop.eup %5569  ;;  %v2765_v44 = vmul.f32 1.442695, %v2720_v28  ;;  %v3796_v2 = vpop.xlane.xlu0 %3795  ;;  %v4171_v29 = vsel %vm2168_vm10, %v7776_v57, 0.0 }
 0x73f   : > { %3049 = vadd.xlane.f32.xlu0 %v3048_v31  ;;  %4172 = vadd.xlane.f32.xlu1 %v4171_v29  ;;  %v3778_v23 = vpop.xlane.xlu1 %3777  ;;  %v3864_v20 = vsub.f32 %v7470_v12, %v3796_v2  ;;  %v4183_v52 = vsel %vm2168_vm10, %v7780_v40, 0.0 }
 0x740   : > { %5583 = vpow2.f32 %v2765_v44  ;;  %v3858_v59 = vsub.f32 %v7464_v48, %v3778_v23 }
 0x741   : > { %v7786_v26 = vpop.eup %5571  ;;  %5585 = vpow2.f32 %v3889_v16  ;;  %v3909_v12 = vmul.f32 1.442695, %v3864_v20 }
 0x742   : > { %v3897_v34 = vmul.f32 1.442695, %v3858_v59  ;;  %v2655_v7 = vpop.xlane.xlu0 %2654  ;;  %v4189_v6 = vsel %vm2168_vm10, %v7786_v26, 0.0  ;;  %v7793_v30 = vpop.eup %5573 }
 0x743   : > { %4184 = vadd.xlane.f32.xlu0 %v4183_v52  ;;  %4190 = vadd.xlane.f32.xlu1 %v4189_v6  ;;  %v3793_v55 = vpop.xlane.xlu1 %3792  ;;  %v2721_v32 = vsub.f32 %v7486_v13, %v2655_v7  ;;  %v4192_v38 = vsel %vm2168_vm10, %v7793_v30, 0.0 }
 0x744   : > { %5587 = vpow2.f32 %v3897_v34  ;;  %v3863_v48 = vsub.f32 %v7480_v62, %v3793_v55 }
 0x745   : > { %v7796_v15 = vpop.eup %5575  ;;  %5589 = vpow2.f32 %v3903_v8  ;;  %v2767_v13 = vmul.f32 1.442695, %v2721_v32 }
 0x746   : > { %v3907_v19 = vmul.f32 1.442695, %v3863_v48  ;;  %v2664_v51 = vpop.xlane.xlu0 %2663  ;;  %v3030_v56 = vsel %vm2168_vm10, %v7796_v15, 0.0  ;;  %v7803_v28 = vpop.eup %5577 }
 0x747   : > { %4193 = vadd.xlane.f32.xlu0 %v4192_v38  ;;  %3031 = vadd.xlane.f32.xlu1 %v3030_v56  ;;  %v2646_v31 = vpop.xlane.xlu1 %2645  ;;  %v2724_v25 = vsub.f32 %v7506_v10, %v2664_v51  ;;  %v3042_v23 = vsel %vm2168_vm10, %v7803_v28, 0.0 }
 0x748   : > { %5591 = vpow2.f32 %v3907_v19  ;;  %v2718_v62 = vsub.f32 %v7503_v1, %v2646_v31  ;;  %v9002_v19 = vld [vmem:[#allocation37_spill] sm:$0xff] }
 0x749   : > { %v7806_v16 = vpop.eup %5579  ;;  %5593 = vpow2.f32 %v3909_v12  ;;  %v2773_v10 = vmul.f32 1.442695, %v2724_v25 }
 0x74a   : > { %v7809_v44 = vpop.eup %5581  ;;  %v2761_v2 = vmul.f32 1.442695, %v2718_v62  ;;  %v3799_v29 = vpop.xlane.xlu0 %3798  ;;  %v3051_v59 = vsel %vm2168_vm10, %v7806_v16, 0.0 }
 0x74b   : > { %3043 = vadd.xlane.f32.xlu0 %v3042_v23  ;;  %3052 = vadd.xlane.f32.xlu1 %v3051_v59  ;;  %v2661_v20 = vpop.xlane.xlu1 %2660  ;;  %v3865_v8 = vsub.f32 %v7520_v41, %v3799_v29  ;;  %v3057_v6 = vsel %vm2168_vm10, %v7809_v44, 0.0  ;;  %v9003_v59 = vld [vmem:[#allocation43_spill] sm:$0xff] }
 0x74c   : > { %5595 = vpow2.f32 %v2761_v2  ;;  %v2723_v1 = vsub.f32 %v7524_v63, %v2661_v20 }
 0x74d   : > { %v7816_v52 = vpop.eup %5583  ;;  %5597 = vpow2.f32 %v2767_v13  ;;  %v3911_v41 = vmul.f32 1.442695, %v3865_v8 }
 0x74e   : > { %v2771_v34 = vmul.f32 1.442695, %v2723_v1  ;;  %v3808_v7 = vpop.xlane.xlu0 %3807  ;;  %v3060_v55 = vsel %vm2168_vm10, %v7816_v52, 0.0  ;;  %v7823_v48 = vpop.eup %5585 }
 0x74f   : > { %3058 = vadd.xlane.f32.xlu0 %v3057_v6  ;;  %3061 = vadd.xlane.f32.xlu1 %v3060_v55  ;;  %v3790_v12 = vpop.xlane.xlu1 %3789  ;;  %v3868_v51 = vsub.f32 %v9002_v19, %v3808_v7  ;;  %v4174_v31 = vsel %vm2168_vm10, %v7823_v48, 0.0 }
 0x750   : > { %5599 = vpow2.f32 %v2771_v34  ;;  %v3862_v63 = vsub.f32 %v7537_v49, %v3790_v12 }
 0x751   : > { %v7826_v32 = vpop.eup %5587  ;;  %5601 = vpow2.f32 %v2773_v10  ;;  %v3917_v29 = vmul.f32 1.442695, %v3868_v51 }
 0x752   : > { %v3905_v38 = vmul.f32 1.442695, %v3862_v63  ;;  %v2667_v56 = vpop.xlane.xlu0 %2666  ;;  %v4186_v62 = vsel %vm2168_vm10, %v7826_v32, 0.0  ;;  %v7833_v13 = vpop.eup %5589 }
 0x753   : > { %4175 = vadd.xlane.f32.xlu0 %v4174_v31  ;;  %4187 = vadd.xlane.f32.xlu1 %v4186_v62  ;;  %v3805_v25 = vpop.xlane.xlu1 %3804  ;;  %v2725_v20 = vsub.f32 %v9003_v59, %v2667_v56  ;;  %v4195_v8 = vsel %vm2168_vm10, %v7833_v13, 0.0 }
 0x754   : > { %5603 = vpow2.f32 %v3905_v38  ;;  %v3867_v49 = vsub.f32 %v7553_v43, %v3805_v25  ;;  %v9005_v25 = vld [vmem:[#allocation36_spill] sm:$0xff] }
 0x755   : > { %v7836_v2 = vpop.eup %5591  ;;  %5605 = vpow2.f32 %v3911_v41  ;;  %v2775_v63 = vmul.f32 1.442695, %v2725_v20  ;;  %v9004_v41 = vld [vmem:[#allocation39_spill] sm:$0xff] }
 0x756   : > { %v7838_v23 = vpop.eup %5593  ;;  %v3915_v1 = vmul.f32 1.442695, %v3867_v49  ;;  %v2676_v10 = vpop.xlane.xlu0 %2675  ;;  %v4201_v34 = vsel %vm2168_vm10, %v7836_v2, 0.0 }
 0x757   : > { %4196 = vadd.xlane.f32.xlu0 %v4195_v8  ;;  %4202 = vadd.xlane.f32.xlu1 %v4201_v34  ;;  %v2658_v7 = vpop.xlane.xlu1 %2657  ;;  %v4204_v55 = vsel %vm2168_vm10, %v7838_v23, 0.0  ;;  %v2728_v19 = vsub.f32 %v9004_v41, %v2676_v10 }
 0x758   : > { %5607 = vpow2.f32 %v3915_v1  ;;  %v2722_v43 = vsub.f32 %v7566_v39, %v2658_v7 }
 0x759   : > { %v7846_v6 = vpop.eup %5595  ;;  %5609 = vpow2.f32 %v3917_v29  ;;  %v2781_v20 = vmul.f32 1.442695, %v2728_v19 }
 0x75a   : > { %v7850_v12 = vpop.eup %5597  ;;  %v2769_v51 = vmul.f32 1.442695, %v2722_v43  ;;  %v3811_v38 = vpop.xlane.xlu0 %3810  ;;  %v3054_v56 = vsel %vm2168_vm10, %v7846_v6, 0.0 }
 0x75b   : > { %4205 = vadd.xlane.f32.xlu0 %v4204_v55  ;;  %3055 = vadd.xlane.f32.xlu1 %v3054_v56  ;;  %v2673_v31 = vpop.xlane.xlu1 %2672  ;;  %v3869_v49 = vsub.f32 %v9005_v25, %v3811_v38  ;;  %v3063_v29 = vsel %vm2168_vm10, %v7850_v12, 0.0 }
 0x75c   : > { %5611 = vpow2.f32 %v2769_v51  ;;  %v2727_v39 = vsub.f32 %v7579_v4, %v2673_v31  ;;  %v9006_v4 = vld [vmem:[#allocation44_spill] sm:$0xff] }
 0x75d   : > { %v7856_v62 = vpop.eup %5599  ;;  %5613 = vpow2.f32 %v2775_v63  ;;  %v3919_v55 = vmul.f32 1.442695, %v3869_v49  ;;  %v9007_v63 = vld [vmem:[#allocation40_spill] sm:$0xff] }
 0x75e   : > { %v7861_v59 = vpop.eup %5601  ;;  %v2779_v1 = vmul.f32 1.442695, %v2727_v39  ;;  %v3820_v10 = vpop.xlane.xlu0 %3819  ;;  %v3069_v8 = vsel %vm2168_vm10, %v7856_v62, 0.0 }
 0x75f   : > { %3064 = vadd.xlane.f32.xlu0 %v3063_v29  ;;  %3070 = vadd.xlane.f32.xlu1 %v3069_v8  ;;  %v3802_v34 = vpop.xlane.xlu1 %3801  ;;  %v3072_v41 = vsel %vm2168_vm10, %v7861_v59, 0.0  ;;  %v3872_v19 = vsub.f32 %v9007_v63, %v3820_v10  ;;  %v9009_v63 = vld [vmem:[#allocation42_spill] sm:$0xff] }
 0x760   : > { %5615 = vpow2.f32 %v2779_v1  ;;  %v3866_v7 = vsub.f32 %v9006_v4, %v3802_v34 }
 0x761   : > { %v7866_v43 = vpop.eup %5603  ;;  %5617 = vpow2.f32 %v2781_v20  ;;  %v3925_v1 = vmul.f32 1.442695, %v3872_v19 }
 0x762   : > { %v7870_v51 = vpop.eup %5605  ;;  %v3913_v38 = vmul.f32 1.442695, %v3866_v7  ;;  %v2679_v56 = vpop.xlane.xlu0 %2678  ;;  %v4198_v31 = vsel %vm2168_vm10, %v7866_v43, 0.0 }
 0x763   : > { %3073 = vadd.xlane.f32.xlu0 %v3072_v41  ;;  %4199 = vadd.xlane.f32.xlu1 %v4198_v31  ;;  %v3817_v39 = vpop.xlane.xlu1 %3816  ;;  %v4207_v29 = vsel %vm2168_vm10, %v7870_v51, 0.0  ;;  %v2729_v10 = vsub.f32 %v7597_v35, %v2679_v56 }
 0x764   : > { %5619 = vpow2.f32 %v3913_v38  ;;  %v3871_v25 = vsub.f32 %v7606_v47, %v3817_v39  ;;  %v9008_v47 = vld [vmem:[#allocation45_spill] sm:$0xff] }
 0x765   : > { %v7876_v49 = vpop.eup %5607  ;;  %5621 = vpow2.f32 %v3919_v55  ;;  %v2783_v35 = vmul.f32 1.442695, %v2729_v10 }
 0x766   : > { %v7880_v20 = vpop.eup %5609  ;;  %v3923_v8 = vmul.f32 1.442695, %v3871_v25  ;;  %v2688_v34 = vpop.xlane.xlu0 %2687  ;;  %v4213_v4 = vsel %vm2168_vm10, %v7876_v49, 0.0 }
 0x767   : > { %4208 = vadd.xlane.f32.xlu0 %v4207_v29  ;;  %4214 = vadd.xlane.f32.xlu1 %v4213_v4  ;;  %v2670_v7 = vpop.xlane.xlu1 %2669  ;;  %v2732_v38 = vsub.f32 %v9009_v63, %v2688_v34  ;;  %v4216_v19 = vsel %vm2168_vm10, %v7880_v20, 0.0 }
 0x768   : > { %5623 = vpow2.f32 %v3923_v8  ;;  %v2726_v41 = vsub.f32 %v9008_v47, %v2670_v7  ;;  %v9010_v7 = vld [vmem:[#allocation47_spill] sm:$0xff] }
 0x769   : > { %v7886_v55 = vpop.eup %5611  ;;  %5625 = vpow2.f32 %v3925_v1  ;;  %v2789_v34 = vmul.f32 1.442695, %v2732_v38 }
 0x76a   : > { %v2777_v56 = vmul.f32 1.442695, %v2726_v41  ;;  %v3823_v31 = vpop.xlane.xlu0 %3822  ;;  %v3066_v39 = vsel %vm2168_vm10, %v7886_v55, 0.0  ;;  %v7893_v25 = vpop.eup %5613 }
 0x76b   : > { %4217 = vadd.xlane.f32.xlu0 %v4216_v19  ;;  %3067 = vadd.xlane.f32.xlu1 %v3066_v39  ;;  %v2685_v29 = vpop.xlane.xlu1 %2684  ;;  %v3873_v47 = vsub.f32 %v9010_v7, %v3823_v31  ;;  %v3075_v41 = vsel %vm2168_vm10, %v7893_v25, 0.0 }
 0x76c   : > { %5627 = vpow2.f32 %v2777_v56  ;;  %v2731_v8 = vsub.f32 %v7621_v46, %v2685_v29 }
 0x76d   : > { %v7896_v4 = vpop.eup %5615  ;;  %5629 = vpow2.f32 %v2783_v35  ;;  %v3927_v35 = vmul.f32 1.442695, %v3873_v47 }
 0x76e   : > { %v2787_v1 = vmul.f32 1.442695, %v2731_v8  ;;  %v3832_v10 = vpop.xlane.xlu0 %3831  ;;  %v3081_v63 = vsel %vm2168_vm10, %v7896_v4, 0.0  ;;  %v7903_v19 = vpop.eup %5617 }
 0x76f   : > { %3076 = vadd.xlane.f32.xlu0 %v3075_v41  ;;  %3082 = vadd.xlane.f32.xlu1 %v3081_v63  ;;  %v3814_v56 = vpop.xlane.xlu1 %3813  ;;  %v3876_v31 = vsub.f32 %v7637_v9, %v3832_v10  ;;  %v3084_v7 = vsel %vm2168_vm10, %v7903_v19, 0.0 }
 0x770   : > { %5631 = vpow2.f32 %v2787_v1  ;;  %v3870_v46 = vsub.f32 %v7631_v24, %v3814_v56 }
 0x771   : > { %v7906_v38 = vpop.eup %5619  ;;  %5633 = vpow2.f32 %v2789_v34  ;;  %v3933_v9 = vmul.f32 1.442695, %v3876_v31 }
 0x772   : > { %v7909_v39 = vpop.eup %5621  ;;  %v3921_v29 = vmul.f32 1.442695, %v3870_v46  ;;  %v2691_v8 = vpop.xlane.xlu0 %2690  ;;  %v4210_v41 = vsel %vm2168_vm10, %v7906_v38, 0.0 }
 0x773   : > { %3085 = vadd.xlane.f32.xlu0 %v3084_v7  ;;  %4211 = vadd.xlane.f32.xlu1 %v4210_v41  ;;  %v3829_v1 = vpop.xlane.xlu1 %3828  ;;  %v2733_v47 = vsub.f32 %v7648_v11, %v2691_v8  ;;  %v4219_v56 = vsel %vm2168_vm10, %v7909_v39, 0.0 }
 0x774   : > { %5635 = vpow2.f32 %v3921_v29  ;;  %v3875_v24 = vsub.f32 %v7645_v36, %v3829_v1 }
 0x775   : > { %v7916_v34 = vpop.eup %5623  ;;  %5637 = vpow2.f32 %v3927_v35  ;;  %v2791_v11 = vmul.f32 1.442695, %v2733_v47 }
 0x776   : > { %v3931_v10 = vmul.f32 1.442695, %v3875_v24  ;;  %v2700_v63 = vpop.xlane.xlu0 %2699  ;;  %v4225_v46 = vsel %vm2168_vm10, %v7916_v34, 0.0  ;;  %v7923_v7 = vpop.eup %5625 }
 0x777   : > { %4220 = vadd.xlane.f32.xlu0 %v4219_v56  ;;  %4226 = vadd.xlane.f32.xlu1 %v4225_v46  ;;  %v2682_v29 = vpop.xlane.xlu1 %2681  ;;  %v2736_v31 = vsub.f32 %v7655_v45, %v2700_v63  ;;  %v4228_v1 = vsel %vm2168_vm10, %v7923_v7, 0.0 }
 0x778   : > { %5639 = vpow2.f32 %v3931_v10  ;;  %v2730_v36 = vsub.f32 %v7658_v3, %v2682_v29 }
 0x779   : > { %v7926_v35 = vpop.eup %5627  ;;  %5641 = vpow2.f32 %v3933_v9  ;;  %v2797_v45 = vmul.f32 1.442695, %v2736_v31 }
 0x77a   : > { %v2785_v8 = vmul.f32 1.442695, %v2730_v36  ;;  %v3835_v41 = vpop.xlane.xlu0 %3834  ;;  %v3078_v24 = vsel %vm2168_vm10, %v7926_v35, 0.0  ;;  %v7933_v56 = vpop.eup %5629 }
 0x77b   : > { %4229 = vadd.xlane.f32.xlu0 %v4228_v1  ;;  %3079 = vadd.xlane.f32.xlu1 %v3078_v24  ;;  %v2697_v10 = vpop.xlane.xlu1 %2696  ;;  %v3877_v63 = vsub.f32 %v7662_v17, %v3835_v41  ;;  %v3087_v36 = vsel %vm2168_vm10, %v7933_v56, 0.0 }
 0x77c   : > { %5643 = vpow2.f32 %v2785_v8  ;;  %v2735_v3 = vsub.f32 %v7666_v33, %v2697_v10 }
 0x77d   : > { %v7936_v9 = vpop.eup %5631  ;;  %5645 = vpow2.f32 %v2791_v11  ;;  %v3935_v41 = vmul.f32 1.442695, %v3877_v63 }
 0x77e   : > { %v7938_v47 = vpop.eup %5633  ;;  %v2795_v46 = vmul.f32 1.442695, %v2735_v3  ;;  %v3844_v29 = vpop.xlane.xlu0 %3843  ;;  %v3093_v1 = vsel %vm2168_vm10, %v7936_v9, 0.0 }
 0x77f   : > { %9011 = vst [vmem:[#allocation30_spill] sm:$0xff] %v7938_v47  ;;  %3088 = vadd.xlane.f32.xlu0 %v3087_v36  ;;  %3094 = vadd.xlane.f32.xlu1 %v3093_v1  ;;  %v3826_v8 = vpop.xlane.xlu1 %3825  ;;  %v3096_v17 = vsel %vm2168_vm10, %v7938_v47, 0.0  ;;  %v3880_v24 = vsub.f32 %v7670_v42, %v3844_v29  ;;  %v9015_v1 = vld [vmem:[#allocation46_spill] sm:$0xff]  ;;  %v2207_v47 = vstv %s7972_s17  ;;  %s6028_s17 = smov [#allocation13]  }
 0x780   : > { %5647 = vpow2.f32 %v2795_v46  ;;  %v3874_v33 = vsub.f32 %v7674_v53, %v3826_v8 }
 0x781   : > { %v7946_v11 = vpop.eup %5635  ;;  %5649 = vpow2.f32 %v2797_v45  ;;  %v3941_v29 = vmul.f32 1.442695, %v3880_v24  ;;  %v9020_v24 = vld [vmem:[#allocation48_spill] sm:$0xff] }
 0x782   : > { %9012 = vst [vmem:[#allocation31_spill] sm:$0xff] %v7946_v11  ;;  %v7950_v31 = vpop.eup %5637  ;;  %v3929_v10 = vmul.f32 1.442695, %v3874_v33  ;;  %v2703_v3 = vpop.xlane.xlu0 %2702  ;;  %v4222_v36 = vsel %vm2168_vm10, %v7946_v11, 0.0 }
 0x783   : > { %9013 = vst [vmem:[#allocation32_spill] sm:$0xff] %v7950_v31  ;;  %3097 = vadd.xlane.f32.xlu0 %v3096_v17  ;;  %4223 = vadd.xlane.f32.xlu1 %v4222_v36  ;;  %v3841_v46 = vpop.xlane.xlu1 %3840  ;;  %v2737_v8 = vsub.f32 %v9015_v1, %v2703_v3  ;;  %v4231_v63 = vsel %vm2168_vm10, %v7950_v31, 0.0  ;;  %v9017_v36 = vld [vmem:[#allocation26_spill] sm:$0xff] }
 0x784   : > { %5651 = vpow2.f32 %v3929_v10  ;;  %v3879_v53 = vsub.f32 %v7682_v18, %v3841_v46 }
 0x785   : > { %v7956_v45 = vpop.eup %5639  ;;  %5653 = vpow2.f32 %v3935_v41  ;;  %v2799_v1 = vmul.f32 1.442695, %v2737_v8  ;;  %v9021_v8 = vld [vmem:[#allocation28_spill] sm:$0xff] }
 0x786   : > { %9014 = vst [vmem:[#allocation37_spill] sm:$0xff] %v7956_v45  ;;  %v7963_v42 = vpop.eup %5641  ;;  %v3939_v33 = vmul.f32 1.442695, %v3879_v53  ;;  %v3847_v17 = vpop.xlane.xlu0 %3846  ;;  %v4237_v10 = vsel %vm2168_vm10, %v7956_v45, 0.0 }
 0x787   : > { %9016 = vst [vmem:[#allocation43_spill] sm:$0xff] %v7963_v42  ;;  %4232 = vadd.xlane.f32.xlu0 %v4231_v63  ;;  %4238 = vadd.xlane.f32.xlu1 %v4237_v10  ;;  %v2694_v18 = vpop.xlane.xlu1 %2693  ;;  %v4240_v31 = vsel %vm2168_vm10, %v7963_v42, 0.0  ;;  %v3881_v53 = vsub.f32 %v9020_v24, %v3847_v17  ;;  %v9023_v24 = vld [vmem:[#allocation27_spill] sm:$0xff] }
 0x788   : > { %5655 = vpow2.f32 %v3939_v33  ;;  %v2734_v3 = vsub.f32 %v9017_v36, %v2694_v18 }
 0x789   : > { %v7968_v46 = vpop.eup %5643  ;;  %5657 = vpow2.f32 %v3941_v29  ;;  %v2205_v29 = vstv %s7961_s24  ;;  %s5046_s24 = sshll.u32 %s551_s29, 3 }
 0x78a   : > { %9018 = vst [vmem:[#allocation39_spill] sm:$0xff] %v7968_v46  ;;  %v7974_v41 = vpop.eup %5645  ;;  %v2793_v63 = vmul.f32 1.442695, %v2734_v3  ;;  %v3090_v33 = vsel %vm2168_vm10, %v7968_v46, 0.0  ;;  %v3850_v10 = vpop.xlane.xlu0 %3849  ;;  %v3943_v3 = vmul.f32 1.442695, %v3881_v53 }
 0x78b   : > { %9019 = vst [vmem:[#allocation36_spill] sm:$0xff] %v7974_v41  ;;  %4241 = vadd.xlane.f32.xlu0 %v4240_v31  ;;  %3091 = vadd.xlane.f32.xlu1 %v3090_v33  ;;  %v3838_v18 = vpop.xlane.xlu1 %3837  ;;  %v3099_v45 = vsel %vm2168_vm10, %v7974_v41, 0.0  ;;  %v3882_v31 = vsub.f32 %v9023_v24, %v3850_v10  ;;  %v9025_v41 = vld [vmem:[#allocation34_spill] sm:$0xff]  ;;  %s553_s6 = scalar_lea.vmem [#allocation13], %s5046_s24 }
 0x78c   : > { %5659 = vpow2.f32 %v2793_v63  ;;  %v3878_v36 = vsub.f32 %v9021_v8, %v3838_v18  ;;  %v2206_v46 = vmul.f32 %v2205_v29, %v9025_v41  ;;  %s4923_s28 = sshll.u32 %s553_s6, 4  ;;  %s4924_s28 = int_to_ptr.vmem [resolvable:$true] %s4923_s28 }
 0x78d   : > { %v7980_v42 = vpop.eup %5647  ;;  %5661 = vpow2.f32 %v2799_v1  ;;  %v9024_v1 = vld [vmem:[#allocation29_spill] sm:$0xff]  ;;  %v3945_v10 = vmul.f32 1.442695, %v3882_v31  ;;  %s5943_s23 = scalar_lea.vmem %s4924_s28, 128 }
 0x78e   : > { %v7987_v17 = vpop.eup %5649  ;;  %v3937_v33 = vmul.f32 1.442695, %v3878_v36  ;;  %v3105_v63 = vsel %vm2168_vm10, %v7980_v42, 0.0  ;;  %p5944_p5 = scmp.ne.s32.totalorder %s4924_s28, %s5943_s23 }
 0x78f   : > { %9022 = vst [vmem:[#allocation44_spill] sm:$0xff] %v7987_v17  ;;  %3100 = vadd.xlane.f32.xlu0 %v3099_v45  ;;  %3106 = vadd.xlane.f32.xlu1 %v3105_v63  ;;  %v2706_v18 = vpop.xlane.xlu1 %2705  ;;  %v3108_v53 = vsel %vm2168_vm10, %v7987_v17, 0.0  ;;  %v3349_v63 = vstv %s7985_s19 }
 0x790   : > { %5663 = vpow2.f32 %v3937_v33  ;;  %v2738_v8 = vsub.f32 %v9024_v1, %v2706_v18  ;;  %v8003_v33 = vadd.f32 %v2207_v47, %v2206_v46  ;;  %v9030_v1 = vld [vmem:[#allocation33_spill] sm:$0xff]  ;;  %v3350_v47 = vmul.f32 %v3349_v63, %v9025_v41  ;;  %p5945_p10 = pnand %p5944_p5, %p9120_p6 }
 0x791   : > { %v7994_v11 = vpop.eup %5651  ;;  %5665 = vpow2.f32 %v3943_v3 }
 0x792   : > { %9026 = vst [vmem:[#allocation40_spill] sm:$0xff] %v7994_v11  ;;  %v2801_v36 = vmul.f32 1.442695, %v2738_v8  ;;  %v4234_v45 = vsel %vm2168_vm10, %v7994_v11, 0.0  ;;  %v8001_v24 = vpop.eup %5653  ;;  %v2811_v8 = vrot.slane %v8003_v33, %v9030_v1  ;;  %p5946_p4 = pneg %p5945_p10 }
 0x793   : > { %9027 = vst [vmem:[#allocation45_spill] sm:$0xff] %v8001_v24  ;;  %3109 = vadd.xlane.f32.xlu0 %v3108_v53  ;;  %4235 = vadd.xlane.f32.xlu1 %v4234_v45  ;;  %v4243_v18 = vsel %vm2168_vm10, %v8001_v24, 0.0  ;;  %v3351_v53 = vstv %s5070_s22  ;;  %s5086_s22 = sshll.u32 %s6138_s10, 7  ;;  %s5947_s10 = sshll.u32 %s6028_s17, 4  ;;  %s5948_s10 = int_to_ptr.vmem [resolvable:$false] %s5947_s10 }
 0x794   : > { %5667 = vpow2.f32 %v2801_v36  ;;  %s8761_s0 = scalar_lea.hbm %s8812_s16, %s5086_s22  ;;  %s5949_s24 = scalar_lea.vmem %s5948_s10, 256 }
 0x795   : > { %v8005_v29 = vpop.eup %5655  ;;  %5669 = vpow2.f32 %v3945_v10  ;;  %p5950_p7 = scmp.lt.s32.totalorder %s4924_s28, %s5948_s10  ;;  %p5951_p8 = scmp.lt.s32.totalorder %s5949_s24, %s5943_s23 }
 0x796   : > { %9028 = vst [vmem:[#allocation42_spill] sm:$0xff] %v8005_v29  ;;  %v4249_v3 = vsel %vm2168_vm10, %v8005_v29, 0.0  ;;  %v8012_v31 = vpop.eup %5657  ;;  %v8026_v29 = vadd.f32 %v3351_v53, %v3350_v47 }
 0x797   : > { %9029 = vst [vmem:[#allocation47_spill] sm:$0xff] %v8012_v31  ;;  %4244 = vadd.xlane.f32.xlu0 %v4243_v18  ;;  %4250 = vadd.xlane.f32.xlu1 %v4249_v3  ;;  %v4252_v10 = vsel %vm2168_vm10, %v8012_v31, 0.0  ;;  %v2827_v18 = vrot.slane %v2811_v8, %v9030_v1  ;;  %v2819_v3 = vcombine.high %v2811_v8, %v2811_v8  ;;  %p5952_p11 = por %p5951_p8, %p5950_p7 }
 0x798   : > { %v3955_v8 = vrot.slane %v8026_v29, %v9030_v1 }
 0x799   : > { %v8017_v46 = vpop.eup %5659  ;;  %p5953_p0 = pnand %p5952_p11, %p5946_p4 }
 0x79a   : > { %9031 = vst [vmem:[#allocation46_spill] sm:$0xff] %v8017_v46  ;;  %v8019_v36 = vpop.eup %5661  ;;  %v3102_v45 = vsel %vm2168_vm10, %v8017_v46, 0.0  ;;  %v9035_v46 = vld [vmem:[#allocation25_spill] sm:$0xff]  ;;  %v3963_v31 = vcombine.high %v3955_v8, %v3955_v8 }
 0x79b   : > { %9032 = vst [vmem:[#allocation26_spill] sm:$0xff] %v8019_v36  ;;  %4253 = vadd.xlane.f32.xlu0 %v4252_v10  ;;  %3103 = vadd.xlane.f32.xlu1 %v3102_v45  ;;  %v3111_v63 = vsel %vm2168_vm10, %v8019_v36, 0.0  ;;  %v8037_v10 = vrot.slane %v2827_v18, %v9035_v46  ;;  %v8040_v45 = vrot.slane %v2819_v3, %v9030_v1 }
 0x79c   : > { %v3971_v36 = vrot.slane %v3955_v8, %v9030_v1 }
 0x79d   : > { %v8028_v24 = vpop.eup %5663  ;;  %v8056_v3 = vrot.slane %v8040_v45, %v9035_v46 }
 0x79e   : > { %9033 = vst [vmem:[#allocation48_spill] sm:$0xff] %v8028_v24  ;;  %v4246_v41 = vsel %vm2168_vm10, %v8028_v24, 0.0  ;;  %v8034_v11 = vpop.eup %5665 }
 0x79f   : > { %9034 = vst [vmem:[#allocation28_spill] sm:$0xff] %v8034_v11  ;;  %3112 = vadd.xlane.f32.xlu0 %v3111_v63  ;;  %4247 = vadd.xlane.f32.xlu1 %v4246_v41  ;;  %v4255_v53 = vsel %vm2168_vm10, %v8034_v11, 0.0  ;;  %v2893_v41 = vmul.f32 %v7713_v61, %v8037_v10  ;;  %v2897_v61 = vmul.f32 %v7719_v21, %v8056_v3 }
 0x7a1   : > { %v8044_v47 = vpop.eup %5667  ;;  %v2925_v17 = vsel %vm2168_vm10, %v2893_v41, 0.0  ;;  %v2898_v41 = vmul.f32 %v7733_v0, %v8056_v3 }
 0x7a2   : > { %9036 = vst [vmem:[#allocation27_spill] sm:$0xff] %v8044_v47  ;;  %v3114_v24 = vsel %vm2168_vm10, %v8044_v47, 0.0  ;;  %v8052_v63 = vpop.eup %5669  ;;  %v2894_v47 = vmul.f32 %v7728_v54, %v8037_v10 }
 0x7a3   : > { %9037 = vst [vmem:[#allocation29_spill] sm:$0xff] %v8052_v63  ;;  %4256 = vadd.xlane.f32.xlu0 %v4255_v53  ;;  %3115 = vadd.xlane.f32.xlu1 %v3114_v24  ;;  %v4258_v11 = vsel %vm2168_vm10, %v8052_v63, 0.0  ;;  %v8067_v24 = vrot.slane %v3971_v36, %v9035_v46  ;;  %v8070_v53 = vrot.slane %v3963_v31, %v9030_v1  ;;  %v2937_v63 = vsel %vm2168_vm10, %v2897_v61, 0.0 }
 0x7a4   : > { %v2928_v8 = vsel %vm2168_vm10, %v2894_v47, 0.0 }
 0x7a5   : > { %v4037_v54 = vmul.f32 %v7736_v14, %v8067_v24  ;;  %v8080_v21 = vrot.slane %v8070_v53, %v9035_v46  ;;  %v4038_v47 = vmul.f32 %v7738_v22, %v8067_v24  ;;  %v2849_v14 = vcombine.high %v2827_v18, %v2827_v18 }
 0x7a7   : > { %4259 = vadd.xlane.f32.xlu0 %v4258_v11  ;;  %2926 = vadd.xlane.f32.xlu1 %v2925_v17  ;;  %v8082_v11 = vpop.xlane.xlu1 %3022  ;;  %v2940_v17 = vsel %vm2168_vm10, %v2898_v41, 0.0  ;;  %v4069_v31 = vsel %vm2168_vm10, %v4037_v54, 0.0  ;;  %v4041_v0 = vmul.f32 %v7746_v50, %v8080_v21  ;;  %v2895_v41 = vmul.f32 %v7756_v60, %v8037_v10 }
 0x7a8   : > { %v8101_v50 = vrot.slane %v2849_v14, %v9035_v46 }
 0x7a9   : > { %v4081_v61 = vsel %vm2168_vm10, %v4041_v0, 0.0  ;;  %v3993_v0 = vcombine.high %v3971_v36, %v3971_v36 }
 0x7ab   : > { %2929 = vadd.xlane.f32.xlu0 %v2928_v8  ;;  %2938 = vadd.xlane.f32.xlu1 %v2937_v63  ;;  %v4072_v63 = vsel %vm2168_vm10, %v4038_v47, 0.0  ;;  %v4042_v8 = vmul.f32 %v7750_v27, %v8080_v21  ;;  %v8096_v54 = vpop.xlane.xlu1 %3034  ;;  %v2901_v27 = vmul.f32 %v7766_v37, %v8101_v50 }
 0x7ad   : > { %v4084_v18 = vsel %vm2168_vm10, %v4042_v8, 0.0 }
 0x7af   : > { %2941 = vadd.xlane.f32.xlu0 %v2940_v17  ;;  %4070 = vadd.xlane.f32.xlu1 %v4069_v31  ;;  %v2931_v17 = vsel %vm2168_vm10, %v2895_v41, 0.0  ;;  %v2899_v31 = vmul.f32 %v7761_v58, %v8056_v3  ;;  %v4039_v58 = vmul.f32 %v7776_v57, %v8067_v24  ;;  %v8124_v41 = vrot.slane %v3993_v0, %v9035_v46 }
 0x7b1   : > { %v2943_v14 = vsel %vm2168_vm10, %v2899_v31, 0.0 }
 0x7b3   : > { %4073 = vadd.xlane.f32.xlu0 %v4072_v63  ;;  %4082 = vadd.xlane.f32.xlu1 %v4081_v61  ;;  %v2949_v63 = vsel %vm2168_vm10, %v2901_v27, 0.0  ;;  %v2902_v61 = vmul.f32 %v7770_v5, %v8101_v50  ;;  %v4045_v5 = vmul.f32 %v7786_v26, %v8124_v41 }
 0x7b4   : > { %v8098_v22 = vpop.xlane.xlu0 %3025 }
 0x7b5   : > { %v2952_v36 = vsel %vm2168_vm10, %v2902_v61, 0.0  ;;  %v4093_v0 = vsel %vm2168_vm10, %v4045_v5, 0.0  ;;  %v2851_v61 = vcombine.high %v8040_v45, %v8040_v45  ;;  %5671 = vrcp.f32 %v8098_v22 }
 0x7b6   : > { %5673 = vrcp.f32 %v8082_v11 }
 0x7b7   : > { %4085 = vadd.xlane.f32.xlu0 %v4084_v18  ;;  %2932 = vadd.xlane.f32.xlu1 %v2931_v17  ;;  %v4075_v18 = vsel %vm2168_vm10, %v4039_v58, 0.0  ;;  %v4043_v17 = vmul.f32 %v7780_v40, %v8080_v21 }
 0x7b8   : > { %v8109_v60 = vpop.xlane.xlu0 %3037  ;;  %v8111_v47 = vpop.xlane.xlu1 %4166 }
 0x7b9   : > { %v4087_v27 = vsel %vm2168_vm10, %v4043_v17, 0.0  ;;  %v8159_v17 = vrot.slane %v2851_v61, %v9035_v46  ;;  %5675 = vrcp.f32 %v8109_v60 }
 0x7ba   : > { %5677 = vrcp.f32 %v8111_v47 }
 0x7bb   : > { %2944 = vadd.xlane.f32.xlu0 %v2943_v14  ;;  %2950 = vadd.xlane.f32.xlu1 %v2949_v63  ;;  %v4046_v14 = vmul.f32 %v7793_v30, %v8124_v41  ;;  %v2896_v63 = vmul.f32 %v7796_v15, %v8037_v10  ;;  %v2903_v30 = vmul.f32 %v7806_v16, %v8101_v50  ;;  %5679 = vrcp.f32 %v8096_v54 }
 0x7bc   : > { %v8119_v37 = vpop.xlane.xlu0 %4169  ;;  %v8121_v8 = vpop.xlane.xlu1 %4178 }
 0x7bd   : > { %v4096_v58 = vsel %vm2168_vm10, %v4046_v14, 0.0  ;;  %v2955_v5 = vsel %vm2168_vm10, %v2903_v30, 0.0  ;;  %v2804_v14 = vcombine.high %v8003_v33, %v8003_v33  ;;  %5681 = vrcp.f32 %v8119_v37 }
 0x7be   : > { %5683 = vrcp.f32 %v8121_v8 }
 0x7bf   : > { %2953 = vadd.xlane.f32.xlu0 %v2952_v36  ;;  %4076 = vadd.xlane.f32.xlu1 %v4075_v18  ;;  %v2934_v36 = vsel %vm2168_vm10, %v2896_v63, 0.0  ;;  %v2900_v18 = vmul.f32 %v7803_v28, %v8056_v3  ;;  %v2906_v28 = vmul.f32 %v7816_v52, %v8159_v17  ;;  %v4044_v52 = vmul.f32 %v7826_v32, %v8080_v21 }
 0x7c0   : > { %v8132_v57 = vpop.xlane.xlu0 %4181  ;;  %v8134_v31 = vpop.xlane.xlu1 %3028  ;;  %v2818_v33 = vrot.slane %v2804_v14, %v9030_v1 }
 0x7c1   : > { %v2946_v45 = vsel %vm2168_vm10, %v2900_v18, 0.0  ;;  %v2964_v61 = vsel %vm2168_vm10, %v2906_v28, 0.0  ;;  %v4090_v30 = vsel %vm2168_vm10, %v4044_v52, 0.0  ;;  %5685 = vrcp.f32 %v8132_v57 }
 0x7c2   : > { %5687 = vrcp.f32 %v8134_v31 }
 0x7c3   : > { %4088 = vadd.xlane.f32.xlu0 %v4087_v27  ;;  %4094 = vadd.xlane.f32.xlu1 %v4093_v0  ;;  %v2905_v27 = vmul.f32 %v7809_v44, %v8159_v17  ;;  %v3995_v0 = vcombine.high %v8070_v53, %v8070_v53  ;;  %v4040_v44 = vmul.f32 %v7823_v48, %v8067_v24 }
 0x7c4   : > { %v8142_v40 = vpop.xlane.xlu0 %3040  ;;  %v8144_v26 = vpop.xlane.xlu1 %3046  ;;  %v4047_v48 = vmul.f32 %v7833_v13, %v8124_v41 }
 0x7c5   : > { %v2961_v63 = vsel %vm2168_vm10, %v2905_v27, 0.0  ;;  %v8186_v53 = vrot.slane %v3995_v0, %v9035_v46  ;;  %v4078_v18 = vsel %vm2168_vm10, %v4040_v44, 0.0  ;;  %5689 = vrcp.f32 %v8142_v40 }
 0x7c6   : > { %v4099_v27 = vsel %vm2168_vm10, %v4047_v48, 0.0  ;;  %5691 = vrcp.f32 %v8144_v26 }
 0x7c7   : > { %4097 = vadd.xlane.f32.xlu0 %v4096_v58  ;;  %2935 = vadd.xlane.f32.xlu1 %v2934_v36  ;;  %v4049_v32 = vmul.f32 %v7836_v2, %v8186_v53  ;;  %v4050_v13 = vmul.f32 %v7838_v23, %v8186_v53  ;;  %v2904_v2 = vmul.f32 %v7846_v6, %v8101_v50 }
 0x7c8   : > { %v8154_v15 = vpop.xlane.xlu0 %3049  ;;  %v8156_v10 = vpop.xlane.xlu1 %4172  ;;  %v2907_v23 = vmul.f32 %v7850_v12, %v8159_v17  ;;  %v4048_v12 = vmul.f32 %v7866_v43, %v8124_v41 }
 0x7c9   : > { %v4105_v28 = vsel %vm2168_vm10, %v4049_v32, 0.0  ;;  %v2958_v44 = vsel %vm2168_vm10, %v2904_v2, 0.0  ;;  %5693 = vrcp.f32 %v8154_v15 }
 0x7ca   : > { %v4102_v2 = vsel %vm2168_vm10, %v4048_v12, 0.0  ;;  %5695 = vrcp.f32 %v8156_v10 }
 0x7cb   : > { %2947 = vadd.xlane.f32.xlu0 %v2946_v45  ;;  %2956 = vadd.xlane.f32.xlu1 %v2955_v5  ;;  %v8200_v45 = vrot.slane %v2818_v33, %v9030_v1  ;;  %v3948_v5 = vcombine.high %v8026_v29, %v8026_v29 }
 0x7cc   : > { %v8167_v16 = vpop.xlane.xlu0 %4184  ;;  %v8169_v3 = vpop.xlane.xlu1 %4190 }
 0x7cd   : > { %v3962_v29 = vrot.slane %v3948_v5, %v9030_v1  ;;  %5697 = vrcp.f32 %v8167_v16 }
 0x7ce   : > { %5699 = vrcp.f32 %v8169_v3 }
 0x7cf   : > { %2962 = vadd.xlane.f32.xlu0 %v2961_v63  ;;  %2965 = vadd.xlane.f32.xlu1 %v2964_v61  ;;  %v8216_v63 = vrot.slane %v8200_v45, %v9035_v46  ;;  %v4108_v61 = vsel %vm2168_vm10, %v4050_v13, 0.0 }
 0x7d0   : > { %v8181_v58 = vpop.xlane.xlu0 %4193  ;;  %v8183_v36 = vpop.xlane.xlu1 %3031 }
 0x7d1   : > { %v2909_v6 = vmul.f32 %v7856_v62, %v8216_v63  ;;  %v2910_v32 = vmul.f32 %v7861_v59, %v8216_v63  ;;  %v4051_v59 = vmul.f32 %v7870_v51, %v8186_v53  ;;  %v2908_v51 = vmul.f32 %v7886_v55, %v8159_v17 }
 0x7d2   : > { %5701 = vrcp.f32 %v8181_v58 }
 0x7d3   : > { %4079 = vadd.xlane.f32.xlu0 %v4078_v18  ;;  %4091 = vadd.xlane.f32.xlu1 %v4090_v30  ;;  %v8230_v18 = vrot.slane %v3962_v29, %v9030_v1  ;;  %v2967_v30 = vsel %vm2168_vm10, %v2907_v23, 0.0  ;;  %v2973_v48 = vsel %vm2168_vm10, %v2909_v6, 0.0  ;;  %v2976_v13 = vsel %vm2168_vm10, %v2910_v32, 0.0 }
 0x7d4   : > { %v8195_v24 = vpop.xlane.xlu0 %3043  ;;  %v8197_v21 = vpop.xlane.xlu1 %3052  ;;  %v3964_v32 = vcombine.high %v3962_v29, %v3962_v29 }
 0x7d7   : > { %4100 = vadd.xlane.f32.xlu0 %v4099_v27  ;;  %4106 = vadd.xlane.f32.xlu1 %v4105_v28  ;;  %v8244_v27 = vrot.slane %v8230_v18, %v9035_v46  ;;  %v2820_v28 = vcombine.high %v2818_v33, %v2818_v33  ;;  %v4111_v33 = vsel %vm2168_vm10, %v4051_v59, 0.0 }
 0x7d8   : > { %v8210_v0 = vpop.xlane.xlu0 %3058  ;;  %v8212_v14 = vpop.xlane.xlu1 %3061 }
 0x7d9   : > { %v4053_v43 = vmul.f32 %v7876_v49, %v8244_v27  ;;  %v4054_v6 = vmul.f32 %v7880_v20, %v8244_v27  ;;  %v2911_v20 = vmul.f32 %v7893_v25, %v8216_v63  ;;  %v4052_v25 = vmul.f32 %v7906_v38, %v8186_v53 }
 0x7db   : > { %4109 = vadd.xlane.f32.xlu0 %v4108_v61  ;;  %2959 = vadd.xlane.f32.xlu1 %v2958_v44  ;;  %v8257_v44 = vrot.slane %v2820_v28, %v9030_v1  ;;  %v4117_v23 = vsel %vm2168_vm10, %v4053_v43, 0.0  ;;  %v4120_v12 = vsel %vm2168_vm10, %v4054_v6, 0.0  ;;  %v2970_v28 = vsel %vm2168_vm10, %v2908_v51, 0.0 }
 0x7dc   : > { %v8225_v50 = vpop.xlane.xlu0 %4175  ;;  %v8227_v52 = vpop.xlane.xlu1 %4187  ;;  %v2979_v29 = vsel %vm2168_vm10, %v2911_v20, 0.0  ;;  %v4114_v6 = vsel %vm2168_vm10, %v4052_v25, 0.0  ;;  %v3994_v25 = vcombine.high %v8230_v18, %v8230_v18 }
 0x7df   : > { %2968 = vadd.xlane.f32.xlu0 %v2967_v30  ;;  %2974 = vadd.xlane.f32.xlu1 %v2973_v48  ;;  %v8271_v48 = vrot.slane %v8257_v44, %v9035_v46 }
 0x7e0   : > { %v8238_v62 = vpop.xlane.xlu0 %4196  ;;  %v8240_v5 = vpop.xlane.xlu1 %4202 }
 0x7e1   : > { %v2913_v55 = vmul.f32 %v7896_v4, %v8271_v48  ;;  %v2914_v43 = vmul.f32 %v7903_v19, %v8271_v48  ;;  %v4055_v19 = vmul.f32 %v7909_v39, %v8244_v27  ;;  %v2912_v39 = vmul.f32 %v7926_v35, %v8216_v63 }
 0x7e3   : > { %2977 = vadd.xlane.f32.xlu0 %v2976_v13  ;;  %4103 = vadd.xlane.f32.xlu1 %v4102_v2  ;;  %v8284_v2 = vrot.slane %v3964_v32, %v9030_v1  ;;  %v2985_v59 = vsel %vm2168_vm10, %v2913_v55, 0.0  ;;  %v2850_v32 = vcombine.high %v8200_v45, %v8200_v45 }
 0x7e4   : > { %v8252_v41 = vpop.xlane.xlu0 %4205  ;;  %v8254_v61 = vpop.xlane.xlu1 %3055 }
 0x7e5   : > { %v8298_v1 = vrot.slane %v8284_v2, %v9035_v46 }
 0x7e7   : > { %4112 = vadd.xlane.f32.xlu0 %v4111_v33  ;;  %4118 = vadd.xlane.f32.xlu1 %v4117_v23  ;;  %v2988_v23 = vsel %vm2168_vm10, %v2914_v43, 0.0  ;;  %v4057_v38 = vmul.f32 %v7916_v34, %v8298_v1  ;;  %v4058_v20 = vmul.f32 %v7923_v7, %v8298_v1  ;;  %v2915_v43 = vmul.f32 %v7933_v56, %v8271_v48  ;;  %v9042_v56 = vld [vmem:[#allocation31_spill] sm:$0xff] }
 0x7e8   : > { %v8265_v49 = vpop.xlane.xlu0 %3064  ;;  %v8267_v30 = vpop.xlane.xlu1 %3070 }
 0x7e9   : > { %v4132_v45 = vsel %vm2168_vm10, %v4058_v20, 0.0 }
 0x7eb   : > { %4121 = vadd.xlane.f32.xlu0 %v4120_v12  ;;  %2971 = vadd.xlane.f32.xlu1 %v2970_v28  ;;  %v4123_v12 = vsel %vm2168_vm10, %v4055_v19, 0.0  ;;  %v4129_v28 = vsel %vm2168_vm10, %v4057_v38, 0.0  ;;  %v9041_v19 = vld [vmem:[#allocation30_spill] sm:$0xff] }
 0x7ec   : > { %v8279_v17 = vpop.xlane.xlu0 %3073  ;;  %v8281_v13 = vpop.xlane.xlu1 %4199 }
 0x7ef   : > { %2980 = vadd.xlane.f32.xlu0 %v2979_v29  ;;  %2986 = vadd.xlane.f32.xlu1 %v2985_v59  ;;  %v8323_v29 = vrot.slane %v2850_v32, %v9035_v46  ;;  %v2982_v59 = vsel %vm2168_vm10, %v2912_v39, 0.0  ;;  %v4056_v32 = vmul.f32 %v9042_v56, %v8244_v27  ;;  %v9045_v39 = vld [vmem:[#allocation32_spill] sm:$0xff]  ;;  %v9050_v56 = vld [vmem:[#allocation39_spill] sm:$0xff] }
 0x7f0   : > { %v8292_v4 = vpop.xlane.xlu0 %4208  ;;  %v8294_v33 = vpop.xlane.xlu1 %4214 }
 0x7f1   : > { %v2917_v7 = vmul.f32 %v7936_v9, %v8323_v29  ;;  %v2918_v38 = vmul.f32 %v9041_v19, %v8323_v29  ;;  %v4126_v20 = vsel %vm2168_vm10, %v4056_v32, 0.0  ;;  %v9049_v19 = vld [vmem:[#allocation43_spill] sm:$0xff]  ;;  %v2916_v32 = vmul.f32 %v9050_v56, %v8271_v48  ;;  %v9056_v56 = vld [vmem:[#allocation44_spill] sm:$0xff] }
 0x7f3   : > { %2989 = vadd.xlane.f32.xlu0 %v2988_v23  ;;  %4115 = vadd.xlane.f32.xlu1 %v4114_v6  ;;  %v2991_v23 = vsel %vm2168_vm10, %v2915_v43, 0.0  ;;  %v2997_v6 = vsel %vm2168_vm10, %v2917_v7, 0.0  ;;  %v3000_v18 = vsel %vm2168_vm10, %v2918_v38, 0.0 }
 0x7f4   : > { %v8306_v53 = vpop.xlane.xlu0 %4217  ;;  %v8308_v51 = vpop.xlane.xlu1 %3067 }
 0x7f7   : > { %4124 = vadd.xlane.f32.xlu0 %v4123_v12  ;;  %4130 = vadd.xlane.f32.xlu1 %v4129_v28  ;;  %v4024_v28 = vrot.slane %v3994_v25, %v9035_v46 }
 0x7f8   : > { %v8318_v34 = vpop.xlane.xlu0 %3076  ;;  %v8320_v55 = vpop.xlane.xlu1 %3082 }
 0x7f9   : > { %9038 = vst [vmem:[#allocation33_spill] sm:$0xff] %v8320_v55  ;;  %v4062_v38 = vmul.f32 %v9049_v19, %v4024_v28 }
 0x7fb   : > { %4133 = vadd.xlane.f32.xlu0 %v4132_v45  ;;  %2983 = vadd.xlane.f32.xlu1 %v2982_v59  ;;  %v4059_v45 = vmul.f32 %v9045_v39, %v8298_v1  ;;  %v9046_v59 = vld [vmem:[#allocation37_spill] sm:$0xff] }
 0x7fc   : > { %v8331_v35 = vpop.xlane.xlu0 %3085  ;;  %v8333_v63 = vpop.xlane.xlu1 %4211  ;;  %v4061_v43 = vmul.f32 %v9046_v59, %v4024_v28  ;;  %v4144_v59 = vsel %vm2168_vm10, %v4062_v38, 0.0 }
 0x7fd   : > { %9039 = vst [vmem:[#allocation25_spill] sm:$0xff] %v8331_v35  ;;  %9040 = vst [vmem:[#allocation49_spill] sm:$0xff] %v8333_v63  ;;  %v4135_v25 = vsel %vm2168_vm10, %v4059_v45, 0.0  ;;  %v9053_v45 = vld [vmem:[#allocation36_spill] sm:$0xff] }
 0x7ff   : > { %2992 = vadd.xlane.f32.xlu0 %v2991_v23  ;;  %2998 = vadd.xlane.f32.xlu1 %v2997_v6  ;;  %v2852_v23 = vcombine.high %v8257_v44, %v8257_v44  ;;  %v4141_v6 = vsel %vm2168_vm10, %v4061_v43, 0.0  ;;  %v2994_v44 = vsel %vm2168_vm10, %v2916_v32, 0.0  ;;  %v2919_v43 = vmul.f32 %v9053_v45, %v8323_v29 }
 0x800   : > { %v8343_v9 = vpop.xlane.xlu0 %4220  ;;  %v8345_v12 = vpop.xlane.xlu1 %4226 }
 0x801   : > { %9043 = vst [vmem:[#allocation30_spill] sm:$0xff] %v8343_v9  ;;  %9044 = vst [vmem:[#allocation31_spill] sm:$0xff] %v8345_v12  ;;  %v2884_v39 = vrot.slane %v2852_v23, %v9035_v46  ;;  %v3003_v23 = vsel %vm2168_vm10, %v2919_v43, 0.0  ;;  %v9060_v43 = vld [vmem:[#allocation45_spill] sm:$0xff] }
 0x803   : > { %3001 = vadd.xlane.f32.xlu0 %v3000_v18  ;;  %4127 = vadd.xlane.f32.xlu1 %v4126_v20  ;;  %v2921_v19 = vmul.f32 %v7980_v42, %v2884_v39  ;;  %v2922_v32 = vmul.f32 %v9056_v56, %v2884_v39 }
 0x804   : > { %v8353_v27 = vpop.xlane.xlu0 %4229  ;;  %v8355_v7 = vpop.xlane.xlu1 %3079 }
 0x805   : > { %9047 = vst [vmem:[#allocation32_spill] sm:$0xff] %v8353_v27  ;;  %9048 = vst [vmem:[#allocation37_spill] sm:$0xff] %v8355_v7  ;;  %v3009_v38 = vsel %vm2168_vm10, %v2921_v19, 0.0  ;;  %v9061_v19 = vld [vmem:[#allocation42_spill] sm:$0xff] }
 0x807   : > { %4136 = vadd.xlane.f32.xlu0 %v4135_v25  ;;  %4142 = vadd.xlane.f32.xlu1 %v4141_v6  ;;  %v3996_v6 = vcombine.high %v8284_v2, %v8284_v2 }
 0x808   : > { %v8364_v18 = vpop.xlane.xlu0 %3088  ;;  %v8366_v20 = vpop.xlane.xlu1 %3094 }
 0x809   : > { %9051 = vst [vmem:[#allocation43_spill] sm:$0xff] %v8364_v18  ;;  %9052 = vst [vmem:[#allocation39_spill] sm:$0xff] %v8366_v20  ;;  %v9057_v20 = vld [vmem:[#allocation40_spill] sm:$0xff]  ;;  %v4063_v18 = vmul.f32 %v9060_v43, %v4024_v28 }
 0x80a   : > { %v4060_v45 = vmul.f32 %v9057_v20, %v8298_v1 }
 0x80b   : > { %4145 = vadd.xlane.f32.xlu0 %v4144_v59  ;;  %2995 = vadd.xlane.f32.xlu1 %v2994_v44  ;;  %v4028_v44 = vrot.slane %v3996_v6, %v9035_v46  ;;  %v4147_v20 = vsel %vm2168_vm10, %v4063_v18, 0.0  ;;  %v9064_v6 = vld [vmem:[#allocation47_spill] sm:$0xff] }
 0x80c   : > { %v8374_v48 = vpop.xlane.xlu0 %3097  ;;  %v8376_v25 = vpop.xlane.xlu1 %4223  ;;  %v4138_v2 = vsel %vm2168_vm10, %v4060_v45, 0.0 }
 0x80d   : > { %9054 = vst [vmem:[#allocation36_spill] sm:$0xff] %v8374_v48  ;;  %9055 = vst [vmem:[#allocation50_spill] sm:$0xff] %v8376_v25  ;;  %v3012_v48 = vsel %vm2168_vm10, %v2922_v32, 0.0  ;;  %v4065_v25 = vmul.f32 %v9061_v19, %v4028_v44  ;;  %v9069_v19 = vld [vmem:[#allocation48_spill] sm:$0xff] }
 0x80f   : > { %3004 = vadd.xlane.f32.xlu0 %v3003_v23  ;;  %3010 = vadd.xlane.f32.xlu1 %v3009_v38  ;;  %v4153_v46 = vsel %vm2168_vm10, %v4065_v25, 0.0  ;;  %v4066_v23 = vmul.f32 %v9064_v6, %v4028_v44  ;;  %v9065_v38 = vld [vmem:[#allocation46_spill] sm:$0xff] }
 0x810   : > { %v8385_v42 = vpop.xlane.xlu0 %4232  ;;  %v8387_v59 = vpop.xlane.xlu1 %4238  ;;  %v2920_v32 = vmul.f32 %v9065_v38, %v8323_v29  ;;  %v4064_v29 = vmul.f32 %v9069_v19, %v4024_v28  ;;  %v9072_v38 = vld [vmem:[#allocation28_spill] sm:$0xff] }
 0x811   : > { %9058 = vst [vmem:[#allocation44_spill] sm:$0xff] %v8385_v42  ;;  %9059 = vst [vmem:[#allocation40_spill] sm:$0xff] %v8387_v59  ;;  %v4156_v18 = vsel %vm2168_vm10, %v4066_v23, 0.0 }
 0x812   : > { %v3006_v25 = vsel %vm2168_vm10, %v2920_v32, 0.0  ;;  %v4150_v23 = vsel %vm2168_vm10, %v4064_v29, 0.0  ;;  %v4067_v32 = vmul.f32 %v9072_v38, %v4028_v44 }
 0x813   : > { %3013 = vadd.xlane.f32.xlu0 %v3012_v48  ;;  %4139 = vadd.xlane.f32.xlu1 %v4138_v2  ;;  %v9068_v2 = vld [vmem:[#allocation26_spill] sm:$0xff] }
 0x814   : > { %v8394_v56 = vpop.xlane.xlu0 %4241  ;;  %v8396_v1 = vpop.xlane.xlu1 %3091  ;;  %v2923_v43 = vmul.f32 %v9068_v2, %v2884_v39  ;;  %v9073_v2 = vld [vmem:[#allocation27_spill] sm:$0xff]  ;;  %v4159_v19 = vsel %vm2168_vm10, %v4067_v32, 0.0 }
 0x815   : > { %9062 = vst [vmem:[#allocation45_spill] sm:$0xff] %v8394_v56  ;;  %9063 = vst [vmem:[#allocation42_spill] sm:$0xff] %v8396_v1  ;;  %v2924_v28 = vmul.f32 %v9073_v2, %v2884_v39  ;;  %v9076_v39 = vld [vmem:[#allocation29_spill] sm:$0xff] }
 0x816   : > { %v3015_v6 = vsel %vm2168_vm10, %v2923_v43, 0.0  ;;  %v5672_v43 = vpop.eup %5671  ;;  %v4068_v38 = vmul.f32 %v9076_v39, %v4028_v44  ;;  %5703 = vrcp.f32 %v8183_v36 }
 0x817   : > { %4148 = vadd.xlane.f32.xlu0 %v4147_v20  ;;  %4154 = vadd.xlane.f32.xlu1 %v4153_v46  ;;  %v3018_v29 = vsel %vm2168_vm10, %v2924_v28, 0.0  ;;  %v5674_v2 = vpop.eup %5673  ;;  %5705 = vrcp.f32 %v8195_v24 }
 0x818   : > { %v8405_v48 = vpop.xlane.xlu0 %3100  ;;  %v8407_v45 = vpop.xlane.xlu1 %3106 }
 0x819   : > { %9066 = vst [vmem:[#allocation47_spill] sm:$0xff] %v8405_v48  ;;  %9067 = vst [vmem:[#allocation46_spill] sm:$0xff] %v8407_v45 }
 0x81b   : > { %4157 = vadd.xlane.f32.xlu0 %v4156_v18  ;;  %3007 = vadd.xlane.f32.xlu1 %v3006_v25 }
 0x81c   : > { %v8416_v20 = vpop.xlane.xlu0 %3109  ;;  %v8418_v46 = vpop.xlane.xlu1 %4235 }
 0x81d   : > { %9070 = vst [vmem:[#allocation26_spill] sm:$0xff] %v8416_v20  ;;  %9071 = vst [vmem:[#allocation48_spill] sm:$0xff] %v8418_v46  ;;  %v3150_v20 = vmul.f32 %v5672_v43, %v8098_v22 }
 0x81f   : > { %3016 = vadd.xlane.f32.xlu0 %v3015_v6  ;;  %4151 = vadd.xlane.f32.xlu1 %v4150_v23 }
 0x820   : > { %v8428_v18 = vpop.xlane.xlu0 %4244  ;;  %v8430_v25 = vpop.xlane.xlu1 %4250 }
 0x821   : > { %9074 = vst [vmem:[#allocation28_spill] sm:$0xff] %v8428_v18  ;;  %9075 = vst [vmem:[#allocation27_spill] sm:$0xff] %v8430_v25  ;;  %v5676_v25 = vpop.eup %5675  ;;  %v4162_v18 = vsel %vm2168_vm10, %v4068_v38, 0.0  ;;  %5707 = vrcp.f32 %v8197_v21 }
 0x822   : > { %v5678_v45 = vpop.eup %5677  ;;  %v3154_v22 = vmul.f32 %v5676_v25, %v8109_v60  ;;  %5709 = vrcp.f32 %v8210_v0 }
 0x823   : > { %4160 = vadd.xlane.f32.xlu0 %v4159_v19  ;;  %3019 = vadd.xlane.f32.xlu1 %v3018_v29  ;;  %v5680_v28 = vpop.eup %5679  ;;  %v3149_v19 = vmul.f32 %v5674_v2, %v8082_v11  ;;  %v3182_v29 = vsub.f32 2.0, %v3150_v20  ;;  %5711 = vrcp.f32 %v8212_v14 }
 0x824   : > { %v8437_v6 = vpop.xlane.xlu0 %4253  ;;  %v8439_v23 = vpop.xlane.xlu1 %3103  ;;  %v3186_v20 = vsub.f32 2.0, %v3154_v22 }
 0x825   : > { %9077 = vst [vmem:[#allocation29_spill] sm:$0xff] %v8437_v6  ;;  %9078 = vst [vmem:[#allocation51_spill] sm:$0xff] %v8439_v23  ;;  %v5682_v39 = vpop.eup %5681  ;;  %v4293_v23 = vmul.f32 %v5678_v45, %v8111_v47  ;;  %v3181_v1 = vsub.f32 2.0, %v3149_v19  ;;  %5713 = vrcp.f32 %v8225_v50 }
 0x826   : > { %v5684_v38 = vpop.eup %5683  ;;  %v4294_v47 = vmul.f32 %v5682_v39, %v8119_v37  ;;  %5715 = vrcp.f32 %v8227_v52 }
 0x827   : > { %4163 = vadd.xlane.f32.xlu0 %v4162_v18  ;;  %v5686_v6 = vpop.eup %5685  ;;  %v4325_v56 = vsub.f32 2.0, %v4293_v23  ;;  %v4297_v59 = vmul.f32 %v5684_v38, %v8121_v8  ;;  %v3213_v23 = vmul.f32 %v5674_v2, %v3181_v1  ;;  %v3218_v8 = vmul.f32 %v5676_v25, %v3186_v20 }
 0x828   : > { %v8445_v32 = vpop.xlane.xlu0 %3112  ;;  %v8447_v44 = vpop.xlane.xlu1 %4247  ;;  %5717 = vrcp.f32 %v8238_v62 }
 0x829   : > { %9079 = vst [vmem:[#allocation52_spill] sm:$0xff] %v8445_v32  ;;  %9080 = vst [vmem:[#allocation53_spill] sm:$0xff] %v8447_v44  ;;  %v5688_v48 = vpop.eup %5687  ;;  %v3153_v32 = vmul.f32 %v5680_v28, %v8096_v54  ;;  %v3214_v44 = vmul.f32 %v5672_v43, %v3182_v29  ;;  %v4329_v42 = vsub.f32 2.0, %v4297_v59  ;;  %v4357_v27 = vmul.f32 %v5678_v45, %v4325_v56 }
 0x82a   : > { %v5690_v11 = vpop.eup %5689  ;;  %v3151_v19 = vmul.f32 %v5688_v48, %v8134_v31  ;;  %v3245_v1 = vmul.f32 0.17677669, %v3213_v23  ;;  %5719 = vrcp.f32 %v8240_v5 }
 0x82b   : > { %v5692_v60 = vpop.eup %5691  ;;  %v3185_v29 = vsub.f32 2.0, %v3153_v32  ;;  %v3246_v22 = vmul.f32 0.17677669, %v3214_v44  ;;  %v4389_v63 = vmul.f32 0.17677669, %v4357_v27  ;;  %v4361_v25 = vmul.f32 %v5684_v38, %v4329_v42 }
 0x82c   : > { %v8452_v46 = vpop.xlane.xlu0 %4256  ;;  %v8454_v18 = vpop.xlane.xlu1 %3115  ;;  %v3157_v37 = vmul.f32 %v5692_v60, %v8144_v26  ;;  %v3183_v12 = vsub.f32 2.0, %v3151_v19  ;;  %v3250_v26 = vmul.f32 0.17677669, %v3218_v8  ;;  %5721 = vrcp.f32 %v8252_v41 }
 0x82d   : > { %9081 = vst [vmem:[#allocation54_spill] sm:$0xff] %v8452_v46  ;;  %9082 = vst [vmem:[#allocation55_spill] sm:$0xff] %v8454_v18  ;;  %v4298_v46 = vmul.f32 %v5686_v6, %v8132_v57  ;;  %v3155_v18 = vmul.f32 %v5690_v11, %v8142_v40  ;;  %v4326_v57 = vsub.f32 2.0, %v4294_v47  ;;  %v5694_v31 = vpop.eup %5693  ;;  %v3217_v35 = vmul.f32 %v5680_v28, %v3185_v29 }
 0x82e   : > { %v5696_v32 = vpop.eup %5695  ;;  %v3189_v40 = vsub.f32 2.0, %v3157_v37  ;;  %v3158_v59 = vmul.f32 %v5694_v31, %v8154_v15  ;;  %v3215_v47 = vmul.f32 %v5688_v48, %v3183_v12  ;;  %5723 = vrcp.f32 %v8254_v61 }
 0x82f   : > { %v4330_v7 = vsub.f32 2.0, %v4298_v46  ;;  %v3187_v44 = vsub.f32 2.0, %v3155_v18  ;;  %v4358_v55 = vmul.f32 %v5682_v39, %v4326_v57  ;;  %v4295_v56 = vmul.f32 %v5696_v32, %v8156_v10  ;;  %v8474_v18 = vpop.eup %5697 }
 0x830   : > { %v8465_v54 = vpop.xlane.xlu0 %4259  ;;  %v2927_v43 = vpop.xlane.xlu1 %2926  ;;  %v3221_v28 = vmul.f32 %v5692_v60, %v3189_v40  ;;  %v4393_v39 = vmul.f32 0.17677669, %v4361_v25  ;;  %v3190_v38 = vsub.f32 2.0, %v3158_v59  ;;  %v3247_v48 = vmul.f32 0.17677669, %v3215_v47  ;;  %v9085_v47 = vld [vmem:[#allocation41_spill] sm:$0xff] }
 0x831   : > { %9083 = vst [vmem:[#allocation56_spill] sm:$0xff] %v8465_v54  ;;  %v4362_v20 = vmul.f32 %v5686_v6, %v4330_v7  ;;  %v3277_v19 = vmul.f32 %v3245_v1, %v2927_v43  ;;  %v3219_v27 = vmul.f32 %v5690_v11, %v3187_v44  ;;  %v5700_v42 = vpop.eup %5699  ;;  %v3249_v7 = vmul.f32 0.17677669, %v3217_v35 }
 0x832   : > { %v4390_v15 = vmul.f32 0.17677669, %v4358_v55  ;;  %v5702_v10 = vpop.eup %5701  ;;  %v4327_v29 = vsub.f32 2.0, %v4295_v56  ;;  %v4301_v60 = vmul.f32 %v5700_v42, %v8169_v3  ;;  %v3253_v35 = vmul.f32 0.17677669, %v3221_v28 }
 0x833   : > { %v4394_v12 = vmul.f32 0.17677669, %v4362_v20  ;;  %v5704_v43 = vpop.eup %5703  ;;  %v3251_v55 = vmul.f32 0.17677669, %v3219_v27  ;;  %v4302_v44 = vmul.f32 %v5702_v10, %v8181_v58  ;;  %v3222_v20 = vmul.f32 %v5694_v31, %v3190_v38 }
 0x834   : > { %v2930_v54 = vpop.xlane.xlu0 %2929  ;;  %v2939_v9 = vpop.xlane.xlu1 %2938  ;;  %v3152_v25 = vmul.f32 %v5704_v43, %v8183_v36  ;;  %v4359_v59 = vmul.f32 %v5696_v32, %v4327_v29  ;;  %v4333_v58 = vsub.f32 2.0, %v4301_v60  ;;  %5725 = vrcp.f32 %v8265_v49 }
 0x835   : > { %v3278_v2 = vmul.f32 %v3246_v22, %v2930_v54  ;;  %v3281_v8 = vmul.f32 %v3249_v7, %v2939_v9  ;;  %v5706_v1 = vpop.eup %5705  ;;  %v4334_v36 = vsub.f32 2.0, %v4302_v44  ;;  %5727 = vrcp.f32 %v8267_v30 }
 0x836   : > { %v5708_v3 = vpop.eup %5707  ;;  %v3156_v27 = vmul.f32 %v5706_v1, %v8195_v24  ;;  %v3184_v32 = vsub.f32 2.0, %v3152_v25  ;;  %5729 = vrcp.f32 %v8281_v13 }
 0x837   : > { %v3159_v7 = vmul.f32 %v5708_v3, %v8197_v21  ;;  %v5710_v29 = vpop.eup %5709  ;;  %v4366_v60 = vmul.f32 %v5702_v10, %v4334_v36  ;;  %5731 = vrcp.f32 %v8279_v17 }
 0x838   : > { %v2942_v45 = vpop.xlane.xlu0 %2941  ;;  %v4071_v46 = vpop.xlane.xlu1 %4070  ;;  %5733 = vrcp.f32 %v8292_v4 }
 0x839   : > { %v3282_v23 = vmul.f32 %v3250_v26, %v2942_v45  ;;  %v4421_v54 = vmul.f32 %v4389_v63, %v4071_v46  ;;  %v4299_v63 = vmul.f32 %v8474_v18, %v8167_v16  ;;  %v9084_v45 = vld [vmem:[#allocation38_spill] sm:$0xff]  ;;  %v3191_v44 = vsub.f32 2.0, %v3159_v7 }
 0x83a   : > { %5735 = vrcp.f32 %v8294_v33 }
 0x83b   : > { %v4453_v6 = vadd.f32 %v4421_v54, %v3277_v19  ;;  %v4331_v56 = vsub.f32 2.0, %v4299_v63  ;;  %v3254_v63 = vmul.f32 0.17677669, %v3222_v20  ;;  %5737 = vrcp.f32 %v8306_v53 }
 0x83c   : > { %v4074_v22 = vpop.xlane.xlu0 %4073  ;;  %v4083_v37 = vpop.xlane.xlu1 %4082  ;;  %5739 = vrcp.f32 %v8308_v51 }
 0x83d   : > { %v4422_v57 = vmul.f32 %v4390_v15, %v4074_v22  ;;  %v4425_v11 = vmul.f32 %v4393_v39, %v4083_v37  ;;  %v4520_v46 = vrot.slane %v4453_v6, %v9084_v45  ;;  %v9086_v39 = vld [vmem:[#allocation35_spill] sm:$0xff]  ;;  %v4363_v21 = vmul.f32 %v8474_v18, %v4331_v56 }
 0x83e   : > { %v4526_v38 = vadd.s32 4294967280, %v9086_v39  ;;  %5741 = vrcp.f32 %v8318_v34 }
 0x83f   : > { %v4454_v40 = vadd.f32 %v4422_v57, %v3278_v2  ;;  %v4457_v26 = vadd.f32 %v4425_v11, %v3281_v8  ;;  %v4391_v8 = vmul.f32 0.17677669, %v4359_v59  ;;  %v4365_v11 = vmul.f32 %v5700_v42, %v4333_v58 }
 0x840   : > { %v4086_v16 = vpop.xlane.xlu0 %4085  ;;  %v2933_v9 = vpop.xlane.xlu1 %2932  ;;  %v4395_v42 = vmul.f32 0.17677669, %v4363_v21 }
 0x841   : > { %v4524_v19 = vrot.slane %v4454_v40, %v9085_v47  ;;  %v4426_v54 = vmul.f32 %v4394_v12, %v4086_v16  ;;  %v3279_v2 = vmul.f32 %v3247_v48, %v2933_v9  ;;  %v4543_v24 = vrot.slane %v4457_v26, %v9084_v45 }
 0x842   : > { %v3188_v48 = vsub.f32 2.0, %v3156_v27  ;;  %v3161_v40 = vmul.f32 %v5710_v29, %v8210_v0  ;;  %v3216_v16 = vmul.f32 %v5704_v43, %v3184_v32  ;;  %v4397_v10 = vmul.f32 0.17677669, %v4365_v11 }
 0x843   : > { %v4525_v28 = vsel %vm1971_vm1, %v4524_v19, %v4520_v46  ;;  %v4458_v31 = vadd.f32 %v4426_v54, %v3282_v23  ;;  %v5712_v23 = vpop.eup %5711  ;;  %v4398_v27 = vmul.f32 0.17677669, %v4366_v60  ;;  %v3223_v43 = vmul.f32 %v5708_v3, %v3191_v44 }
 0x844   : > { %v2945_v6 = vpop.xlane.xlu0 %2944  ;;  %v2951_v15 = vpop.xlane.xlu1 %2950  ;;  %v3162_v59 = vmul.f32 %v5712_v23, %v8212_v14  ;;  %v3220_v46 = vmul.f32 %v5706_v1, %v3188_v48  ;;  %v3193_v0 = vsub.f32 2.0, %v3161_v40  ;;  %v3248_v36 = vmul.f32 0.17677669, %v3216_v16 }
 0x845   : > { %v4547_v22 = vrot.slane %v4458_v31, %v9085_v47  ;;  %v3283_v37 = vmul.f32 %v3251_v55, %v2945_v6  ;;  %v3285_v12 = vmul.f32 %v3253_v35, %v2951_v15  ;;  %v9087_v35 = vld [vmem:[#allocation24_spill] sm:$0xff]  ;;  %v5714_v19 = vpop.eup %5713  ;;  %v3255_v11 = vmul.f32 0.17677669, %v3223_v43 }
 0x846   : > { %v8501_v9 = vsub.s32 %v4526_v38, %v9087_v35  ;;  %v5716_v56 = vpop.eup %5715  ;;  %v3194_v1 = vsub.f32 2.0, %v3162_v59  ;;  %v4296_v6 = vmul.f32 %v5714_v19, %v8225_v50  ;;  %v3225_v50 = vmul.f32 %v5710_v29, %v3193_v0 }
 0x847   : > { %v4548_v57 = vsel %vm1971_vm1, %v4547_v22, %v4543_v24  ;;  %v5718_v31 = vpop.eup %5717  ;;  %v4300_v38 = vmul.f32 %v5716_v56, %v8227_v52 }
 0x848   : > { %v2954_v26 = vpop.xlane.xlu0 %2953  ;;  %v4077_v25 = vpop.xlane.xlu1 %4076  ;;  %v3257_v0 = vmul.f32 0.17677669, %v3225_v50 }
 0x849   : > { %v3286_v55 = vmul.f32 %v3254_v63, %v2954_v26  ;;  %v4423_v20 = vmul.f32 %v4391_v8, %v4077_v25  ;;  %v5720_v15 = vpop.eup %5719  ;;  %v4303_v63 = vmul.f32 %v5718_v31, %v8238_v62  ;;  %v4332_v62 = vsub.f32 2.0, %v4300_v38 }
 0x84a   : > { %v5722_v48 = vpop.eup %5721 }
 0x84b   : > { %v4455_v18 = vadd.f32 %v4423_v20, %v3279_v2  ;;  %v3252_v2 = vmul.f32 0.17677669, %v3220_v46  ;;  %v5724_v60 = vpop.eup %5723  ;;  %v4306_v26 = vmul.f32 %v5722_v48, %v8252_v41  ;;  %v4335_v16 = vsub.f32 2.0, %v4303_v63  ;;  %v9088_v63 = vld [vmem:[#allocation33_spill] sm:$0xff] }
 0x84c   : > { %v4089_v54 = vpop.xlane.xlu0 %4088  ;;  %v4095_v58 = vpop.xlane.xlu1 %4094  ;;  %v3160_v20 = vmul.f32 %v5724_v60, %v8254_v61  ;;  %5743 = vrcp.f32 %v9088_v63 }
 0x84d   : > { %v4530_v32 = vrot.slane %v4455_v18, %v8501_v9  ;;  %v4427_v7 = vmul.f32 %v4395_v42, %v4089_v54  ;;  %v4429_v14 = vmul.f32 %v4397_v10, %v4095_v58  ;;  %v5726_v18 = vpop.eup %5725  ;;  %v4338_v54 = vsub.f32 2.0, %v4306_v26  ;;  %v9090_v26 = vld [vmem:[#allocation25_spill] sm:$0xff] }
 0x84e   : > { %v4364_v58 = vmul.f32 %v5716_v56, %v4332_v62 }
 0x84f   : > { %v8510_v24 = vsel %vm4531_vm11, %v4530_v32, %v4525_v28  ;;  %v4459_v3 = vadd.f32 %v4427_v7, %v3283_v37  ;;  %v4461_v22 = vadd.f32 %v4429_v14, %v3285_v12  ;;  %v4328_v28 = vsub.f32 2.0, %v4296_v6 }
 0x850   : > { %v4098_v8 = vpop.xlane.xlu0 %4097  ;;  %v2936_v21 = vpop.xlane.xlu1 %2935  ;;  %v4305_v37 = vmul.f32 %v5720_v15, %v8240_v5  ;;  %v3226_v12 = vmul.f32 %v5712_v23, %v3194_v1  ;;  %v4533_v1 = vadd.s32 4294967272, %v9086_v39  ;;  %v4367_v6 = vmul.f32 %v5718_v31, %v4335_v16 }
 0x851   : > { %v4552_v44 = vrot.slane %v4459_v3, %v8501_v9  ;;  %v4430_v52 = vmul.f32 %v4398_v27, %v4098_v8  ;;  %v3280_v40 = vmul.f32 %v3248_v36, %v2936_v21  ;;  %v4562_v5 = vrot.slane %v4461_v22, %v9084_v45 }
 0x852   : > { %v4337_v41 = vsub.f32 2.0, %v4305_v37  ;;  %v4360_v61 = vmul.f32 %v5714_v19, %v4328_v28  ;;  %v3192_v27 = vsub.f32 2.0, %v3160_v20  ;;  %v3163_v36 = vmul.f32 %v5726_v18, %v8265_v49  ;;  %v9089_v37 = vld [vmem:[#allocation49_spill] sm:$0xff]  ;;  %v9091_v20 = vld [vmem:[#allocation30_spill] sm:$0xff] }
 0x853   : > { %v8520_v25 = vsel %vm4531_vm11, %v4552_v44, %v4548_v57  ;;  %v4462_v29 = vadd.f32 %v4430_v52, %v3286_v55  ;;  %v3258_v57 = vmul.f32 0.17677669, %v3226_v12  ;;  %v4396_v56 = vmul.f32 0.17677669, %v4364_v58 }
 0x854   : > { %v2948_v59 = vpop.xlane.xlu0 %2947  ;;  %v2957_v46 = vpop.xlane.xlu1 %2956  ;;  %v4369_v38 = vmul.f32 %v5720_v15, %v4337_v41  ;;  %v4392_v19 = vmul.f32 0.17677669, %v4360_v61  ;;  %v4370_v22 = vmul.f32 %v5722_v48, %v4338_v54  ;;  %v3195_v49 = vsub.f32 2.0, %v3163_v36  ;;  %v9092_v61 = vld [vmem:[#allocation31_spill] sm:$0xff] }
 0x855   : > { %v4566_v42 = vrot.slane %v4462_v29, %v9085_v47  ;;  %v3284_v23 = vmul.f32 %v3252_v2, %v2948_v59  ;;  %v8526_v10 = vmul.f32 %v3255_v11, %v2957_v46  ;;  %v8535_v2 = vpop.eup %5727  ;;  %v3224_v11 = vmul.f32 %v5724_v60, %v3192_v27 }
 0x856   : > { %v5730_v3 = vpop.eup %5729  ;;  %v8541_v31 = vsub.s32 %v4533_v1, %v9087_v35  ;;  %v4399_v15 = vmul.f32 0.17677669, %v4367_v6  ;;  %v3165_v28 = vmul.f32 %v8535_v2, %v8267_v30  ;;  %5745 = vrcp.f32 %v9089_v37 }
 0x857   : > { %v8529_v55 = vsel %vm1971_vm1, %v4566_v42, %v4562_v5  ;;  %v5732_v39 = vpop.eup %5731  ;;  %v4304_v48 = vmul.f32 %v5730_v3, %v8281_v13  ;;  %v4401_v12 = vmul.f32 0.17677669, %v4369_v38  ;;  %5747 = vrcp.f32 %v9090_v26 }
 0x858   : > { %v2963_v43 = vpop.xlane.xlu0 %2962  ;;  %v2966_v32 = vpop.xlane.xlu1 %2965  ;;  %v4402_v16 = vmul.f32 0.17677669, %v4370_v22  ;;  %v3166_v35 = vmul.f32 %v5732_v39, %v8279_v17  ;;  %5749 = vrcp.f32 %v9091_v20  ;;  %v3256_v5 = vmul.f32 0.17677669, %v3224_v11 }
 0x859   : > { %v3289_v7 = vmul.f32 %v3257_v0, %v2963_v43  ;;  %v8532_v14 = vmul.f32 %v3258_v57, %v2966_v32  ;;  %v5734_v52 = vpop.eup %5733  ;;  %v3227_v42 = vmul.f32 %v5726_v18, %v3195_v49  ;;  %v4336_v54 = vsub.f32 2.0, %v4304_v48  ;;  %v9093_v32 = vld [vmem:[#allocation32_spill] sm:$0xff] }
 0x85a   : > { %v5736_v62 = vpop.eup %5735  ;;  %5751 = vrcp.f32 %v9092_v61  ;;  %v3197_v36 = vsub.f32 2.0, %v3165_v28  ;;  %v3198_v6 = vsub.f32 2.0, %v3166_v35 }
 0x85b   : > { %v5738_v30 = vpop.eup %5737  ;;  %5753 = vrcp.f32 %v9093_v32  ;;  %v4368_v49 = vmul.f32 %v5730_v3, %v4336_v54 }
 0x85c   : > { %v4080_v8 = vpop.xlane.xlu0 %4079  ;;  %v4092_v21 = vpop.xlane.xlu1 %4091  ;;  %v4310_v43 = vmul.f32 %v5738_v30, %v8306_v53 }
 0x85d   : > { %v4424_v50 = vmul.f32 %v4392_v19, %v4080_v8  ;;  %v4428_v44 = vmul.f32 %v4396_v56, %v4092_v21  ;;  %v8566_v22 = vpop.eup %5739  ;;  %v4400_v35 = vmul.f32 0.17677669, %v4368_v49 }
 0x85e   : > { %v8571_v8 = vpop.eup %5741  ;;  %v4342_v21 = vsub.f32 2.0, %v4310_v43 }
 0x85f   : > { %v4456_v60 = vadd.f32 %v4424_v50, %v3280_v40  ;;  %v4460_v29 = vadd.f32 %v4428_v44, %v3284_v23  ;;  %v4307_v40 = vmul.f32 %v5734_v52, %v8292_v4  ;;  %v4309_v23 = vmul.f32 %v5736_v62, %v8294_v33 }
 0x860   : > { %v4101_v59 = vpop.xlane.xlu0 %4100  ;;  %v4107_v46 = vpop.xlane.xlu1 %4106  ;;  %v3229_v50 = vmul.f32 %v8535_v2, %v3197_v36 }
 0x861   : > { %v4537_v13 = vrot.slane %v4456_v60, %v8541_v31  ;;  %v4557_v41 = vrot.slane %v4460_v29, %v8541_v31  ;;  %v4431_v0 = vmul.f32 %v4399_v15, %v4101_v59  ;;  %v4433_v57 = vmul.f32 %v4401_v12, %v4107_v46  ;;  %v8574_v15 = vpop.eup %5743 }
 0x862   : > { %v4339_v56 = vsub.f32 2.0, %v4307_v40  ;;  %v3230_v60 = vmul.f32 %v5732_v39, %v3198_v6  ;;  %v9095_v40 = vld [vmem:[#allocation50_spill] sm:$0xff]  ;;  %v9098_v6 = vld [vmem:[#allocation36_spill] sm:$0xff] }
 0x863   : > { %v4539_v17 = vsel %vm4538_vm12, %v4537_v13, %v8510_v24  ;;  %v4558_v18 = vsel %vm4538_vm12, %v4557_v41, %v8520_v25  ;;  %v4463_v58 = vadd.f32 %v4431_v0, %v8526_v10  ;;  %v4465_v27 = vadd.f32 %v4433_v57, %v3289_v7  ;;  %v5746_v29 = vpop.eup %5745 }
 0x864   : > { %v8563_v4 = vsel %vm2036_vm2, %v4558_v18, %v4539_v17  ;;  %v4110_v33 = vpop.xlane.xlu0 %4109  ;;  %v2960_v1 = vpop.xlane.xlu1 %2959  ;;  %v3259_v25 = vmul.f32 0.17677669, %v3227_v42  ;;  %v4341_v10 = vsub.f32 2.0, %v4309_v23  ;;  %v4371_v3 = vmul.f32 %v5734_v52, %v4339_v56 }
 0x865   : > { %v4571_v38 = vrot.slane %v4463_v58, %v8501_v9  ;;  %v4434_v24 = vmul.f32 %v4402_v16, %v4110_v33  ;;  %v3288_v19 = vmul.f32 %v3256_v5, %v2960_v1  ;;  %v4581_v28 = vrot.slane %v4465_v27, %v9084_v45  ;;  %v5748_v46 = vpop.eup %5747 }
 0x866   : > { %v3167_v16 = vmul.f32 %v8571_v8, %v8318_v34  ;;  %v4373_v59 = vmul.f32 %v5736_v62, %v4341_v10  ;;  %v3169_v5 = vmul.f32 %v8574_v15, %v9088_v63  ;;  %v4374_v13 = vmul.f32 %v5738_v30, %v4342_v21  ;;  %v5750_v41 = vpop.eup %5749  ;;  %v9096_v62 = vld [vmem:[#allocation43_spill] sm:$0xff]  ;;  %v9099_v10 = vld [vmem:[#allocation44_spill] sm:$0xff] }
 0x867   : > { %v4572_v53 = vsel %vm4531_vm11, %v4571_v38, %v8529_v55  ;;  %v4466_v7 = vadd.f32 %v4434_v24, %v8532_v14  ;;  %v3164_v55 = vmul.f32 %v8566_v22, %v8308_v51  ;;  %v9094_v14 = vld [vmem:[#allocation37_spill] sm:$0xff]  ;;  %v3261_v51 = vmul.f32 0.17677669, %v3229_v50  ;;  %v5752_v23 = vpop.eup %5751  ;;  %v9097_v30 = vld [vmem:[#allocation39_spill] sm:$0xff] }
 0x868   : > { %v2969_v11 = vpop.xlane.xlu0 %2968  ;;  %v2975_v44 = vpop.xlane.xlu1 %2974  ;;  %5755 = vrcp.f32 %v9094_v14  ;;  %v3262_v0 = vmul.f32 0.17677669, %v3230_v60  ;;  %v4308_v54 = vmul.f32 %v5746_v29, %v9089_v37  ;;  %v4403_v34 = vmul.f32 0.17677669, %v4371_v3 }
 0x869   : > { %v4585_v48 = vrot.slane %v4466_v7, %v9085_v47  ;;  %v3291_v12 = vmul.f32 %v3259_v25, %v2969_v11  ;;  %v3196_v52 = vsub.f32 2.0, %v3164_v55  ;;  %5757 = vrcp.f32 %v9095_v40  ;;  %v5754_v1 = vpop.eup %5753 }
 0x86a   : > { %v3199_v17 = vsub.f32 2.0, %v3167_v16  ;;  %5759 = vrcp.f32 %v9096_v62  ;;  %v4405_v58 = vmul.f32 0.17677669, %v4373_v59  ;;  %v3201_v63 = vsub.f32 2.0, %v3169_v5 }
 0x86b   : > { %v4586_v2 = vsel %vm1971_vm1, %v4585_v48, %v4581_v28  ;;  %v3170_v27 = vmul.f32 %v5748_v46, %v9090_v26  ;;  %5761 = vrcp.f32 %v9097_v30  ;;  %v4406_v33 = vmul.f32 0.17677669, %v4374_v13  ;;  %v9100_v26 = vld [vmem:[#allocation40_spill] sm:$0xff]  ;;  %v9101_v28 = vld [vmem:[#allocation45_spill] sm:$0xff] }
 0x86c   : > { %v2978_v42 = vpop.xlane.xlu0 %2977  ;;  %v4104_v39 = vpop.xlane.xlu1 %4103  ;;  %5763 = vrcp.f32 %v9098_v6  ;;  %v4340_v56 = vsub.f32 2.0, %v4308_v54  ;;  %v4311_v25 = vmul.f32 %v5750_v41, %v9091_v20  ;;  %v3293_v7 = vmul.f32 %v3261_v51, %v2975_v44 }
 0x86d   : > { %v4432_v57 = vmul.f32 %v4400_v35, %v4104_v39  ;;  %5765 = vrcp.f32 %v9099_v10  ;;  %v3202_v11 = vsub.f32 2.0, %v3170_v27  ;;  %v4314_v50 = vmul.f32 %v5754_v1, %v9093_v32 }
 0x86e   : > { %5767 = vrcp.f32 %v9100_v26  ;;  %v4343_v44 = vsub.f32 2.0, %v4311_v25  ;;  %v4372_v5 = vmul.f32 %v5746_v29, %v4340_v56  ;;  %v9104_v25 = vld [vmem:[#allocation48_spill] sm:$0xff] }
 0x86f   : > { %v4464_v18 = vadd.f32 %v4432_v57, %v3288_v19  ;;  %v4313_v19 = vmul.f32 %v5752_v23, %v9092_v61  ;;  %5769 = vrcp.f32 %v9101_v28  ;;  %v3294_v61 = vmul.f32 %v3262_v0, %v2978_v42 }
 0x870   : > { %v4113_v36 = vpop.xlane.xlu0 %4112  ;;  %v4119_v43 = vpop.xlane.xlu1 %4118  ;;  %v4346_v39 = vsub.f32 2.0, %v4314_v50  ;;  %v3233_v42 = vmul.f32 %v8574_v15, %v3201_v63  ;;  %v3234_v54 = vmul.f32 %v5748_v46, %v3202_v11 }
 0x871   : > { %v4576_v37 = vrot.slane %v4464_v18, %v8541_v31  ;;  %v4435_v38 = vmul.f32 %v4403_v34, %v4113_v36  ;;  %v4437_v24 = vmul.f32 %v4405_v58, %v4119_v43  ;;  %v4345_v35 = vsub.f32 2.0, %v4313_v19  ;;  %v9102_v18 = vld [vmem:[#allocation42_spill] sm:$0xff] }
 0x872   : > { %v4375_v34 = vmul.f32 %v5750_v41, %v4343_v44  ;;  %5771 = vrcp.f32 %v9102_v18  ;;  %v3265_v63 = vmul.f32 0.17677669, %v3233_v42  ;;  %v4378_v43 = vmul.f32 %v5754_v1, %v4346_v39  ;;  %v9107_v39 = vld [vmem:[#allocation27_spill] sm:$0xff] }
 0x873   : > { %v4577_v49 = vsel %vm4538_vm12, %v4576_v37, %v4572_v53  ;;  %v4467_v21 = vadd.f32 %v4435_v38, %v3291_v12  ;;  %v4469_v3 = vadd.f32 %v4437_v24, %v3293_v7  ;;  %v3228_v53 = vmul.f32 %v8566_v22, %v3196_v52 }
 0x874   : > { %v8602_v48 = vsel %vm2038_vm3, %v4577_v49, %v8563_v4  ;;  %v4122_v20 = vpop.xlane.xlu0 %4121  ;;  %v2972_v60 = vpop.xlane.xlu1 %2971  ;;  %v3231_v4 = vmul.f32 %v8571_v8, %v3199_v17  ;;  %v4404_v8 = vmul.f32 0.17677669, %v4372_v5  ;;  %v4377_v17 = vmul.f32 %v5752_v23, %v4345_v35  ;;  %v9105_v49 = vld [vmem:[#allocation46_spill] sm:$0xff] }
 0x875   : > { %v4590_v55 = vrot.slane %v4467_v21, %v8501_v9  ;;  %v4438_v16 = vmul.f32 %v4406_v33, %v4122_v20  ;;  %v8606_v12 = vpop.eup %5755  ;;  %v4600_v0 = vrot.slane %v4469_v3, %v9084_v45  ;;  %v3260_v52 = vmul.f32 0.17677669, %v3228_v53  ;;  %v9103_v33 = vld [vmem:[#allocation47_spill] sm:$0xff]  ;;  %v9106_v20 = vld [vmem:[#allocation28_spill] sm:$0xff] }
 0x876   : > { %v3168_v22 = vmul.f32 %v8606_v12, %v9094_v14  ;;  %v3263_v15 = vmul.f32 0.17677669, %v3231_v4  ;;  %5773 = vrcp.f32 %v9103_v33  ;;  %v3266_v41 = vmul.f32 0.17677669, %v3234_v54 }
 0x877   : > { %v4591_v32 = vsel %vm4531_vm11, %v4590_v55, %v4586_v2  ;;  %v4470_v59 = vadd.f32 %v4438_v16, %v3294_v61  ;;  %v5758_v2 = vpop.eup %5757  ;;  %v3292_v14 = vmul.f32 %v3260_v52, %v2972_v60  ;;  %5775 = vrcp.f32 %v9104_v25 }
 0x878   : > { %v2981_v13 = vpop.xlane.xlu0 %2980  ;;  %v2987_v51 = vpop.xlane.xlu1 %2986  ;;  %v3200_v24 = vsub.f32 2.0, %v3168_v22  ;;  %v4312_v56 = vmul.f32 %v5758_v2, %v9095_v40  ;;  %v4407_v23 = vmul.f32 0.17677669, %v4375_v34  ;;  %5777 = vrcp.f32 %v9105_v49 }
 0x879   : > { %v4604_v57 = vrot.slane %v4470_v59, %v9085_v47  ;;  %v8617_v58 = vpop.eup %5759  ;;  %v4409_v21 = vmul.f32 0.17677669, %v4377_v17  ;;  %5779 = vrcp.f32 %v9106_v20  ;;  %v3295_v60 = vmul.f32 %v3263_v15, %v2981_v13  ;;  %v9109_v17 = vld [vmem:[#allocation29_spill] sm:$0xff] }
 0x87a   : > { %v8619_v46 = vpop.eup %5761  ;;  %v3171_v7 = vmul.f32 %v8617_v58, %v9096_v62  ;;  %v4410_v55 = vmul.f32 0.17677669, %v4378_v43  ;;  %v3297_v16 = vmul.f32 %v3265_v63, %v2987_v51  ;;  %v4344_v59 = vsub.f32 2.0, %v4312_v56  ;;  %v9108_v51 = vld [vmem:[#allocation26_spill] sm:$0xff] }
 0x87b   : > { %v4605_v29 = vsel %vm1971_vm1, %v4604_v57, %v4600_v0  ;;  %v5764_v38 = vpop.eup %5763  ;;  %v3173_v50 = vmul.f32 %v8619_v46, %v9097_v30  ;;  %5781 = vrcp.f32 %v9107_v39  ;;  %v3232_v54 = vmul.f32 %v8606_v12, %v3200_v24  ;;  %v9110_v12 = vld [vmem:[#allocation51_spill] sm:$0xff] }
 0x87c   : > { %v2990_v27 = vpop.xlane.xlu0 %2989  ;;  %v4116_v36 = vpop.xlane.xlu1 %4115  ;;  %v3174_v35 = vmul.f32 %v5764_v38, %v9098_v6  ;;  %5783 = vrcp.f32 %v9108_v51  ;;  %v3203_v22 = vsub.f32 2.0, %v3171_v7  ;;  %v9111_v7 = vld [vmem:[#allocation53_spill] sm:$0xff] }
 0x87d   : > { %v4436_v37 = vmul.f32 %v4404_v8, %v4116_v36  ;;  %v5766_v19 = vpop.eup %5765  ;;  %v3298_v52 = vmul.f32 %v3266_v41, %v2990_v27  ;;  %5785 = vrcp.f32 %v9109_v17  ;;  %v3264_v56 = vmul.f32 0.17677669, %v3232_v54 }
 0x87e   : > { %v5768_v11 = vpop.eup %5767  ;;  %v4315_v5 = vmul.f32 %v5766_v19, %v9099_v10  ;;  %v3206_v8 = vsub.f32 2.0, %v3174_v35  ;;  %5787 = vrcp.f32 %v9110_v12 }
 0x87f   : > { %v4468_v1 = vadd.f32 %v4436_v37, %v3292_v14  ;;  %v5770_v3 = vpop.eup %5769  ;;  %v4317_v30 = vmul.f32 %v5768_v11, %v9100_v26  ;;  %5789 = vrcp.f32 %v9111_v7 }
 0x880   : > { %v4125_v61 = vpop.xlane.xlu0 %4124  ;;  %v4131_v40 = vpop.xlane.xlu1 %4130  ;;  %v4318_v0 = vmul.f32 %v5770_v3, %v9101_v28  ;;  %v4376_v28 = vmul.f32 %v5758_v2, %v4344_v59  ;;  %v4347_v15 = vsub.f32 2.0, %v4315_v5 }
 0x881   : > { %v4595_v44 = vrot.slane %v4468_v1, %v8541_v31  ;;  %v4439_v53 = vmul.f32 %v4407_v23, %v4125_v61  ;;  %v4441_v62 = vmul.f32 %v4409_v21, %v4131_v40  ;;  %v4349_v63 = vsub.f32 2.0, %v4317_v30  ;;  %v8646_v43 = vpop.eup %5771  ;;  %v9113_v30 = vld [vmem:[#allocation54_spill] sm:$0xff] }
 0x882   : > { %v4350_v14 = vsub.f32 2.0, %v4318_v0  ;;  %v3235_v23 = vmul.f32 %v8617_v58, %v3203_v22  ;;  %v3238_v1 = vmul.f32 %v5764_v38, %v3206_v8  ;;  %v4408_v21 = vmul.f32 0.17677669, %v4376_v28 }
 0x883   : > { %v4596_v4 = vsel %vm4538_vm12, %v4595_v44, %v4591_v32  ;;  %v4471_v13 = vadd.f32 %v4439_v53, %v3295_v60  ;;  %v4473_v42 = vadd.f32 %v4441_v62, %v3297_v16  ;;  %v3205_v32 = vsub.f32 2.0, %v3173_v50  ;;  %v8652_v2 = vpop.eup %5773  ;;  %v9112_v44 = vld [vmem:[#allocation52_spill] sm:$0xff] }
 0x884   : > { %v8640_v57 = vsel %vm2040_vm4, %v4596_v4, %v8602_v48  ;;  %v4134_v6 = vpop.xlane.xlu0 %4133  ;;  %v2984_v10 = vpop.xlane.xlu1 %2983  ;;  %v3172_v60 = vmul.f32 %v8646_v43, %v9102_v18  ;;  %v4379_v40 = vmul.f32 %v5766_v19, %v4347_v15  ;;  %5791 = vrcp.f32 %v9112_v44 }
 0x885   : > { %v4609_v26 = vrot.slane %v4471_v13, %v8501_v9  ;;  %v4442_v34 = vmul.f32 %v4410_v55, %v4134_v6  ;;  %v4619_v41 = vrot.slane %v4473_v42, %v9084_v45  ;;  %v5776_v50 = vpop.eup %5775  ;;  %v4381_v55 = vmul.f32 %v5768_v11, %v4349_v63 }
 0x886   : > { %v8659_v16 = vpop.eup %5777  ;;  %v4382_v62 = vmul.f32 %v5770_v3, %v4350_v14  ;;  %v3267_v38 = vmul.f32 0.17677669, %v3235_v23  ;;  %v4316_v5 = vmul.f32 %v5776_v50, %v9104_v25  ;;  %5793 = vrcp.f32 %v9113_v30 }
 0x887   : > { %v4610_v36 = vsel %vm4531_vm11, %v4609_v26, %v4605_v29  ;;  %v4474_v48 = vadd.f32 %v4442_v34, %v3298_v52  ;;  %v3237_v29 = vmul.f32 %v8619_v46, %v3205_v32  ;;  %v8662_v35 = vpop.eup %5779  ;;  %v3296_v46 = vmul.f32 %v3264_v56, %v2984_v10 }
 0x888   : > { %v2993_v37 = vpop.xlane.xlu0 %2992  ;;  %v2999_v27 = vpop.xlane.xlu1 %2998  ;;  %v3270_v4 = vmul.f32 0.17677669, %v3238_v1  ;;  %v3204_v11 = vsub.f32 2.0, %v3172_v60  ;;  %v4411_v42 = vmul.f32 0.17677669, %v4379_v40  ;;  %v3175_v6 = vmul.f32 %v8652_v2, %v9103_v33  ;;  %v9114_v33 = vld [vmem:[#allocation55_spill] sm:$0xff] }
 0x889   : > { %v4623_v24 = vrot.slane %v4474_v48, %v9085_v47  ;;  %v3269_v18 = vmul.f32 0.17677669, %v3237_v29  ;;  %v5782_v19 = vpop.eup %5781  ;;  %v4413_v0 = vmul.f32 0.17677669, %v4381_v55  ;;  %v3177_v3 = vmul.f32 %v8659_v16, %v9105_v49  ;;  %v9115_v49 = vld [vmem:[#allocation56_spill] sm:$0xff] }
 0x88a   : > { %v3299_v54 = vmul.f32 %v3267_v38, %v2993_v37  ;;  %v4414_v52 = vmul.f32 0.17677669, %v4382_v62  ;;  %v5784_v25 = vpop.eup %5783  ;;  %v4348_v28 = vsub.f32 2.0, %v4316_v5  ;;  %v4319_v15 = vmul.f32 %v8662_v35, %v9106_v20 }
 0x88b   : > { %v4624_v61 = vsel %vm1971_vm1, %v4623_v24, %v4619_v41  ;;  %v3301_v26 = vmul.f32 %v3269_v18, %v2999_v27  ;;  %v4321_v63 = vmul.f32 %v5782_v19, %v9107_v39  ;;  %5795 = vrcp.f32 %v9114_v33  ;;  %v5786_v48 = vpop.eup %5785 }
 0x88c   : > { %v3002_v58 = vpop.xlane.xlu0 %3001  ;;  %v4128_v53 = vpop.xlane.xlu1 %4127  ;;  %5797 = vrcp.f32 %v9115_v49  ;;  %v3178_v27 = vmul.f32 %v5784_v25, %v9108_v51  ;;  %v3207_v60 = vsub.f32 2.0, %v3175_v6  ;;  %v3209_v40 = vsub.f32 2.0, %v3177_v3 }
 0x88d   : > { %v4440_v59 = vmul.f32 %v4408_v21, %v4128_v53  ;;  %v5788_v20 = vpop.eup %5787  ;;  %v3302_v29 = vmul.f32 %v3270_v4, %v3002_v58  ;;  %v3236_v21 = vmul.f32 %v8646_v43, %v3204_v11  ;;  %v4380_v55 = vmul.f32 %v5776_v50, %v4348_v28 }
 0x88e   : > { %v5790_v53 = vpop.eup %5789  ;;  %v4351_v51 = vsub.f32 2.0, %v4319_v15  ;;  %v4353_v62 = vsub.f32 2.0, %v4321_v63  ;;  %v3210_v38 = vsub.f32 2.0, %v3178_v27  ;;  %v3239_v50 = vmul.f32 %v8652_v2, %v3207_v60 }
 0x88f   : > { %v4472_v13 = vadd.f32 %v4440_v59, %v3296_v46  ;;  %v3176_v59 = vmul.f32 %v5788_v20, %v9110_v12  ;;  %v3268_v11 = vmul.f32 0.17677669, %v3236_v21  ;;  %v4412_v6 = vmul.f32 0.17677669, %v4380_v55 }
 0x890   : > { %v4137_v10 = vpop.xlane.xlu0 %4136  ;;  %v4143_v22 = vpop.xlane.xlu1 %4142  ;;  %v4383_v12 = vmul.f32 %v8662_v35, %v4351_v51  ;;  %v4385_v3 = vmul.f32 %v5782_v19, %v4353_v62 }
 0x891   : > { %v4614_v34 = vrot.slane %v4472_v13, %v8541_v31  ;;  %v4443_v32 = vmul.f32 %v4411_v42, %v4137_v10  ;;  %v4445_v8 = vmul.f32 %v4413_v0, %v4143_v22  ;;  %v5792_v18 = vpop.eup %5791  ;;  %v3241_v42 = vmul.f32 %v8659_v16, %v3209_v40 }
 0x892   : > { %v3179_v10 = vmul.f32 %v5792_v18, %v9112_v44  ;;  %v3242_v22 = vmul.f32 %v5784_v25, %v3210_v38 }
 0x893   : > { %v4615_v14 = vsel %vm4538_vm12, %v4614_v34, %v4610_v36  ;;  %v4475_v37 = vadd.f32 %v4443_v32, %v3299_v54  ;;  %v4477_v41 = vadd.f32 %v4445_v8, %v3301_v26  ;;  %v4322_v36 = vmul.f32 %v5786_v48, %v9109_v17 }
 0x894   : > { %v8680_v24 = vsel %vm2042_vm5, %v4615_v14, %v8640_v57  ;;  %v4146_v56 = vpop.xlane.xlu0 %4145  ;;  %v2996_v23 = vpop.xlane.xlu1 %2995  ;;  %v4320_v17 = vmul.f32 %v5790_v53, %v9111_v7  ;;  %v3208_v54 = vsub.f32 2.0, %v3176_v59  ;;  %v3271_v8 = vmul.f32 0.17677669, %v3239_v50 }
 0x895   : > { %v4628_v39 = vrot.slane %v4475_v37, %v8501_v9  ;;  %v4446_v1 = vmul.f32 %v4414_v52, %v4146_v56  ;;  %v4638_v4 = vrot.slane %v4477_v41, %v9084_v45  ;;  %v4354_v13 = vsub.f32 2.0, %v4322_v36 }
 0x896   : > { %v3300_v34 = vmul.f32 %v3268_v11, %v2996_v23  ;;  %v4352_v7 = vsub.f32 2.0, %v4320_v17  ;;  %v3273_v15 = vmul.f32 0.17677669, %v3241_v42  ;;  %v4415_v14 = vmul.f32 0.17677669, %v4383_v12 }
 0x897   : > { %v4629_v57 = vsel %vm4531_vm11, %v4628_v39, %v4624_v61  ;;  %v4478_v46 = vadd.f32 %v4446_v1, %v3302_v29  ;;  %v5794_v61 = vpop.eup %5793  ;;  %v4386_v16 = vmul.f32 %v5786_v48, %v4354_v13  ;;  %v4417_v37 = vmul.f32 0.17677669, %v4385_v3 }
 0x898   : > { %v3005_v58 = vpop.xlane.xlu0 %3004  ;;  %v3011_v5 = vpop.xlane.xlu1 %3010  ;;  %v4323_v2 = vmul.f32 %v5794_v61, %v9113_v30  ;;  %v3211_v19 = vsub.f32 2.0, %v3179_v10  ;;  %v3274_v27 = vmul.f32 0.17677669, %v3242_v22  ;;  %v3240_v56 = vmul.f32 %v5788_v20, %v3208_v54 }
 0x899   : > { %v4642_v43 = vrot.slane %v4478_v46, %v9085_v47  ;;  %v5796_v28 = vpop.eup %5795  ;;  %v3303_v41 = vmul.f32 %v3271_v8, %v3005_v58  ;;  %v3305_v29 = vmul.f32 %v3273_v15, %v3011_v5  ;;  %v4418_v21 = vmul.f32 0.17677669, %v4386_v16 }
 0x89a   : > { %v5798_v35 = vpop.eup %5797  ;;  %v4355_v30 = vsub.f32 2.0, %v4323_v2  ;;  %v3180_v48 = vmul.f32 %v5796_v28, %v9114_v33  ;;  %v4384_v60 = vmul.f32 %v5790_v53, %v4352_v7  ;;  %v3243_v33 = vmul.f32 %v5792_v18, %v3211_v19 }
 0x89b   : > { %v4643_v0 = vsel %vm1971_vm1, %v4642_v43, %v4638_v4  ;;  %v4324_v40 = vmul.f32 %v5798_v35, %v9115_v49  ;;  %v3272_v4 = vmul.f32 0.17677669, %v3240_v56 }
 0x89c   : > { %v3014_v52 = vpop.xlane.xlu0 %3013  ;;  %v4140_v26 = vpop.xlane.xlu1 %4139  ;;  %v3212_v5 = vsub.f32 2.0, %v3180_v48  ;;  %v4416_v43 = vmul.f32 0.17677669, %v4384_v60  ;;  %v3275_v12 = vmul.f32 0.17677669, %v3243_v33  ;;  %v4713_v48 = vld [vmem:[%s9118_s20 + $0x8] sm:$0xff] }
 0x89d   : > { %v4444_v32 = vmul.f32 %v4412_v6, %v4140_v26  ;;  %v3306_v38 = vmul.f32 %v3274_v27, %v3014_v52  ;;  %v4356_v53 = vsub.f32 2.0, %v4324_v40 }
 0x89e   : > { %v3244_v3 = vmul.f32 %v5796_v28, %v3212_v5 }
 0x89f   : > { %v4476_v63 = vadd.f32 %v4444_v32, %v3300_v34  ;;  %v4388_v22 = vmul.f32 %v5798_v35, %v4356_v53 }
 0x8a0   : > { %v4149_v44 = vpop.xlane.xlu0 %4148  ;;  %v4155_v25 = vpop.xlane.xlu1 %4154  ;;  %v3276_v7 = vmul.f32 0.17677669, %v3244_v3  ;;  %v5081_v3 = vld [vmem:[%s8808_s12] ss:$0 sm:$0xff] }
 0x8a1   : > { %v4633_v23 = vrot.slane %v4476_v63, %v8541_v31  ;;  %v4447_v39 = vmul.f32 %v4415_v14, %v4149_v44  ;;  %v4449_v1 = vmul.f32 %v4417_v37, %v4155_v25 }
 0x8a3   : > { %v4634_v36 = vsel %vm4538_vm12, %v4633_v23, %v4629_v57  ;;  %v4479_v55 = vadd.f32 %v4447_v39, %v3303_v41  ;;  %v4481_v51 = vadd.f32 %v4449_v1, %v3305_v29  ;;  %v4387_v57 = vmul.f32 %v5794_v61, %v4355_v30  ;;  %v9116_v41 = vld [vmem:[#allocation34_spill] sm:$0xff] }
 0x8a4   : > { %v4158_v62 = vpop.xlane.xlu0 %4157  ;;  %v3008_v46 = vpop.xlane.xlu1 %3007  ;;  %v4677_v20 = vsel %vm2044_vm6, %v4634_v36, %v8680_v24  ;;  %v4714_v1 = vld [vmem:[%s9118_s20 + $0x10] sm:$0xff]  ;;  %v9119_v30 = vmov 0.0  }
 0x8a5   : > { %v4647_v59 = vrot.slane %v4479_v55, %v8501_v9  ;;  %v4450_v58 = vmul.f32 %v4418_v21, %v4158_v62  ;;  %v4657_v50 = vrot.slane %v4481_v51, %v9084_v45  ;;  %v3304_v24 = vmul.f32 %v3272_v4, %v3008_v46  ;;  %v4712_v21 = vld [vmem:[%s9118_s20] sm:$0xff]  ;;  %v5078_v46 = vld [vmem:[#allocation12] ss:$0 sm:$0xff] }
 0x8a6   : > { %v4419_v18 = vmul.f32 0.17677669, %v4387_v57  ;;  %v5077_v51 = vld [vmem:[#allocation10] ss:$0 sm:$0xff] }
 0x8a7   : > { %v4648_v49 = vsel %vm4531_vm11, %v4647_v59, %v4643_v0  ;;  %v4482_v11 = vadd.f32 %v4450_v58, %v3306_v38  ;;  %v5079_v59 = vld [vmem:[%s8807_s11] ss:$0 sm:$0xff] }
 0x8a8   : > { %v3017_v13 = vpop.xlane.xlu0 %3016  ;;  %v4152_v17 = vpop.xlane.xlu1 %4151 }
 0x8a9   : > { %v4661_v42 = vrot.slane %v4482_v11, %v9085_v47  ;;  %v4448_v6 = vmul.f32 %v4416_v43, %v4152_v17  ;;  %v3307_v26 = vmul.f32 %v3275_v12, %v3017_v13  ;;  %v4420_v47 = vmul.f32 0.17677669, %v4388_v22  ;;  %v4827_v17 = vld [vmem:[%s8810_s14 + $0x8] sm:$0xff] }
 0x8aa   : > { %5119 = vmatpush3.msra.mxu0 %v4827_v17 }
 0x8ab   : > { %v4662_v54 = vsel %vm1971_vm1, %v4661_v42, %v4657_v50  ;;  %v4480_v10 = vadd.f32 %v4448_v6, %v3304_v24  ;;  %v4826_v50 = vld [vmem:[%s8810_s14] sm:$0xff]  ;;  %5120 = vmatprep.subr.mxu0 %v9119_v30 }
 0x8ac   : > { %v4161_v52 = vpop.xlane.xlu0 %4160  ;;  %v3020_v34 = vpop.xlane.xlu1 %3019  ;;  %5121 = vmatpush3.msra.mxu0 %v4826_v50 }
 0x8ad   : > { %v4652_v0 = vrot.slane %v4480_v10, %v8541_v31  ;;  %v4451_v61 = vmul.f32 %v4419_v18, %v4161_v52  ;;  %v3308_v28 = vmul.f32 %v3276_v7, %v3020_v34  ;;  %v5082_v10 = vld [vmem:[%s8809_s13] ss:$0 sm:$0xff] }
 0x8ae   : > { %v5083_v52 = vld [vmem:[%s8811_s15] ss:$0 sm:$0xff] }
 0x8af   : > { %v4653_v32 = vsel %vm4538_vm12, %v4652_v0, %v4648_v49  ;;  %v4483_v45 = vadd.f32 %v4451_v61, %v3307_v26 }
 0x8b0   : > { %v4164_v2 = vpop.xlane.xlu0 %4163  ;;  %v4678_v8 = vsel %vm2046_vm7, %v4653_v32, %v4677_v20 }
 0x8b1   : > { %v4666_v16 = vrot.slane %v4483_v45, %v8501_v9  ;;  %v4452_v15 = vmul.f32 %v4420_v47, %v4164_v2 }
 0x8b3   : > { %v4667_v63 = vsel %vm4531_vm11, %v4666_v16, %v4662_v54  ;;  %v4484_v14 = vadd.f32 %v4452_v15, %v3308_v28 }
 0x8b5   : > { %v4671_v37 = vrot.slane %v4484_v14, %v8541_v31  ;;  %v4715_v31 = vld [vmem:[%s9117_s26 + $0x18] sm:$0xff] }
 0x8b6   : > { %5108 = vmatpush3.msra.mxu1 %v4715_v31 }
 0x8b7   : > { %v4672_v35 = vsel %vm4538_vm12, %v4671_v37, %v4667_v63  ;;  %5109 = vmatprep.subr.mxu1 %v9119_v30 }
 0x8b8   : > { %v4679_v19 = vsel %vm2048_vm8, %v4672_v35, %v4678_v8  ;;  %5110 = vmatpush3.msra.mxu1 %v4714_v1 }
 0x8b9   : > { %v4681_v27 = vadd.f32 %v4679_v19, %v9116_v41  ;;  %5111 = vmatprep.subr.mxu1 %v9119_v30 }
 0x8ba   : > { %5112 = vmatpush3.msra.mxu1 %v4713_v48 }
 0x8bb   : > { %v4682_v44 = vmax.f32 %v4681_v27, 0.0  ;;  %5113 = vmatprep.subr.mxu1 %v9119_v30 }
 0x8bc   : > { %5114 = vmatpush3.msra.mxu1 %v4712_v21 }
 0x8bd   : > { %v4685_v25 = vsel %vm2168_vm10, %v4682_v44, 0.0 }
 0x8be   : > { %4686 = vadd.xlane.f32.xlu1 %v4685_v25 }
 0x947   : > { %v4687_v56 = vpop.xlane.xlu1 %4686 }
 0x948   : > { %v4688_v29 = vmul.f32 0.03125, %v4687_v56 }
 0x94a   : > { %v4689_v9 = vsub.f32 %v4682_v44, %v4688_v29 }
 0x94c   : > { %v4690_v23 = vmul.f32 %v4689_v9, %v4689_v9 }
 0x94e   : > { %v4691_v39 = vsel %vm2168_vm10, %v4690_v23, 0.0 }
 0x94f   : > { %4692 = vadd.xlane.f32.xlu0 %v4691_v39 }
 0x9d8   : > { %v4693_v60 = vpop.xlane.xlu0 %4692 }
 0x9d9   : > { %v4694_v40 = vmul.f32 0.03125, %v4693_v60 }
 0x9db   : > { %v4695_v36 = vadd.f32 1e-05, %v4694_v40 }
 0x9dd   : > { %5799 = vrsqrt.f32 %v4695_v36 }
 0x9ea   : > { %v5800_v55 = vpop.eup %5799 }
 0x9eb   : > { %v4697_v62 = vmul.f32 %v5800_v55, %v4689_v9 }
 0x9ed   : > { %v4704_v20 = vmul.f32 %v5077_v51, %v4697_v62 }
 0x9ef   : > { %v4711_v38 = vadd.f32 %v5078_v46, %v4704_v20 }
 0x9f1   : > { %5116 = vmatmul.mubr.msk.f32.vlgmr.msra.gmra.mxu1 %vm2168_vm10, %v4711_v38 }
 0xab1   : > { %v4792_v58 = vpop.f32.mrf.mxu1 }
 0xab2   : > { %v4793_v5 = vadd.f32 %v5079_v59, %v4792_v58 }
 0xab3   : > { %v5117_v4 = vpop.f32.mrf.mxu1 }
 0xab4   : > { %v4796_v33 = vmax.f32 %v4793_v5, 0.0 }
 0xab6   : > { %v4799_v43 = vsel %vm853_vm0, %v4796_v33, 0.0 }
 0xab7   : > { %4800 = vadd.xlane.f32.xlu1 %v4799_v43 }
 0xb40   : > { %v4801_v53 = vpop.xlane.xlu1 %4800 }
 0xb41   : > { %v4802_v49 = vmul.f32 0.0625, %v4801_v53 }
 0xb43   : > { %v4803_v11 = vsub.f32 %v4796_v33, %v4802_v49 }
 0xb45   : > { %v4804_v57 = vmul.f32 %v4803_v11, %v4803_v11 }
 0xb47   : > { %v4805_v13 = vsel %vm853_vm0, %v4804_v57, 0.0 }
 0xb48   : > { %4806 = vadd.xlane.f32.xlu0 %v4805_v13 }
 0xbd1   : > { %v4807_v42 = vpop.xlane.xlu0 %4806 }
 0xbd2   : > { %v4808_v24 = vmul.f32 0.0625, %v4807_v42 }
 0xbd4   : > { %v4809_v6 = vadd.f32 1e-05, %v4808_v24 }
 0xbd6   : > { %5801 = vrsqrt.f32 %v4809_v6 }
 0xbe3   : > { %v5802_v12 = vpop.eup %5801 }
 0xbe4   : > { %v4811_v54 = vmul.f32 %v5802_v12, %v4803_v11 }
 0xbe6   : > { %v4818_v18 = vmul.f32 %v5081_v3, %v4811_v54 }
 0xbe8   : > { %v4825_v22 = vadd.f32 %v5082_v10, %v4818_v18 }
 0xbea   : > { %5123 = vmatmul.mubr.msk.f32.vlgmr.msra.gmra.mxu0 %vm853_vm0, %v4825_v22 }
 0xcaa   : > { %v4904_v26 = vpop.f32.mrf.mxu0 }
 0xcab   : > { %v4905_v0 = vadd.f32 %v5083_v52, %v4904_v26 }
 0xcac   : > { %v5124_v61 = vpop.f32.mrf.mxu0 }
 0xcad   : > { %4908 = vst [vmem:[%s553_s6] sm:$0xff] %v4905_v0 }
 0xcae   : > { %5956 = shalt.err (!%p5953_p0)
}
 0xcaf   : > { %s5957_s19 = scalar_lea.hbm %s8761_s0, 128  ;;  %s5961_s6 = scalar_lea.hbm %s8812_s16, 256 }
 0xcb0   : > { %p5958_p13 = scmp.ne.s32.totalorder %s8761_s0, %s5957_s19  ;;  %p5962_p9 = scmp.lt.s32.totalorder %s8761_s0, %s8812_s16 }
 0xcb1   : > { %p5963_p12 = scmp.lt.s32.totalorder %s5961_s6, %s5957_s19 }
 0xcb2   : > { %p5959_p1 = pnand %p5958_p13, %p9120_p6 }
 0xcb3   : > { %p5964_p3 = por %p5963_p12, %p5962_p9 }
 0xcb4   : > { %p5960_p2 = pneg %p5959_p1 }
 0xcb6   : > { %p5965_p5 = pnand %p5964_p3, %p5960_p2 }
 0xcb8   : > { %5968 = shalt.err (!%p5965_p5)
}
 0xcb9   : > { %5145 = dma.vmem_to_hbm [thread:$0]  (%p9120_p6), %s4924_s28, 128, %s8761_s0, %s4910_s21  }
 0xcba PF: > { %s9121_s23 = sld [smem:[#allocation19_spill]]  ;;  %p5177_p10 = scmp.ge.s32.totalorder %s6017_s27, 2 }
 0xcbb   : > { %s9122_s17 = sld [smem:[#allocation23_spill]] }
 0xcc0   : > { %s4935_s10 = sand.u32 1, %s9121_s23  }
 0xcc1   : > { %p9123_p4 = scmp.ne.s32.totalorder %s9122_s17, 0  ;;  %s4936_s24 = scalar_lea.sflag [#allocation6], %s4935_s10 }
 0xcc3   : > { %p5164_p7 = pnand %p5177_p10, %p9123_p4 }
 0xcc5   : > { %p5165_p8 = pneg %p5164_p7 }
 0xcc7   : > { %6000 = dma.done.wait (%p5165_p8), %s4936_s24, 128  }
 0xcc8   : > { %6002 = vsyncadd (%p5165_p8), %s4936_s24, 4294967168  ;;  %s9124_s27 = sld [smem:[#allocation21_spill]]  ;;  %s9127_s24 = smov %s6009_s25 }
 0xcc9   : > { %s9125_s19 = sld [smem:[#allocation20_spill]] }
 0xcca   : > { %s9126_s26 = sld [smem:[#allocation22_spill]] }
 0xcce   : > { %p33_p11 = scmp.ge.s32.totalorder %s9124_s27, 4  }
 0xccf   : > { %s9128_s25 = smov %s9125_s19 }
 0xcd0   :  { %35 = sbr.rel (!%p33_p11) target bundleno = 20 (0x14), region = 136 }
 0xcd5   :  { %4941 = vsyncpa [#allocation5], 1 }
 0xcd6   :  { %4943 = vsyncpa [#allocation5 + $0x1], 1 }
 0xcd7   :  { %4944 = vsyncpa [#allocation8], 1 }
 0xcd8   :  { %4945 = vsyncpa [#allocation11], 1 }
 0xcd9   :  { %4946 = vsyncpa [#allocation6], 1 }
 0xcda   :  { %4948 = vsyncpa [#allocation6 + $0x1], 1 }

</bundles_post_ra>
